<compile_context>
chip_gen: v5e
topology: v5e:2x2
jax: 0.10.0
libtpu: 0.0.40
codegen_flags: <defaults>
</compile_context>

<pallas_src>
import math
import functools

import numpy as np
import jax
import jax.numpy as jnp
from jax.experimental import pallas as pl
from jax.experimental.pallas import tpu as pltpu


# ---------------------------------------------------------------------------
# In-kernel building blocks (pure functions on loaded values + scratch refs)
# ---------------------------------------------------------------------------

def _add_layernorm(x, y, gamma, beta, eps):
    """LayerNorm(x + y) over the last axis (biased variance, like torch)."""
    z = x + y
    mean = jnp.mean(z, axis=-1, keepdims=True)
    var = jnp.mean((z - mean) ** 2, axis=-1, keepdims=True)
    zn = (z - mean) * jax.lax.rsqrt(var + eps)
    return zn * gamma + beta


def _feed_forward(x, w1, b1, w2, b2):
    """relu(x @ W1 + b1) @ W2 + b2 on flattened token rows."""
    h = jnp.dot(x, w1, preferred_element_type=jnp.float32) + b1
    h = jnp.maximum(h, 0.0)
    return jnp.dot(h, w2, preferred_element_type=jnp.float32) + b2


def _mha(q_rows, kv_rows, wq, wk, wv, wo, ctx_scr, out_scr, *,
         batch, q_len, k_len, n_head):
    """Multi-head attention on flattened token rows.

    q_rows  : (batch*q_len, d_model)      kv_rows : (batch*k_len, d_model)
    ctx_scr : VMEM (q_len, d_model)       out_scr : VMEM (batch*q_len, d_model)
    Writes the attention output (post WO) into out_scr.
    """
    d_model = wq.shape[0]
    d_k = d_model // n_head
    scale = 1.0 / math.sqrt(d_k)

    # Full-width projections over the whole batch at once (one MXU pass each).
    Q = jnp.dot(q_rows, wq, preferred_element_type=jnp.float32)
    K = jnp.dot(kv_rows, wk, preferred_element_type=jnp.float32)
    V = jnp.dot(kv_rows, wv, preferred_element_type=jnp.float32)

    for b in range(batch):                       # static unroll, batch is tiny
        Qb = Q[b * q_len:(b + 1) * q_len, :]
        Kb = K[b * k_len:(b + 1) * k_len, :]
        Vb = V[b * k_len:(b + 1) * k_len, :]
        for h in range(n_head):                  # static unroll over heads
            Qh = Qb[:, h * d_k:(h + 1) * d_k]
            Kh = Kb[:, h * d_k:(h + 1) * d_k]
            Vh = Vb[:, h * d_k:(h + 1) * d_k]
            # scores: contract the last dims directly (no materialized K^T)
            s = jax.lax.dot_general(
                Qh, Kh, (((1,), (1,)), ((), ())),
                preferred_element_type=jnp.float32) * scale
            s = s - jnp.max(s, axis=-1, keepdims=True)
            p = jnp.exp(s)
            p = p * pl.reciprocal(jnp.sum(p, axis=-1, keepdims=True), approx=True)
            ctx_scr[:, h * d_k:(h + 1) * d_k] = jnp.dot(
                p, Vh, preferred_element_type=jnp.float32)
        # single full-K output projection of the concatenated head contexts
        out_scr[b * q_len:(b + 1) * q_len, :] = jnp.dot(
            ctx_scr[...], wo, preferred_element_type=jnp.float32)


# ---------------------------------------------------------------------------
# Fused per-layer kernels
# ---------------------------------------------------------------------------

def _encoder_layer_kernel(x_ref, wq_ref, wk_ref, wv_ref, wo_ref,
                          g1_ref, b1_ref, w1_ref, c1_ref, w2_ref, c2_ref,
                          g2_ref, b2_ref, o_ref, ctx_scr, attn_scr, *,
                          batch, seq, n_head, eps):
    x = x_ref[...].astype(jnp.float32)                     # (B*S, d_model)
    _mha(x, x, wq_ref[...], wk_ref[...], wv_ref[...], wo_ref[...],
         ctx_scr, attn_scr, batch=batch, q_len=seq, k_len=seq, n_head=n_head)
    x = _add_layernorm(x, attn_scr[...], g1_ref[...], b1_ref[...], eps)
    f = _feed_forward(x, w1_ref[...], c1_ref[...], w2_ref[...], c2_ref[...])
    x = _add_layernorm(x, f, g2_ref[...], b2_ref[...], eps)
    o_ref[...] = x.astype(o_ref.dtype)


def _decoder_layer_kernel(x_ref, mem_ref,
                          swq_ref, swk_ref, swv_ref, swo_ref, g1_ref, b1_ref,
                          cwq_ref, cwk_ref, cwv_ref, cwo_ref, g2_ref, b2_ref,
                          w1_ref, c1_ref, w2_ref, c2_ref, g3_ref, b3_ref,
                          o_ref, ctx_scr, attn_scr, *,
                          batch, q_len, k_len, n_head, eps):
    x = x_ref[...].astype(jnp.float32)                     # (B*T, d_model)
    mem = mem_ref[...].astype(jnp.float32)                 # (B*S, d_model)
    # self-attention (no causal mask: forward defaults reproduce mask=None)
    _mha(x, x, swq_ref[...], swk_ref[...], swv_ref[...], swo_ref[...],
         ctx_scr, attn_scr, batch=batch, q_len=q_len, k_len=q_len, n_head=n_head)
    x = _add_layernorm(x, attn_scr[...], g1_ref[...], b1_ref[...], eps)
    # encoder-decoder attention
    _mha(x, mem, cwq_ref[...], cwk_ref[...], cwv_ref[...], cwo_ref[...],
         ctx_scr, attn_scr, batch=batch, q_len=q_len, k_len=k_len, n_head=n_head)
    x = _add_layernorm(x, attn_scr[...], g2_ref[...], b2_ref[...], eps)
    f = _feed_forward(x, w1_ref[...], c1_ref[...], w2_ref[...], c2_ref[...])
    x = _add_layernorm(x, f, g3_ref[...], b3_ref[...], eps)
    o_ref[...] = x.astype(o_ref.dtype)


# ---------------------------------------------------------------------------
# pallas_call wrappers (single grid step, whole batch resident in VMEM)
# ---------------------------------------------------------------------------

def encoder_layer(x_flat, p, *, batch, seq, n_head, eps=1e-5):
    rows, d_model = x_flat.shape
    d_ff = p["ffn"]["w1"].shape[1]
    kernel = functools.partial(_encoder_layer_kernel, batch=batch, seq=seq,
                               n_head=n_head, eps=eps)
    flops = (8 * rows * d_model * d_model            # QKV + output projections
             + 4 * batch * seq * seq * d_model       # scores + context matmuls
             + 4 * rows * d_model * d_ff             # FFN matmuls
             + 16 * rows * d_model)                  # adds / LayerNorm
    trans = batch * n_head * seq * seq + 2 * rows
    bytes_acc = 4 * (2 * rows * d_model + 4 * d_model * d_model
                     + 2 * d_model * d_ff + d_ff + 5 * d_model)
    return pl.pallas_call(
        kernel,
        out_shape=jax.ShapeDtypeStruct((rows, d_model), x_flat.dtype),
        scratch_shapes=[pltpu.VMEM((seq, d_model), jnp.float32),
                        pltpu.VMEM((rows, d_model), jnp.float32)],
        cost_estimate=pl.CostEstimate(flops=int(flops), transcendentals=int(trans),
                                      bytes_accessed=int(bytes_acc)),
    )(x_flat,
      p["self_attn"]["wq"], p["self_attn"]["wk"],
      p["self_attn"]["wv"], p["self_attn"]["wo"],
      p["norm1"]["gamma"], p["norm1"]["beta"],
      p["ffn"]["w1"], p["ffn"]["b1"], p["ffn"]["w2"], p["ffn"]["b2"],
      p["norm2"]["gamma"], p["norm2"]["beta"])


def decoder_layer(x_flat, mem_flat, p, *, batch, q_len, k_len, n_head, eps=1e-5):
    rows, d_model = x_flat.shape
    rows_kv = mem_flat.shape[0]
    d_ff = p["ffn"]["w1"].shape[1]
    kernel = functools.partial(_decoder_layer_kernel, batch=batch, q_len=q_len,
                               k_len=k_len, n_head=n_head, eps=eps)
    flops = (12 * rows * d_model * d_model           # self QKVO + cross Q,O
             + 4 * rows_kv * d_model * d_model       # cross K,V
             + 4 * batch * q_len * q_len * d_model   # self-attn scores + ctx
             + 4 * batch * q_len * k_len * d_model   # cross-attn scores + ctx
             + 4 * rows * d_model * d_ff             # FFN matmuls
             + 24 * rows * d_model)
    trans = batch * n_head * q_len * (q_len + k_len) + 3 * rows
    bytes_acc = 4 * (2 * rows * d_model + rows_kv * d_model
                     + 8 * d_model * d_model + 2 * d_model * d_ff
                     + d_ff + 7 * d_model)
    return pl.pallas_call(
        kernel,
        out_shape=jax.ShapeDtypeStruct((rows, d_model), x_flat.dtype),
        scratch_shapes=[pltpu.VMEM((q_len, d_model), jnp.float32),
                        pltpu.VMEM((rows, d_model), jnp.float32)],
        cost_estimate=pl.CostEstimate(flops=int(flops), transcendentals=int(trans),
                                      bytes_accessed=int(bytes_acc)),
    )(x_flat, mem_flat,
      p["self_attn"]["wq"], p["self_attn"]["wk"],
      p["self_attn"]["wv"], p["self_attn"]["wo"],
      p["norm1"]["gamma"], p["norm1"]["beta"],
      p["enc_dec_attn"]["wq"], p["enc_dec_attn"]["wk"],
      p["enc_dec_attn"]["wv"], p["enc_dec_attn"]["wo"],
      p["norm2"]["gamma"], p["norm2"]["beta"],
      p["ffn"]["w1"], p["ffn"]["b1"], p["ffn"]["w2"], p["ffn"]["b2"],
      p["norm3"]["gamma"], p["norm3"]["beta"])


# ---------------------------------------------------------------------------
# Model glue (plain JAX)
# ---------------------------------------------------------------------------

@functools.lru_cache(maxsize=None)
def positional_encoding(seq_len, d_model):
    """Sinusoidal PE table, built once on host and cached."""
    pos = np.arange(seq_len, dtype=np.float32)[:, None]
    div = np.exp(np.arange(0, d_model, 2, dtype=np.float32)
                 * (-math.log(10000.0) / d_model))
    ang = pos * div
    pe = np.zeros((seq_len, d_model), np.float32)
    pe[:, 0::2] = np.sin(ang)
    pe[:, 1::2] = np.cos(ang)
    return jnp.asarray(pe)[None, :, :]              # (1, seq_len, d_model)


def _init_linear(key, d_in, d_out, bias=True):
    k1, k2 = jax.random.split(key)
    bound = 1.0 / math.sqrt(d_in)
    w = jax.random.uniform(k1, (d_in, d_out), jnp.float32, -bound, bound)
    if bias:
        b = jax.random.uniform(k2, (1, d_out), jnp.float32, -bound, bound)
        return w, b
    return w, None


def _init_mha(key, d_model):
    ks = jax.random.split(key, 4)
    wq, _ = _init_linear(ks[0], d_model, d_model, bias=False)
    wk, _ = _init_linear(ks[1], d_model, d_model, bias=False)
    wv, _ = _init_linear(ks[2], d_model, d_model, bias=False)
    wo, _ = _init_linear(ks[3], d_model, d_model, bias=False)
    return dict(wq=wq, wk=wk, wv=wv, wo=wo)


def _init_ln(d_model):
    return dict(gamma=jnp.ones((1, d_model), jnp.float32),
                beta=jnp.zeros((1, d_model), jnp.float32))


def _init_ffn(key, d_model, d_ff):
    k1, k2 = jax.random.split(key)
    w1, b1 = _init_linear(k1, d_model, d_ff)
    w2, b2 = _init_linear(k2, d_ff, d_model)
    return dict(w1=w1, b1=b1, w2=w2, b2=b2)


def init_transformer_params(key, d_model, d_ff):
    k_enc, k_dec = jax.random.split(key)
    ke1, ke2 = jax.random.split(k_enc)
    kd1, kd2, kd3 = jax.random.split(k_dec, 3)
    # `clone` deepcopies one initialized layer -> all layers of a stack share
    # the same initial weights; mimic by initializing a single layer per stack.
    enc_layer = dict(self_attn=_init_mha(ke1, d_model),
                     norm1=_init_ln(d_model),
                     ffn=_init_ffn(ke2, d_model, d_ff),
                     norm2=_init_ln(d_model))
    dec_layer = dict(self_attn=_init_mha(kd1, d_model),
                     norm1=_init_ln(d_model),
                     enc_dec_attn=_init_mha(kd2, d_model),
                     norm2=_init_ln(d_model),
                     ffn=_init_ffn(kd3, d_model, d_ff),
                     norm3=_init_ln(d_model))
    return dict(enc_layer=enc_layer, dec_layer=dec_layer)


@functools.partial(jax.jit, static_argnames=("n_head", "n_enc_layer", "n_dec_layer"))
def transformer_forward(params, src_embed, tgt_embed, *, n_head,
                        n_enc_layer, n_dec_layer):
    B, S, D = src_embed.shape
    T = tgt_embed.shape[1]
    # add positional encoding, then flatten to lane/sublane-friendlier 2-D rows
    src = (src_embed + positional_encoding(S, D)).reshape(B * S, D)
    tgt = (tgt_embed + positional_encoding(T, D)).reshape(B * T, D)

    memory = src
    for _ in range(n_enc_layer):
        memory = encoder_layer(memory, params["enc_layer"],
                               batch=B, seq=S, n_head=n_head)

    out = tgt
    for _ in range(n_dec_layer):
        out = decoder_layer(out, memory, params["dec_layer"],
                            batch=B, q_len=T, k_len=S, n_head=n_head)
    return out.reshape(B, T, D)


# ---------------------------------------------------------------------------
# main
# ---------------------------------------------------------------------------

if __name__ == "__main__":
    B = 2
    src_len = 8
    tgt_len = 8
    d_model = 32
    n_head = 4
    d_ff = 64
    n_enc_layer = 2
    n_dec_layer = 2

    key = jax.random.PRNGKey(0)
    k_param, k_src, k_tgt = jax.random.split(key, 3)

    params = init_transformer_params(k_param, d_model, d_ff)
    src_embed = jax.random.normal(k_src, (B, src_len, d_model), jnp.float32)
    tgt_embed = jax.random.normal(k_tgt, (B, tgt_len, d_model), jnp.float32)

    out = transformer_forward(params, src_embed, tgt_embed,
                              n_head=n_head, n_enc_layer=n_enc_layer,
                              n_dec_layer=n_dec_layer)
    jax.block_until_ready(out)
    assert out.shape == (B, tgt_len, d_model)
    print("KERNEL_OK")
</pallas_src>

<mosaic_0001>
module attributes {stable_mosaic.version = 11 : i64} {
  func.func @_encoder_layer_kernel(%arg0: memref<16x32xf32, #tpu.memory_space<vmem>>, %arg1: memref<32x32xf32, #tpu.memory_space<vmem>>, %arg2: memref<32x32xf32, #tpu.memory_space<vmem>>, %arg3: memref<32x32xf32, #tpu.memory_space<vmem>>, %arg4: memref<32x32xf32, #tpu.memory_space<vmem>>, %arg5: memref<1x32xf32, #tpu.memory_space<vmem>>, %arg6: memref<1x32xf32, #tpu.memory_space<vmem>>, %arg7: memref<32x64xf32, #tpu.memory_space<vmem>>, %arg8: memref<1x64xf32, #tpu.memory_space<vmem>>, %arg9: memref<64x32xf32, #tpu.memory_space<vmem>>, %arg10: memref<1x32xf32, #tpu.memory_space<vmem>>, %arg11: memref<1x32xf32, #tpu.memory_space<vmem>>, %arg12: memref<1x32xf32, #tpu.memory_space<vmem>>, %arg13: memref<16x32xf32, #tpu.memory_space<vmem>>, %arg14: memref<8x32xf32, #tpu.memory_space<vmem>>, %arg15: memref<16x32xf32, #tpu.memory_space<vmem>>) attributes {dimension_semantics = [], scalar_prefetch = 0 : i64, scratch_operands = 2 : i64, tpu.core_type = #tpu.core_type<tc>} {
    %c0 = arith.constant 0 : index
    %c0_0 = arith.constant 0 : index
    %0 = vector.load %arg0[%c0, %c0_0] : memref<16x32xf32, #tpu.memory_space<vmem>>, vector<16x32xf32>
    %c0_1 = arith.constant 0 : index
    %c0_2 = arith.constant 0 : index
    %1 = vector.load %arg1[%c0_1, %c0_2] : memref<32x32xf32, #tpu.memory_space<vmem>>, vector<32x32xf32>
    %c0_3 = arith.constant 0 : index
    %c0_4 = arith.constant 0 : index
    %2 = vector.load %arg2[%c0_3, %c0_4] : memref<32x32xf32, #tpu.memory_space<vmem>>, vector<32x32xf32>
    %c0_5 = arith.constant 0 : index
    %c0_6 = arith.constant 0 : index
    %3 = vector.load %arg3[%c0_5, %c0_6] : memref<32x32xf32, #tpu.memory_space<vmem>>, vector<32x32xf32>
    %c0_7 = arith.constant 0 : index
    %c0_8 = arith.constant 0 : index
    %4 = vector.load %arg4[%c0_7, %c0_8] : memref<32x32xf32, #tpu.memory_space<vmem>>, vector<32x32xf32>
    %cst = arith.constant dense<0.000000e+00> : vector<16x32xf32>
    %5 = tpu.matmul %0, %1, %cst {dimension_numbers = #tpu.dot_dimension_numbers<[1], [0], [0], [1], [0, 0, 1, 1], [], []>} : vector<16x32xf32>, vector<32x32xf32>, vector<16x32xf32> -> vector<16x32xf32>
    %cst_9 = arith.constant dense<0.000000e+00> : vector<16x32xf32>
    %6 = tpu.matmul %0, %2, %cst_9 {dimension_numbers = #tpu.dot_dimension_numbers<[1], [0], [0], [1], [0, 0, 1, 1], [], []>} : vector<16x32xf32>, vector<32x32xf32>, vector<16x32xf32> -> vector<16x32xf32>
    %cst_10 = arith.constant dense<0.000000e+00> : vector<16x32xf32>
    %7 = tpu.matmul %0, %3, %cst_10 {dimension_numbers = #tpu.dot_dimension_numbers<[1], [0], [0], [1], [0, 0, 1, 1], [], []>} : vector<16x32xf32>, vector<32x32xf32>, vector<16x32xf32> -> vector<16x32xf32>
    %8 = vector.extract_strided_slice %5 {offsets = [0, 0], sizes = [8, 32], strides = [1, 1]} : vector<16x32xf32> to vector<8x32xf32>
    %9 = vector.extract_strided_slice %6 {offsets = [0, 0], sizes = [8, 32], strides = [1, 1]} : vector<16x32xf32> to vector<8x32xf32>
    %10 = vector.extract_strided_slice %7 {offsets = [0, 0], sizes = [8, 32], strides = [1, 1]} : vector<16x32xf32> to vector<8x32xf32>
    %11 = vector.extract_strided_slice %8 {offsets = [0, 0], sizes = [8, 8], strides = [1, 1]} : vector<8x32xf32> to vector<8x8xf32>
    %12 = vector.extract_strided_slice %9 {offsets = [0, 0], sizes = [8, 8], strides = [1, 1]} : vector<8x32xf32> to vector<8x8xf32>
    %13 = vector.extract_strided_slice %10 {offsets = [0, 0], sizes = [8, 8], strides = [1, 1]} : vector<8x32xf32> to vector<8x8xf32>
    %cst_11 = arith.constant dense<0.000000e+00> : vector<8x8xf32>
    %14 = tpu.matmul %11, %12, %cst_11 {dimension_numbers = #tpu.dot_dimension_numbers<[1], [1], [0], [0], [0, 0, 1, 0], [], []>} : vector<8x8xf32>, vector<8x8xf32>, vector<8x8xf32> -> vector<8x8xf32>
    %cst_12 = arith.constant 0.353553385 : f32
    %15 = vector.broadcast %cst_12 : f32 to vector<8x8xf32>
    %16 = arith.mulf %14, %15 : vector<8x8xf32>
    %cst_13 = arith.constant dense<0xFF800000> : vector<8xf32>
    %17 = vector.multi_reduction <maximumf>, %16, %cst_13 [1] : vector<8x8xf32> to vector<8xf32>
    %18 = vector.shape_cast %17 : vector<8xf32> to vector<8x1xf32>
    %19 = vector.broadcast %18 : vector<8x1xf32> to vector<8x8xf32>
    %20 = arith.subf %16, %19 : vector<8x8xf32>
    %21 = math.exp %20 : vector<8x8xf32>
    %cst_14 = arith.constant dense<0.000000e+00> : vector<8xf32>
    %22 = vector.multi_reduction <add>, %21, %cst_14 [1] : vector<8x8xf32> to vector<8xf32>
    %23 = vector.shape_cast %22 : vector<8xf32> to vector<8x1xf32>
    %24 = tpu.reciprocal %23 {approx = true} : vector<8x1xf32> -> vector<8x1xf32>
    %25 = vector.broadcast %24 : vector<8x1xf32> to vector<8x8xf32>
    %26 = arith.mulf %21, %25 : vector<8x8xf32>
    %cst_15 = arith.constant dense<0.000000e+00> : vector<8x8xf32>
    %27 = tpu.matmul %26, %13, %cst_15 {dimension_numbers = #tpu.dot_dimension_numbers<[1], [0], [0], [1], [0, 0, 1, 1], [], []>} : vector<8x8xf32>, vector<8x8xf32>, vector<8x8xf32> -> vector<8x8xf32>
    %c0_16 = arith.constant 0 : index
    %c0_17 = arith.constant 0 : index
    %28 = vector.load %arg14[%c0_16, %c0_17] : memref<8x32xf32, #tpu.memory_space<vmem>>, vector<8x8xf32>
    tpu.vector_store %arg14[%c0_16, %c0_17], %27 {strides = array<i32>} : memref<8x32xf32, #tpu.memory_space<vmem>>, vector<8x8xf32>,
    %29 = vector.extract_strided_slice %8 {offsets = [0, 8], sizes = [8, 8], strides = [1, 1]} : vector<8x32xf32> to vector<8x8xf32>
    %30 = vector.extract_strided_slice %9 {offsets = [0, 8], sizes = [8, 8], strides = [1, 1]} : vector<8x32xf32> to vector<8x8xf32>
    %31 = vector.extract_strided_slice %10 {offsets = [0, 8], sizes = [8, 8], strides = [1, 1]} : vector<8x32xf32> to vector<8x8xf32>
    %cst_18 = arith.constant dense<0.000000e+00> : vector<8x8xf32>
    %32 = tpu.matmul %29, %30, %cst_18 {dimension_numbers = #tpu.dot_dimension_numbers<[1], [1], [0], [0], [0, 0, 1, 0], [], []>} : vector<8x8xf32>, vector<8x8xf32>, vector<8x8xf32> -> vector<8x8xf32>
    %cst_19 = arith.constant 0.353553385 : f32
    %33 = vector.broadcast %cst_19 : f32 to vector<8x8xf32>
    %34 = arith.mulf %32, %33 : vector<8x8xf32>
    %cst_20 = arith.constant dense<0xFF800000> : vector<8xf32>
    %35 = vector.multi_reduction <maximumf>, %34, %cst_20 [1] : vector<8x8xf32> to vector<8xf32>
    %36 = vector.shape_cast %35 : vector<8xf32> to vector<8x1xf32>
    %37 = vector.broadcast %36 : vector<8x1xf32> to vector<8x8xf32>
    %38 = arith.subf %34, %37 : vector<8x8xf32>
    %39 = math.exp %38 : vector<8x8xf32>
    %cst_21 = arith.constant dense<0.000000e+00> : vector<8xf32>
    %40 = vector.multi_reduction <add>, %39, %cst_21 [1] : vector<8x8xf32> to vector<8xf32>
    %41 = vector.shape_cast %40 : vector<8xf32> to vector<8x1xf32>
    %42 = tpu.reciprocal %41 {approx = true} : vector<8x1xf32> -> vector<8x1xf32>
    %43 = vector.broadcast %42 : vector<8x1xf32> to vector<8x8xf32>
    %44 = arith.mulf %39, %43 : vector<8x8xf32>
    %cst_22 = arith.constant dense<0.000000e+00> : vector<8x8xf32>
    %45 = tpu.matmul %44, %31, %cst_22 {dimension_numbers = #tpu.dot_dimension_numbers<[1], [0], [0], [1], [0, 0, 1, 1], [], []>} : vector<8x8xf32>, vector<8x8xf32>, vector<8x8xf32> -> vector<8x8xf32>
    %c0_23 = arith.constant 0 : index
    %c8 = arith.constant 8 : index
    %46 = vector.load %arg14[%c0_23, %c8] : memref<8x32xf32, #tpu.memory_space<vmem>>, vector<8x8xf32>
    tpu.vector_store %arg14[%c0_23, %c8], %45 {strides = array<i32>} : memref<8x32xf32, #tpu.memory_space<vmem>>, vector<8x8xf32>,
    %47 = vector.extract_strided_slice %8 {offsets = [0, 16], sizes = [8, 8], strides = [1, 1]} : vector<8x32xf32> to vector<8x8xf32>
    %48 = vector.extract_strided_slice %9 {offsets = [0, 16], sizes = [8, 8], strides = [1, 1]} : vector<8x32xf32> to vector<8x8xf32>
    %49 = vector.extract_strided_slice %10 {offsets = [0, 16], sizes = [8, 8], strides = [1, 1]} : vector<8x32xf32> to vector<8x8xf32>
    %cst_24 = arith.constant dense<0.000000e+00> : vector<8x8xf32>
    %50 = tpu.matmul %47, %48, %cst_24 {dimension_numbers = #tpu.dot_dimension_numbers<[1], [1], [0], [0], [0, 0, 1, 0], [], []>} : vector<8x8xf32>, vector<8x8xf32>, vector<8x8xf32> -> vector<8x8xf32>
    %cst_25 = arith.constant 0.353553385 : f32
    %51 = vector.broadcast %cst_25 : f32 to vector<8x8xf32>
    %52 = arith.mulf %50, %51 : vector<8x8xf32>
    %cst_26 = arith.constant dense<0xFF800000> : vector<8xf32>
    %53 = vector.multi_reduction <maximumf>, %52, %cst_26 [1] : vector<8x8xf32> to vector<8xf32>
    %54 = vector.shape_cast %53 : vector<8xf32> to vector<8x1xf32>
    %55 = vector.broadcast %54 : vector<8x1xf32> to vector<8x8xf32>
    %56 = arith.subf %52, %55 : vector<8x8xf32>
    %57 = math.exp %56 : vector<8x8xf32>
    %cst_27 = arith.constant dense<0.000000e+00> : vector<8xf32>
    %58 = vector.multi_reduction <add>, %57, %cst_27 [1] : vector<8x8xf32> to vector<8xf32>
    %59 = vector.shape_cast %58 : vector<8xf32> to vector<8x1xf32>
    %60 = tpu.reciprocal %59 {approx = true} : vector<8x1xf32> -> vector<8x1xf32>
    %61 = vector.broadcast %60 : vector<8x1xf32> to vector<8x8xf32>
    %62 = arith.mulf %57, %61 : vector<8x8xf32>
    %cst_28 = arith.constant dense<0.000000e+00> : vector<8x8xf32>
    %63 = tpu.matmul %62, %49, %cst_28 {dimension_numbers = #tpu.dot_dimension_numbers<[1], [0], [0], [1], [0, 0, 1, 1], [], []>} : vector<8x8xf32>, vector<8x8xf32>, vector<8x8xf32> -> vector<8x8xf32>
    %c0_29 = arith.constant 0 : index
    %c16 = arith.constant 16 : index
    %64 = vector.load %arg14[%c0_29, %c16] : memref<8x32xf32, #tpu.memory_space<vmem>>, vector<8x8xf32>
    tpu.vector_store %arg14[%c0_29, %c16], %63 {strides = array<i32>} : memref<8x32xf32, #tpu.memory_space<vmem>>, vector<8x8xf32>,
    %65 = vector.extract_strided_slice %8 {offsets = [0, 24], sizes = [8, 8], strides = [1, 1]} : vector<8x32xf32> to vector<8x8xf32>
    %66 = vector.extract_strided_slice %9 {offsets = [0, 24], sizes = [8, 8], strides = [1, 1]} : vector<8x32xf32> to vector<8x8xf32>
    %67 = vector.extract_strided_slice %10 {offsets = [0, 24], sizes = [8, 8], strides = [1, 1]} : vector<8x32xf32> to vector<8x8xf32>
    %cst_30 = arith.constant dense<0.000000e+00> : vector<8x8xf32>
    %68 = tpu.matmul %65, %66, %cst_30 {dimension_numbers = #tpu.dot_dimension_numbers<[1], [1], [0], [0], [0, 0, 1, 0], [], []>} : vector<8x8xf32>, vector<8x8xf32>, vector<8x8xf32> -> vector<8x8xf32>
    %cst_31 = arith.constant 0.353553385 : f32
    %69 = vector.broadcast %cst_31 : f32 to vector<8x8xf32>
    %70 = arith.mulf %68, %69 : vector<8x8xf32>
    %cst_32 = arith.constant dense<0xFF800000> : vector<8xf32>
    %71 = vector.multi_reduction <maximumf>, %70, %cst_32 [1] : vector<8x8xf32> to vector<8xf32>
    %72 = vector.shape_cast %71 : vector<8xf32> to vector<8x1xf32>
    %73 = vector.broadcast %72 : vector<8x1xf32> to vector<8x8xf32>
    %74 = arith.subf %70, %73 : vector<8x8xf32>
    %75 = math.exp %74 : vector<8x8xf32>
    %cst_33 = arith.constant dense<0.000000e+00> : vector<8xf32>
    %76 = vector.multi_reduction <add>, %75, %cst_33 [1] : vector<8x8xf32> to vector<8xf32>
    %77 = vector.shape_cast %76 : vector<8xf32> to vector<8x1xf32>
    %78 = tpu.reciprocal %77 {approx = true} : vector<8x1xf32> -> vector<8x1xf32>
    %79 = vector.broadcast %78 : vector<8x1xf32> to vector<8x8xf32>
    %80 = arith.mulf %75, %79 : vector<8x8xf32>
    %cst_34 = arith.constant dense<0.000000e+00> : vector<8x8xf32>
    %81 = tpu.matmul %80, %67, %cst_34 {dimension_numbers = #tpu.dot_dimension_numbers<[1], [0], [0], [1], [0, 0, 1, 1], [], []>} : vector<8x8xf32>, vector<8x8xf32>, vector<8x8xf32> -> vector<8x8xf32>
    %c0_35 = arith.constant 0 : index
    %c24 = arith.constant 24 : index
    %82 = vector.load %arg14[%c0_35, %c24] : memref<8x32xf32, #tpu.memory_space<vmem>>, vector<8x8xf32>
    tpu.vector_store %arg14[%c0_35, %c24], %81 {strides = array<i32>} : memref<8x32xf32, #tpu.memory_space<vmem>>, vector<8x8xf32>,
    %c0_36 = arith.constant 0 : index
    %c0_37 = arith.constant 0 : index
    %83 = vector.load %arg14[%c0_36, %c0_37] : memref<8x32xf32, #tpu.memory_space<vmem>>, vector<8x32xf32>
    %cst_38 = arith.constant dense<0.000000e+00> : vector<8x32xf32>
    %84 = tpu.matmul %83, %4, %cst_38 {dimension_numbers = #tpu.dot_dimension_numbers<[1], [0], [0], [1], [0, 0, 1, 1], [], []>} : vector<8x32xf32>, vector<32x32xf32>, vector<8x32xf32> -> vector<8x32xf32>
    %c0_39 = arith.constant 0 : index
    %c0_40 = arith.constant 0 : index
    %85 = vector.load %arg15[%c0_39, %c0_40] : memref<16x32xf32, #tpu.memory_space<vmem>>, vector<8x32xf32>
    tpu.vector_store %arg15[%c0_39, %c0_40], %84 {strides = array<i32>} : memref<16x32xf32, #tpu.memory_space<vmem>>, vector<8x32xf32>,
    %86 = vector.extract_strided_slice %5 {offsets = [8, 0], sizes = [8, 32], strides = [1, 1]} : vector<16x32xf32> to vector<8x32xf32>
    %87 = vector.extract_strided_slice %6 {offsets = [8, 0], sizes = [8, 32], strides = [1, 1]} : vector<16x32xf32> to vector<8x32xf32>
    %88 = vector.extract_strided_slice %7 {offsets = [8, 0], sizes = [8, 32], strides = [1, 1]} : vector<16x32xf32> to vector<8x32xf32>
    %89 = vector.extract_strided_slice %86 {offsets = [0, 0], sizes = [8, 8], strides = [1, 1]} : vector<8x32xf32> to vector<8x8xf32>
    %90 = vector.extract_strided_slice %87 {offsets = [0, 0], sizes = [8, 8], strides = [1, 1]} : vector<8x32xf32> to vector<8x8xf32>
    %91 = vector.extract_strided_slice %88 {offsets = [0, 0], sizes = [8, 8], strides = [1, 1]} : vector<8x32xf32> to vector<8x8xf32>
    %cst_41 = arith.constant dense<0.000000e+00> : vector<8x8xf32>
    %92 = tpu.matmul %89, %90, %cst_41 {dimension_numbers = #tpu.dot_dimension_numbers<[1], [1], [0], [0], [0, 0, 1, 0], [], []>} : vector<8x8xf32>, vector<8x8xf32>, vector<8x8xf32> -> vector<8x8xf32>
    %cst_42 = arith.constant 0.353553385 : f32
    %93 = vector.broadcast %cst_42 : f32 to vector<8x8xf32>
    %94 = arith.mulf %92, %93 : vector<8x8xf32>
    %cst_43 = arith.constant dense<0xFF800000> : vector<8xf32>
    %95 = vector.multi_reduction <maximumf>, %94, %cst_43 [1] : vector<8x8xf32> to vector<8xf32>
    %96 = vector.shape_cast %95 : vector<8xf32> to vector<8x1xf32>
    %97 = vector.broadcast %96 : vector<8x1xf32> to vector<8x8xf32>
    %98 = arith.subf %94, %97 : vector<8x8xf32>
    %99 = math.exp %98 : vector<8x8xf32>
    %cst_44 = arith.constant dense<0.000000e+00> : vector<8xf32>
    %100 = vector.multi_reduction <add>, %99, %cst_44 [1] : vector<8x8xf32> to vector<8xf32>
    %101 = vector.shape_cast %100 : vector<8xf32> to vector<8x1xf32>
    %102 = tpu.reciprocal %101 {approx = true} : vector<8x1xf32> -> vector<8x1xf32>
    %103 = vector.broadcast %102 : vector<8x1xf32> to vector<8x8xf32>
    %104 = arith.mulf %99, %103 : vector<8x8xf32>
    %cst_45 = arith.constant dense<0.000000e+00> : vector<8x8xf32>
    %105 = tpu.matmul %104, %91, %cst_45 {dimension_numbers = #tpu.dot_dimension_numbers<[1], [0], [0], [1], [0, 0, 1, 1], [], []>} : vector<8x8xf32>, vector<8x8xf32>, vector<8x8xf32> -> vector<8x8xf32>
    %c0_46 = arith.constant 0 : index
    %c0_47 = arith.constant 0 : index
    %106 = vector.load %arg14[%c0_46, %c0_47] : memref<8x32xf32, #tpu.memory_space<vmem>>, vector<8x8xf32>
    tpu.vector_store %arg14[%c0_46, %c0_47], %105 {strides = array<i32>} : memref<8x32xf32, #tpu.memory_space<vmem>>, vector<8x8xf32>,
    %107 = vector.extract_strided_slice %86 {offsets = [0, 8], sizes = [8, 8], strides = [1, 1]} : vector<8x32xf32> to vector<8x8xf32>
    %108 = vector.extract_strided_slice %87 {offsets = [0, 8], sizes = [8, 8], strides = [1, 1]} : vector<8x32xf32> to vector<8x8xf32>
    %109 = vector.extract_strided_slice %88 {offsets = [0, 8], sizes = [8, 8], strides = [1, 1]} : vector<8x32xf32> to vector<8x8xf32>
    %cst_48 = arith.constant dense<0.000000e+00> : vector<8x8xf32>
    %110 = tpu.matmul %107, %108, %cst_48 {dimension_numbers = #tpu.dot_dimension_numbers<[1], [1], [0], [0], [0, 0, 1, 0], [], []>} : vector<8x8xf32>, vector<8x8xf32>, vector<8x8xf32> -> vector<8x8xf32>
    %cst_49 = arith.constant 0.353553385 : f32
    %111 = vector.broadcast %cst_49 : f32 to vector<8x8xf32>
    %112 = arith.mulf %110, %111 : vector<8x8xf32>
    %cst_50 = arith.constant dense<0xFF800000> : vector<8xf32>
    %113 = vector.multi_reduction <maximumf>, %112, %cst_50 [1] : vector<8x8xf32> to vector<8xf32>
    %114 = vector.shape_cast %113 : vector<8xf32> to vector<8x1xf32>
    %115 = vector.broadcast %114 : vector<8x1xf32> to vector<8x8xf32>
    %116 = arith.subf %112, %115 : vector<8x8xf32>
    %117 = math.exp %116 : vector<8x8xf32>
    %cst_51 = arith.constant dense<0.000000e+00> : vector<8xf32>
    %118 = vector.multi_reduction <add>, %117, %cst_51 [1] : vector<8x8xf32> to vector<8xf32>
    %119 = vector.shape_cast %118 : vector<8xf32> to vector<8x1xf32>
    %120 = tpu.reciprocal %119 {approx = true} : vector<8x1xf32> -> vector<8x1xf32>
    %121 = vector.broadcast %120 : vector<8x1xf32> to vector<8x8xf32>
    %122 = arith.mulf %117, %121 : vector<8x8xf32>
    %cst_52 = arith.constant dense<0.000000e+00> : vector<8x8xf32>
    %123 = tpu.matmul %122, %109, %cst_52 {dimension_numbers = #tpu.dot_dimension_numbers<[1], [0], [0], [1], [0, 0, 1, 1], [], []>} : vector<8x8xf32>, vector<8x8xf32>, vector<8x8xf32> -> vector<8x8xf32>
    %c0_53 = arith.constant 0 : index
    %c8_54 = arith.constant 8 : index
    %124 = vector.load %arg14[%c0_53, %c8_54] : memref<8x32xf32, #tpu.memory_space<vmem>>, vector<8x8xf32>
    tpu.vector_store %arg14[%c0_53, %c8_54], %123 {strides = array<i32>} : memref<8x32xf32, #tpu.memory_space<vmem>>, vector<8x8xf32>,
    %125 = vector.extract_strided_slice %86 {offsets = [0, 16], sizes = [8, 8], strides = [1, 1]} : vector<8x32xf32> to vector<8x8xf32>
    %126 = vector.extract_strided_slice %87 {offsets = [0, 16], sizes = [8, 8], strides = [1, 1]} : vector<8x32xf32> to vector<8x8xf32>
    %127 = vector.extract_strided_slice %88 {offsets = [0, 16], sizes = [8, 8], strides = [1, 1]} : vector<8x32xf32> to vector<8x8xf32>
    %cst_55 = arith.constant dense<0.000000e+00> : vector<8x8xf32>
    %128 = tpu.matmul %125, %126, %cst_55 {dimension_numbers = #tpu.dot_dimension_numbers<[1], [1], [0], [0], [0, 0, 1, 0], [], []>} : vector<8x8xf32>, vector<8x8xf32>, vector<8x8xf32> -> vector<8x8xf32>
    %cst_56 = arith.constant 0.353553385 : f32
    %129 = vector.broadcast %cst_56 : f32 to vector<8x8xf32>
    %130 = arith.mulf %128, %129 : vector<8x8xf32>
    %cst_57 = arith.constant dense<0xFF800000> : vector<8xf32>
    %131 = vector.multi_reduction <maximumf>, %130, %cst_57 [1] : vector<8x8xf32> to vector<8xf32>
    %132 = vector.shape_cast %131 : vector<8xf32> to vector<8x1xf32>
    %133 = vector.broadcast %132 : vector<8x1xf32> to vector<8x8xf32>
    %134 = arith.subf %130, %133 : vector<8x8xf32>
    %135 = math.exp %134 : vector<8x8xf32>
    %cst_58 = arith.constant dense<0.000000e+00> : vector<8xf32>
    %136 = vector.multi_reduction <add>, %135, %cst_58 [1] : vector<8x8xf32> to vector<8xf32>
    %137 = vector.shape_cast %136 : vector<8xf32> to vector<8x1xf32>
    %138 = tpu.reciprocal %137 {approx = true} : vector<8x1xf32> -> vector<8x1xf32>
    %139 = vector.broadcast %138 : vector<8x1xf32> to vector<8x8xf32>
    %140 = arith.mulf %135, %139 : vector<8x8xf32>
    %cst_59 = arith.constant dense<0.000000e+00> : vector<8x8xf32>
    %141 = tpu.matmul %140, %127, %cst_59 {dimension_numbers = #tpu.dot_dimension_numbers<[1], [0], [0], [1], [0, 0, 1, 1], [], []>} : vector<8x8xf32>, vector<8x8xf32>, vector<8x8xf32> -> vector<8x8xf32>
    %c0_60 = arith.constant 0 : index
    %c16_61 = arith.constant 16 : index
    %142 = vector.load %arg14[%c0_60, %c16_61] : memref<8x32xf32, #tpu.memory_space<vmem>>, vector<8x8xf32>
    tpu.vector_store %arg14[%c0_60, %c16_61], %141 {strides = array<i32>} : memref<8x32xf32, #tpu.memory_space<vmem>>, vector<8x8xf32>,
    %143 = vector.extract_strided_slice %86 {offsets = [0, 24], sizes = [8, 8], strides = [1, 1]} : vector<8x32xf32> to vector<8x8xf32>
    %144 = vector.extract_strided_slice %87 {offsets = [0, 24], sizes = [8, 8], strides = [1, 1]} : vector<8x32xf32> to vector<8x8xf32>
    %145 = vector.extract_strided_slice %88 {offsets = [0, 24], sizes = [8, 8], strides = [1, 1]} : vector<8x32xf32> to vector<8x8xf32>
    %cst_62 = arith.constant dense<0.000000e+00> : vector<8x8xf32>
    %146 = tpu.matmul %143, %144, %cst_62 {dimension_numbers = #tpu.dot_dimension_numbers<[1], [1], [0], [0], [0, 0, 1, 0], [], []>} : vector<8x8xf32>, vector<8x8xf32>, vector<8x8xf32> -> vector<8x8xf32>
    %cst_63 = arith.constant 0.353553385 : f32
    %147 = vector.broadcast %cst_63 : f32 to vector<8x8xf32>
    %148 = arith.mulf %146, %147 : vector<8x8xf32>
    %cst_64 = arith.constant dense<0xFF800000> : vector<8xf32>
    %149 = vector.multi_reduction <maximumf>, %148, %cst_64 [1] : vector<8x8xf32> to vector<8xf32>
    %150 = vector.shape_cast %149 : vector<8xf32> to vector<8x1xf32>
    %151 = vector.broadcast %150 : vector<8x1xf32> to vector<8x8xf32>
    %152 = arith.subf %148, %151 : vector<8x8xf32>
    %153 = math.exp %152 : vector<8x8xf32>
    %cst_65 = arith.constant dense<0.000000e+00> : vector<8xf32>
    %154 = vector.multi_reduction <add>, %153, %cst_65 [1] : vector<8x8xf32> to vector<8xf32>
    %155 = vector.shape_cast %154 : vector<8xf32> to vector<8x1xf32>
    %156 = tpu.reciprocal %155 {approx = true} : vector<8x1xf32> -> vector<8x1xf32>
    %157 = vector.broadcast %156 : vector<8x1xf32> to vector<8x8xf32>
    %158 = arith.mulf %153, %157 : vector<8x8xf32>
    %cst_66 = arith.constant dense<0.000000e+00> : vector<8x8xf32>
    %159 = tpu.matmul %158, %145, %cst_66 {dimension_numbers = #tpu.dot_dimension_numbers<[1], [0], [0], [1], [0, 0, 1, 1], [], []>} : vector<8x8xf32>, vector<8x8xf32>, vector<8x8xf32> -> vector<8x8xf32>
    %c0_67 = arith.constant 0 : index
    %c24_68 = arith.constant 24 : index
    %160 = vector.load %arg14[%c0_67, %c24_68] : memref<8x32xf32, #tpu.memory_space<vmem>>, vector<8x8xf32>
    tpu.vector_store %arg14[%c0_67, %c24_68], %159 {strides = array<i32>} : memref<8x32xf32, #tpu.memory_space<vmem>>, vector<8x8xf32>,
    %c0_69 = arith.constant 0 : index
    %c0_70 = arith.constant 0 : index
    %161 = vector.load %arg14[%c0_69, %c0_70] : memref<8x32xf32, #tpu.memory_space<vmem>>, vector<8x32xf32>
    %cst_71 = arith.constant dense<0.000000e+00> : vector<8x32xf32>
    %162 = tpu.matmul %161, %4, %cst_71 {dimension_numbers = #tpu.dot_dimension_numbers<[1], [0], [0], [1], [0, 0, 1, 1], [], []>} : vector<8x32xf32>, vector<32x32xf32>, vector<8x32xf32> -> vector<8x32xf32>
    %c8_72 = arith.constant 8 : index
    %c0_73 = arith.constant 0 : index
    %163 = vector.load %arg15[%c8_72, %c0_73] : memref<16x32xf32, #tpu.memory_space<vmem>>, vector<8x32xf32>
    tpu.vector_store %arg15[%c8_72, %c0_73], %162 {strides = array<i32>} : memref<16x32xf32, #tpu.memory_space<vmem>>, vector<8x32xf32>,
    %c0_74 = arith.constant 0 : index
    %c0_75 = arith.constant 0 : index
    %164 = vector.load %arg15[%c0_74, %c0_75] : memref<16x32xf32, #tpu.memory_space<vmem>>, vector<16x32xf32>
    %c0_76 = arith.constant 0 : index
    %c0_77 = arith.constant 0 : index
    %165 = vector.load %arg5[%c0_76, %c0_77] : memref<1x32xf32, #tpu.memory_space<vmem>>, vector<1x32xf32>
    %c0_78 = arith.constant 0 : index
    %c0_79 = arith.constant 0 : index
    %166 = vector.load %arg6[%c0_78, %c0_79] : memref<1x32xf32, #tpu.memory_space<vmem>>, vector<1x32xf32>
    %167 = arith.addf %0, %164 : vector<16x32xf32>
    %cst_80 = arith.constant dense<0.000000e+00> : vector<16xf32>
    %168 = vector.multi_reduction <add>, %167, %cst_80 [1] : vector<16x32xf32> to vector<16xf32>
    %169 = vector.shape_cast %168 : vector<16xf32> to vector<16x1xf32>
    %cst_81 = arith.constant 3.200000e+01 : f32
    %170 = vector.broadcast %cst_81 : f32 to vector<16x1xf32>
    %171 = arith.divf %169, %170 : vector<16x1xf32>
    %172 = vector.broadcast %171 : vector<16x1xf32> to vector<16x32xf32>
    %173 = arith.subf %167, %172 : vector<16x32xf32>
    %174 = arith.mulf %173, %173 : vector<16x32xf32>
    %cst_82 = arith.constant dense<0.000000e+00> : vector<16xf32>
    %175 = vector.multi_reduction <add>, %174, %cst_82 [1] : vector<16x32xf32> to vector<16xf32>
    %176 = vector.shape_cast %175 : vector<16xf32> to vector<16x1xf32>
    %cst_83 = arith.constant 3.200000e+01 : f32
    %177 = vector.broadcast %cst_83 : f32 to vector<16x1xf32>
    %178 = arith.divf %176, %177 : vector<16x1xf32>
    %179 = vector.broadcast %171 : vector<16x1xf32> to vector<16x32xf32>
    %180 = arith.subf %167, %179 : vector<16x32xf32>
    %cst_84 = arith.constant 9.99999974E-6 : f32
    %181 = vector.broadcast %cst_84 : f32 to vector<16x1xf32>
    %182 = arith.addf %178, %181 : vector<16x1xf32>
    %183 = math.rsqrt %182 : vector<16x1xf32>
    %184 = vector.broadcast %183 : vector<16x1xf32> to vector<16x32xf32>
    %185 = arith.mulf %180, %184 : vector<16x32xf32>
    %186 = vector.broadcast %165 : vector<1x32xf32> to vector<16x32xf32>
    %187 = arith.mulf %185, %186 : vector<16x32xf32>
    %188 = vector.broadcast %166 : vector<1x32xf32> to vector<16x32xf32>
    %189 = arith.addf %187, %188 : vector<16x32xf32>
    %c0_85 = arith.constant 0 : index
    %c0_86 = arith.constant 0 : index
    %190 = vector.load %arg7[%c0_85, %c0_86] : memref<32x64xf32, #tpu.memory_space<vmem>>, vector<32x64xf32>
    %c0_87 = arith.constant 0 : index
    %c0_88 = arith.constant 0 : index
    %191 = vector.load %arg8[%c0_87, %c0_88] : memref<1x64xf32, #tpu.memory_space<vmem>>, vector<1x64xf32>
    %c0_89 = arith.constant 0 : index
    %c0_90 = arith.constant 0 : index
    %192 = vector.load %arg9[%c0_89, %c0_90] : memref<64x32xf32, #tpu.memory_space<vmem>>, vector<64x32xf32>
    %c0_91 = arith.constant 0 : index
    %c0_92 = arith.constant 0 : index
    %193 = vector.load %arg10[%c0_91, %c0_92] : memref<1x32xf32, #tpu.memory_space<vmem>>, vector<1x32xf32>
    %cst_93 = arith.constant dense<0.000000e+00> : vector<16x64xf32>
    %194 = tpu.matmul %189, %190, %cst_93 {dimension_numbers = #tpu.dot_dimension_numbers<[1], [0], [0], [1], [0, 0, 1, 1], [], []>} : vector<16x32xf32>, vector<32x64xf32>, vector<16x64xf32> -> vector<16x64xf32>
    %195 = vector.broadcast %191 : vector<1x64xf32> to vector<16x64xf32>
    %196 = arith.addf %194, %195 : vector<16x64xf32>
    %cst_94 = arith.constant 0.000000e+00 : f32
    %197 = vector.broadcast %cst_94 : f32 to vector<16x64xf32>
    %198 = arith.maximumf %196, %197 : vector<16x64xf32>
    %cst_95 = arith.constant dense<0.000000e+00> : vector<16x32xf32>
    %199 = tpu.matmul %198, %192, %cst_95 {dimension_numbers = #tpu.dot_dimension_numbers<[1], [0], [0], [1], [0, 0, 1, 1], [], []>} : vector<16x64xf32>, vector<64x32xf32>, vector<16x32xf32> -> vector<16x32xf32>
    %200 = vector.broadcast %193 : vector<1x32xf32> to vector<16x32xf32>
    %201 = arith.addf %199, %200 : vector<16x32xf32>
    %c0_96 = arith.constant 0 : index
    %c0_97 = arith.constant 0 : index
    %202 = vector.load %arg11[%c0_96, %c0_97] : memref<1x32xf32, #tpu.memory_space<vmem>>, vector<1x32xf32>
    %c0_98 = arith.constant 0 : index
    %c0_99 = arith.constant 0 : index
    %203 = vector.load %arg12[%c0_98, %c0_99] : memref<1x32xf32, #tpu.memory_space<vmem>>, vector<1x32xf32>
    %204 = arith.addf %189, %201 : vector<16x32xf32>
    %cst_100 = arith.constant dense<0.000000e+00> : vector<16xf32>
    %205 = vector.multi_reduction <add>, %204, %cst_100 [1] : vector<16x32xf32> to vector<16xf32>
    %206 = vector.shape_cast %205 : vector<16xf32> to vector<16x1xf32>
    %cst_101 = arith.constant 3.200000e+01 : f32
    %207 = vector.broadcast %cst_101 : f32 to vector<16x1xf32>
    %208 = arith.divf %206, %207 : vector<16x1xf32>
    %209 = vector.broadcast %208 : vector<16x1xf32> to vector<16x32xf32>
    %210 = arith.subf %204, %209 : vector<16x32xf32>
    %211 = arith.mulf %210, %210 : vector<16x32xf32>
    %cst_102 = arith.constant dense<0.000000e+00> : vector<16xf32>
    %212 = vector.multi_reduction <add>, %211, %cst_102 [1] : vector<16x32xf32> to vector<16xf32>
    %213 = vector.shape_cast %212 : vector<16xf32> to vector<16x1xf32>
    %cst_103 = arith.constant 3.200000e+01 : f32
    %214 = vector.broadcast %cst_103 : f32 to vector<16x1xf32>
    %215 = arith.divf %213, %214 : vector<16x1xf32>
    %216 = vector.broadcast %208 : vector<16x1xf32> to vector<16x32xf32>
    %217 = arith.subf %204, %216 : vector<16x32xf32>
    %cst_104 = arith.constant 9.99999974E-6 : f32
    %218 = vector.broadcast %cst_104 : f32 to vector<16x1xf32>
    %219 = arith.addf %215, %218 : vector<16x1xf32>
    %220 = math.rsqrt %219 : vector<16x1xf32>
    %221 = vector.broadcast %220 : vector<16x1xf32> to vector<16x32xf32>
    %222 = arith.mulf %217, %221 : vector<16x32xf32>
    %223 = vector.broadcast %202 : vector<1x32xf32> to vector<16x32xf32>
    %224 = arith.mulf %222, %223 : vector<16x32xf32>
    %225 = vector.broadcast %203 : vector<1x32xf32> to vector<16x32xf32>
    %226 = arith.addf %224, %225 : vector<16x32xf32>
    %c0_105 = arith.constant 0 : index
    %c0_106 = arith.constant 0 : index
    %227 = vector.load %arg13[%c0_105, %c0_106] : memref<16x32xf32, #tpu.memory_space<vmem>>, vector<16x32xf32>
    tpu.vector_store %arg13[%c0_105, %c0_106], %226 {strides = array<i32>} : memref<16x32xf32, #tpu.memory_space<vmem>>, vector<16x32xf32>,
    return
  }
}

module attributes {stable_mosaic.version = 11 : i64} {
  func.func @_decoder_layer_kernel(%arg0: memref<16x32xf32, #tpu.memory_space<vmem>>, %arg1: memref<16x32xf32, #tpu.memory_space<vmem>>, %arg2: memref<32x32xf32, #tpu.memory_space<vmem>>, %arg3: memref<32x32xf32, #tpu.memory_space<vmem>>, %arg4: memref<32x32xf32, #tpu.memory_space<vmem>>, %arg5: memref<32x32xf32, #tpu.memory_space<vmem>>, %arg6: memref<1x32xf32, #tpu.memory_space<vmem>>, %arg7: memref<1x32xf32, #tpu.memory_space<vmem>>, %arg8: memref<32x32xf32, #tpu.memory_space<vmem>>, %arg9: memref<32x32xf32, #tpu.memory_space<vmem>>, %arg10: memref<32x32xf32, #tpu.memory_space<vmem>>, %arg11: memref<32x32xf32, #tpu.memory_space<vmem>>, %arg12: memref<1x32xf32, #tpu.memory_space<vmem>>, %arg13: memref<1x32xf32, #tpu.memory_space<vmem>>, %arg14: memref<32x64xf32, #tpu.memory_space<vmem>>, %arg15: memref<1x64xf32, #tpu.memory_space<vmem>>, %arg16: memref<64x32xf32, #tpu.memory_space<vmem>>, %arg17: memref<1x32xf32, #tpu.memory_space<vmem>>, %arg18: memref<1x32xf32, #tpu.memory_space<vmem>>, %arg19: memref<1x32xf32, #tpu.memory_space<vmem>>, %arg20: memref<16x32xf32, #tpu.memory_space<vmem>>, %arg21: memref<8x32xf32, #tpu.memory_space<vmem>>, %arg22: memref<16x32xf32, #tpu.memory_space<vmem>>) attributes {dimension_semantics = [], scalar_prefetch = 0 : i64, scratch_operands = 2 : i64, tpu.core_type = #tpu.core_type<tc>} {
    %c0 = arith.constant 0 : index
    %c0_0 = arith.constant 0 : index
    %0 = vector.load %arg0[%c0, %c0_0] : memref<16x32xf32, #tpu.memory_space<vmem>>, vector<16x32xf32>
    %c0_1 = arith.constant 0 : index
    %c0_2 = arith.constant 0 : index
    %1 = vector.load %arg1[%c0_1, %c0_2] : memref<16x32xf32, #tpu.memory_space<vmem>>, vector<16x32xf32>
    %c0_3 = arith.constant 0 : index
    %c0_4 = arith.constant 0 : index
    %2 = vector.load %arg2[%c0_3, %c0_4] : memref<32x32xf32, #tpu.memory_space<vmem>>, vector<32x32xf32>
    %c0_5 = arith.constant 0 : index
    %c0_6 = arith.constant 0 : index
    %3 = vector.load %arg3[%c0_5, %c0_6] : memref<32x32xf32, #tpu.memory_space<vmem>>, vector<32x32xf32>
    %c0_7 = arith.constant 0 : index
    %c0_8 = arith.constant 0 : index
    %4 = vector.load %arg4[%c0_7, %c0_8] : memref<32x32xf32, #tpu.memory_space<vmem>>, vector<32x32xf32>
    %c0_9 = arith.constant 0 : index
    %c0_10 = arith.constant 0 : index
    %5 = vector.load %arg5[%c0_9, %c0_10] : memref<32x32xf32, #tpu.memory_space<vmem>>, vector<32x32xf32>
    %cst = arith.constant dense<0.000000e+00> : vector<16x32xf32>
    %6 = tpu.matmul %0, %2, %cst {dimension_numbers = #tpu.dot_dimension_numbers<[1], [0], [0], [1], [0, 0, 1, 1], [], []>} : vector<16x32xf32>, vector<32x32xf32>, vector<16x32xf32> -> vector<16x32xf32>
    %cst_11 = arith.constant dense<0.000000e+00> : vector<16x32xf32>
    %7 = tpu.matmul %0, %3, %cst_11 {dimension_numbers = #tpu.dot_dimension_numbers<[1], [0], [0], [1], [0, 0, 1, 1], [], []>} : vector<16x32xf32>, vector<32x32xf32>, vector<16x32xf32> -> vector<16x32xf32>
    %cst_12 = arith.constant dense<0.000000e+00> : vector<16x32xf32>
    %8 = tpu.matmul %0, %4, %cst_12 {dimension_numbers = #tpu.dot_dimension_numbers<[1], [0], [0], [1], [0, 0, 1, 1], [], []>} : vector<16x32xf32>, vector<32x32xf32>, vector<16x32xf32> -> vector<16x32xf32>
    %9 = vector.extract_strided_slice %6 {offsets = [0, 0], sizes = [8, 32], strides = [1, 1]} : vector<16x32xf32> to vector<8x32xf32>
    %10 = vector.extract_strided_slice %7 {offsets = [0, 0], sizes = [8, 32], strides = [1, 1]} : vector<16x32xf32> to vector<8x32xf32>
    %11 = vector.extract_strided_slice %8 {offsets = [0, 0], sizes = [8, 32], strides = [1, 1]} : vector<16x32xf32> to vector<8x32xf32>
    %12 = vector.extract_strided_slice %9 {offsets = [0, 0], sizes = [8, 8], strides = [1, 1]} : vector<8x32xf32> to vector<8x8xf32>
    %13 = vector.extract_strided_slice %10 {offsets = [0, 0], sizes = [8, 8], strides = [1, 1]} : vector<8x32xf32> to vector<8x8xf32>
    %14 = vector.extract_strided_slice %11 {offsets = [0, 0], sizes = [8, 8], strides = [1, 1]} : vector<8x32xf32> to vector<8x8xf32>
    %cst_13 = arith.constant dense<0.000000e+00> : vector<8x8xf32>
    %15 = tpu.matmul %12, %13, %cst_13 {dimension_numbers = #tpu.dot_dimension_numbers<[1], [1], [0], [0], [0, 0, 1, 0], [], []>} : vector<8x8xf32>, vector<8x8xf32>, vector<8x8xf32> -> vector<8x8xf32>
    %cst_14 = arith.constant 0.353553385 : f32
    %16 = vector.broadcast %cst_14 : f32 to vector<8x8xf32>
    %17 = arith.mulf %15, %16 : vector<8x8xf32>
    %cst_15 = arith.constant dense<0xFF800000> : vector<8xf32>
    %18 = vector.multi_reduction <maximumf>, %17, %cst_15 [1] : vector<8x8xf32> to vector<8xf32>
    %19 = vector.shape_cast %18 : vector<8xf32> to vector<8x1xf32>
    %20 = vector.broadcast %19 : vector<8x1xf32> to vector<8x8xf32>
    %21 = arith.subf %17, %20 : vector<8x8xf32>
    %22 = math.exp %21 : vector<8x8xf32>
    %cst_16 = arith.constant dense<0.000000e+00> : vector<8xf32>
    %23 = vector.multi_reduction <add>, %22, %cst_16 [1] : vector<8x8xf32> to vector<8xf32>
    %24 = vector.shape_cast %23 : vector<8xf32> to vector<8x1xf32>
    %25 = tpu.reciprocal %24 {approx = true} : vector<8x1xf32> -> vector<8x1xf32>
    %26 = vector.broadcast %25 : vector<8x1xf32> to vector<8x8xf32>
    %27 = arith.mulf %22, %26 : vector<8x8xf32>
    %cst_17 = arith.constant dense<0.000000e+00> : vector<8x8xf32>
    %28 = tpu.matmul %27, %14, %cst_17 {dimension_numbers = #tpu.dot_dimension_numbers<[1], [0], [0], [1], [0, 0, 1, 1], [], []>} : vector<8x8xf32>, vector<8x8xf32>, vector<8x8xf32> -> vector<8x8xf32>
    %c0_18 = arith.constant 0 : index
    %c0_19 = arith.constant 0 : index
    %29 = vector.load %arg21[%c0_18, %c0_19] : memref<8x32xf32, #tpu.memory_space<vmem>>, vector<8x8xf32>
    tpu.vector_store %arg21[%c0_18, %c0_19], %28 {strides = array<i32>} : memref<8x32xf32, #tpu.memory_space<vmem>>, vector<8x8xf32>,
    %30 = vector.extract_strided_slice %9 {offsets = [0, 8], sizes = [8, 8], strides = [1, 1]} : vector<8x32xf32> to vector<8x8xf32>
    %31 = vector.extract_strided_slice %10 {offsets = [0, 8], sizes = [8, 8], strides = [1, 1]} : vector<8x32xf32> to vector<8x8xf32>
    %32 = vector.extract_strided_slice %11 {offsets = [0, 8], sizes = [8, 8], strides = [1, 1]} : vector<8x32xf32> to vector<8x8xf32>
    %cst_20 = arith.constant dense<0.000000e+00> : vector<8x8xf32>
    %33 = tpu.matmul %30, %31, %cst_20 {dimension_numbers = #tpu.dot_dimension_numbers<[1], [1], [0], [0], [0, 0, 1, 0], [], []>} : vector<8x8xf32>, vector<8x8xf32>, vector<8x8xf32> -> vector<8x8xf32>
    %cst_21 = arith.constant 0.353553385 : f32
    %34 = vector.broadcast %cst_21 : f32 to vector<8x8xf32>
    %35 = arith.mulf %33, %34 : vector<8x8xf32>
    %cst_22 = arith.constant dense<0xFF800000> : vector<8xf32>
    %36 = vector.multi_reduction <maximumf>, %35, %cst_22 [1] : vector<8x8xf32> to vector<8xf32>
    %37 = vector.shape_cast %36 : vector<8xf32> to vector<8x1xf32>
    %38 = vector.broadcast %37 : vector<8x1xf32> to vector<8x8xf32>
    %39 = arith.subf %35, %38 : vector<8x8xf32>
    %40 = math.exp %39 : vector<8x8xf32>
    %cst_23 = arith.constant dense<0.000000e+00> : vector<8xf32>
    %41 = vector.multi_reduction <add>, %40, %cst_23 [1] : vector<8x8xf32> to vector<8xf32>
    %42 = vector.shape_cast %41 : vector<8xf32> to vector<8x1xf32>
    %43 = tpu.reciprocal %42 {approx = true} : vector<8x1xf32> -> vector<8x1xf32>
    %44 = vector.broadcast %43 : vector<8x1xf32> to vector<8x8xf32>
    %45 = arith.mulf %40, %44 : vector<8x8xf32>
    %cst_24 = arith.constant dense<0.000000e+00> : vector<8x8xf32>
    %46 = tpu.matmul %45, %32, %cst_24 {dimension_numbers = #tpu.dot_dimension_numbers<[1], [0], [0], [1], [0, 0, 1, 1], [], []>} : vector<8x8xf32>, vector<8x8xf32>, vector<8x8xf32> -> vector<8x8xf32>
    %c0_25 = arith.constant 0 : index
    %c8 = arith.constant 8 : index
    %47 = vector.load %arg21[%c0_25, %c8] : memref<8x32xf32, #tpu.memory_space<vmem>>, vector<8x8xf32>
    tpu.vector_store %arg21[%c0_25, %c8], %46 {strides = array<i32>} : memref<8x32xf32, #tpu.memory_space<vmem>>, vector<8x8xf32>,
    %48 = vector.extract_strided_slice %9 {offsets = [0, 16], sizes = [8, 8], strides = [1, 1]} : vector<8x32xf32> to vector<8x8xf32>
    %49 = vector.extract_strided_slice %10 {offsets = [0, 16], sizes = [8, 8], strides = [1, 1]} : vector<8x32xf32> to vector<8x8xf32>
    %50 = vector.extract_strided_slice %11 {offsets = [0, 16], sizes = [8, 8], strides = [1, 1]} : vector<8x32xf32> to vector<8x8xf32>
    %cst_26 = arith.constant dense<0.000000e+00> : vector<8x8xf32>
    %51 = tpu.matmul %48, %49, %cst_26 {dimension_numbers = #tpu.dot_dimension_numbers<[1], [1], [0], [0], [0, 0, 1, 0], [], []>} : vector<8x8xf32>, vector<8x8xf32>, vector<8x8xf32> -> vector<8x8xf32>
    %cst_27 = arith.constant 0.353553385 : f32
    %52 = vector.broadcast %cst_27 : f32 to vector<8x8xf32>
    %53 = arith.mulf %51, %52 : vector<8x8xf32>
    %cst_28 = arith.constant dense<0xFF800000> : vector<8xf32>
    %54 = vector.multi_reduction <maximumf>, %53, %cst_28 [1] : vector<8x8xf32> to vector<8xf32>
    %55 = vector.shape_cast %54 : vector<8xf32> to vector<8x1xf32>
    %56 = vector.broadcast %55 : vector<8x1xf32> to vector<8x8xf32>
    %57 = arith.subf %53, %56 : vector<8x8xf32>
    %58 = math.exp %57 : vector<8x8xf32>
    %cst_29 = arith.constant dense<0.000000e+00> : vector<8xf32>
    %59 = vector.multi_reduction <add>, %58, %cst_29 [1] : vector<8x8xf32> to vector<8xf32>
    %60 = vector.shape_cast %59 : vector<8xf32> to vector<8x1xf32>
    %61 = tpu.reciprocal %60 {approx = true} : vector<8x1xf32> -> vector<8x1xf32>
    %62 = vector.broadcast %61 : vector<8x1xf32> to vector<8x8xf32>
    %63 = arith.mulf %58, %62 : vector<8x8xf32>
    %cst_30 = arith.constant dense<0.000000e+00> : vector<8x8xf32>
    %64 = tpu.matmul %63, %50, %cst_30 {dimension_numbers = #tpu.dot_dimension_numbers<[1], [0], [0], [1], [0, 0, 1, 1], [], []>} : vector<8x8xf32>, vector<8x8xf32>, vector<8x8xf32> -> vector<8x8xf32>
    %c0_31 = arith.constant 0 : index
    %c16 = arith.constant 16 : index
    %65 = vector.load %arg21[%c0_31, %c16] : memref<8x32xf32, #tpu.memory_space<vmem>>, vector<8x8xf32>
    tpu.vector_store %arg21[%c0_31, %c16], %64 {strides = array<i32>} : memref<8x32xf32, #tpu.memory_space<vmem>>, vector<8x8xf32>,
    %66 = vector.extract_strided_slice %9 {offsets = [0, 24], sizes = [8, 8], strides = [1, 1]} : vector<8x32xf32> to vector<8x8xf32>
    %67 = vector.extract_strided_slice %10 {offsets = [0, 24], sizes = [8, 8], strides = [1, 1]} : vector<8x32xf32> to vector<8x8xf32>
    %68 = vector.extract_strided_slice %11 {offsets = [0, 24], sizes = [8, 8], strides = [1, 1]} : vector<8x32xf32> to vector<8x8xf32>
    %cst_32 = arith.constant dense<0.000000e+00> : vector<8x8xf32>
    %69 = tpu.matmul %66, %67, %cst_32 {dimension_numbers = #tpu.dot_dimension_numbers<[1], [1], [0], [0], [0, 0, 1, 0], [], []>} : vector<8x8xf32>, vector<8x8xf32>, vector<8x8xf32> -> vector<8x8xf32>
    %cst_33 = arith.constant 0.353553385 : f32
    %70 = vector.broadcast %cst_33 : f32 to vector<8x8xf32>
    %71 = arith.mulf %69, %70 : vector<8x8xf32>
    %cst_34 = arith.constant dense<0xFF800000> : vector<8xf32>
    %72 = vector.multi_reduction <maximumf>, %71, %cst_34 [1] : vector<8x8xf32> to vector<8xf32>
    %73 = vector.shape_cast %72 : vector<8xf32> to vector<8x1xf32>
    %74 = vector.broadcast %73 : vector<8x1xf32> to vector<8x8xf32>
    %75 = arith.subf %71, %74 : vector<8x8xf32>
    %76 = math.exp %75 : vector<8x8xf32>
    %cst_35 = arith.constant dense<0.000000e+00> : vector<8xf32>
    %77 = vector.multi_reduction <add>, %76, %cst_35 [1] : vector<8x8xf32> to vector<8xf32>
    %78 = vector.shape_cast %77 : vector<8xf32> to vector<8x1xf32>
    %79 = tpu.reciprocal %78 {approx = true} : vector<8x1xf32> -> vector<8x1xf32>
    %80 = vector.broadcast %79 : vector<8x1xf32> to vector<8x8xf32>
    %81 = arith.mulf %76, %80 : vector<8x8xf32>
    %cst_36 = arith.constant dense<0.000000e+00> : vector<8x8xf32>
    %82 = tpu.matmul %81, %68, %cst_36 {dimension_numbers = #tpu.dot_dimension_numbers<[1], [0], [0], [1], [0, 0, 1, 1], [], []>} : vector<8x8xf32>, vector<8x8xf32>, vector<8x8xf32> -> vector<8x8xf32>
    %c0_37 = arith.constant 0 : index
    %c24 = arith.constant 24 : index
    %83 = vector.load %arg21[%c0_37, %c24] : memref<8x32xf32, #tpu.memory_space<vmem>>, vector<8x8xf32>
    tpu.vector_store %arg21[%c0_37, %c24], %82 {strides = array<i32>} : memref<8x32xf32, #tpu.memory_space<vmem>>, vector<8x8xf32>,
    %c0_38 = arith.constant 0 : index
    %c0_39 = arith.constant 0 : index
    %84 = vector.load %arg21[%c0_38, %c0_39] : memref<8x32xf32, #tpu.memory_space<vmem>>, vector<8x32xf32>
    %cst_40 = arith.constant dense<0.000000e+00> : vector<8x32xf32>
    %85 = tpu.matmul %84, %5, %cst_40 {dimension_numbers = #tpu.dot_dimension_numbers<[1], [0], [0], [1], [0, 0, 1, 1], [], []>} : vector<8x32xf32>, vector<32x32xf32>, vector<8x32xf32> -> vector<8x32xf32>
    %c0_41 = arith.constant 0 : index
    %c0_42 = arith.constant 0 : index
    %86 = vector.load %arg22[%c0_41, %c0_42] : memref<16x32xf32, #tpu.memory_space<vmem>>, vector<8x32xf32>
    tpu.vector_store %arg22[%c0_41, %c0_42], %85 {strides = array<i32>} : memref<16x32xf32, #tpu.memory_space<vmem>>, vector<8x32xf32>,
    %87 = vector.extract_strided_slice %6 {offsets = [8, 0], sizes = [8, 32], strides = [1, 1]} : vector<16x32xf32> to vector<8x32xf32>
    %88 = vector.extract_strided_slice %7 {offsets = [8, 0], sizes = [8, 32], strides = [1, 1]} : vector<16x32xf32> to vector<8x32xf32>
    %89 = vector.extract_strided_slice %8 {offsets = [8, 0], sizes = [8, 32], strides = [1, 1]} : vector<16x32xf32> to vector<8x32xf32>
    %90 = vector.extract_strided_slice %87 {offsets = [0, 0], sizes = [8, 8], strides = [1, 1]} : vector<8x32xf32> to vector<8x8xf32>
    %91 = vector.extract_strided_slice %88 {offsets = [0, 0], sizes = [8, 8], strides = [1, 1]} : vector<8x32xf32> to vector<8x8xf32>
    %92 = vector.extract_strided_slice %89 {offsets = [0, 0], sizes = [8, 8], strides = [1, 1]} : vector<8x32xf32> to vector<8x8xf32>
    %cst_43 = arith.constant dense<0.000000e+00> : vector<8x8xf32>
    %93 = tpu.matmul %90, %91, %cst_43 {dimension_numbers = #tpu.dot_dimension_numbers<[1], [1], [0], [0], [0, 0, 1, 0], [], []>} : vector<8x8xf32>, vector<8x8xf32>, vector<8x8xf32> -> vector<8x8xf32>
    %cst_44 = arith.constant 0.353553385 : f32
    %94 = vector.broadcast %cst_44 : f32 to vector<8x8xf32>
    %95 = arith.mulf %93, %94 : vector<8x8xf32>
    %cst_45 = arith.constant dense<0xFF800000> : vector<8xf32>
    %96 = vector.multi_reduction <maximumf>, %95, %cst_45 [1] : vector<8x8xf32> to vector<8xf32>
    %97 = vector.shape_cast %96 : vector<8xf32> to vector<8x1xf32>
    %98 = vector.broadcast %97 : vector<8x1xf32> to vector<8x8xf32>
    %99 = arith.subf %95, %98 : vector<8x8xf32>
    %100 = math.exp %99 : vector<8x8xf32>
    %cst_46 = arith.constant dense<0.000000e+00> : vector<8xf32>
    %101 = vector.multi_reduction <add>, %100, %cst_46 [1] : vector<8x8xf32> to vector<8xf32>
    %102 = vector.shape_cast %101 : vector<8xf32> to vector<8x1xf32>
    %103 = tpu.reciprocal %102 {approx = true} : vector<8x1xf32> -> vector<8x1xf32>
    %104 = vector.broadcast %103 : vector<8x1xf32> to vector<8x8xf32>
    %105 = arith.mulf %100, %104 : vector<8x8xf32>
    %cst_47 = arith.constant dense<0.000000e+00> : vector<8x8xf32>
    %106 = tpu.matmul %105, %92, %cst_47 {dimension_numbers = #tpu.dot_dimension_numbers<[1], [0], [0], [1], [0, 0, 1, 1], [], []>} : vector<8x8xf32>, vector<8x8xf32>, vector<8x8xf32> -> vector<8x8xf32>
    %c0_48 = arith.constant 0 : index
    %c0_49 = arith.constant 0 : index
    %107 = vector.load %arg21[%c0_48, %c0_49] : memref<8x32xf32, #tpu.memory_space<vmem>>, vector<8x8xf32>
    tpu.vector_store %arg21[%c0_48, %c0_49], %106 {strides = array<i32>} : memref<8x32xf32, #tpu.memory_space<vmem>>, vector<8x8xf32>,
    %108 = vector.extract_strided_slice %87 {offsets = [0, 8], sizes = [8, 8], strides = [1, 1]} : vector<8x32xf32> to vector<8x8xf32>
    %109 = vector.extract_strided_slice %88 {offsets = [0, 8], sizes = [8, 8], strides = [1, 1]} : vector<8x32xf32> to vector<8x8xf32>
    %110 = vector.extract_strided_slice %89 {offsets = [0, 8], sizes = [8, 8], strides = [1, 1]} : vector<8x32xf32> to vector<8x8xf32>
    %cst_50 = arith.constant dense<0.000000e+00> : vector<8x8xf32>
    %111 = tpu.matmul %108, %109, %cst_50 {dimension_numbers = #tpu.dot_dimension_numbers<[1], [1], [0], [0], [0, 0, 1, 0], [], []>} : vector<8x8xf32>, vector<8x8xf32>, vector<8x8xf32> -> vector<8x8xf32>
    %cst_51 = arith.constant 0.353553385 : f32
    %112 = vector.broadcast %cst_51 : f32 to vector<8x8xf32>
    %113 = arith.mulf %111, %112 : vector<8x8xf32>
    %cst_52 = arith.constant dense<0xFF800000> : vector<8xf32>
    %114 = vector.multi_reduction <maximumf>, %113, %cst_52 [1] : vector<8x8xf32> to vector<8xf32>
    %115 = vector.shape_cast %114 : vector<8xf32> to vector<8x1xf32>
    %116 = vector.broadcast %115 : vector<8x1xf32> to vector<8x8xf32>
    %117 = arith.subf %113, %116 : vector<8x8xf32>
    %118 = math.exp %117 : vector<8x8xf32>
    %cst_53 = arith.constant dense<0.000000e+00> : vector<8xf32>
    %119 = vector.multi_reduction <add>, %118, %cst_53 [1] : vector<8x8xf32> to vector<8xf32>
    %120 = vector.shape_cast %119 : vector<8xf32> to vector<8x1xf32>
    %121 = tpu.reciprocal %120 {approx = true} : vector<8x1xf32> -> vector<8x1xf32>
    %122 = vector.broadcast %121 : vector<8x1xf32> to vector<8x8xf32>
    %123 = arith.mulf %118, %122 : vector<8x8xf32>
    %cst_54 = arith.constant dense<0.000000e+00> : vector<8x8xf32>
    %124 = tpu.matmul %123, %110, %cst_54 {dimension_numbers = #tpu.dot_dimension_numbers<[1], [0], [0], [1], [0, 0, 1, 1], [], []>} : vector<8x8xf32>, vector<8x8xf32>, vector<8x8xf32> -> vector<8x8xf32>
    %c0_55 = arith.constant 0 : index
    %c8_56 = arith.constant 8 : index
    %125 = vector.load %arg21[%c0_55, %c8_56] : memref<8x32xf32, #tpu.memory_space<vmem>>, vector<8x8xf32>
    tpu.vector_store %arg21[%c0_55, %c8_56], %124 {strides = array<i32>} : memref<8x32xf32, #tpu.memory_space<vmem>>, vector<8x8xf32>,
    %126 = vector.extract_strided_slice %87 {offsets = [0, 16], sizes = [8, 8], strides = [1, 1]} : vector<8x32xf32> to vector<8x8xf32>
    %127 = vector.extract_strided_slice %88 {offsets = [0, 16], sizes = [8, 8], strides = [1, 1]} : vector<8x32xf32> to vector<8x8xf32>
    %128 = vector.extract_strided_slice %89 {offsets = [0, 16], sizes = [8, 8], strides = [1, 1]} : vector<8x32xf32> to vector<8x8xf32>
    %cst_57 = arith.constant dense<0.000000e+00> : vector<8x8xf32>
    %129 = tpu.matmul %126, %127, %cst_57 {dimension_numbers = #tpu.dot_dimension_numbers<[1], [1], [0], [0], [0, 0, 1, 0], [], []>} : vector<8x8xf32>, vector<8x8xf32>, vector<8x8xf32> -> vector<8x8xf32>
    %cst_58 = arith.constant 0.353553385 : f32
    %130 = vector.broadcast %cst_58 : f32 to vector<8x8xf32>
    %131 = arith.mulf %129, %130 : vector<8x8xf32>
    %cst_59 = arith.constant dense<0xFF800000> : vector<8xf32>
    %132 = vector.multi_reduction <maximumf>, %131, %cst_59 [1] : vector<8x8xf32> to vector<8xf32>
    %133 = vector.shape_cast %132 : vector<8xf32> to vector<8x1xf32>
    %134 = vector.broadcast %133 : vector<8x1xf32> to vector<8x8xf32>
    %135 = arith.subf %131, %134 : vector<8x8xf32>
    %136 = math.exp %135 : vector<8x8xf32>
    %cst_60 = arith.constant dense<0.000000e+00> : vector<8xf32>
    %137 = vector.multi_reduction <add>, %136, %cst_60 [1] : vector<8x8xf32> to vector<8xf32>
    %138 = vector.shape_cast %137 : vector<8xf32> to vector<8x1xf32>
    %139 = tpu.reciprocal %138 {approx = true} : vector<8x1xf32> -> vector<8x1xf32>
    %140 = vector.broadcast %139 : vector<8x1xf32> to vector<8x8xf32>
    %141 = arith.mulf %136, %140 : vector<8x8xf32>
    %cst_61 = arith.constant dense<0.000000e+00> : vector<8x8xf32>
    %142 = tpu.matmul %141, %128, %cst_61 {dimension_numbers = #tpu.dot_dimension_numbers<[1], [0], [0], [1], [0, 0, 1, 1], [], []>} : vector<8x8xf32>, vector<8x8xf32>, vector<8x8xf32> -> vector<8x8xf32>
    %c0_62 = arith.constant 0 : index
    %c16_63 = arith.constant 16 : index
    %143 = vector.load %arg21[%c0_62, %c16_63] : memref<8x32xf32, #tpu.memory_space<vmem>>, vector<8x8xf32>
    tpu.vector_store %arg21[%c0_62, %c16_63], %142 {strides = array<i32>} : memref<8x32xf32, #tpu.memory_space<vmem>>, vector<8x8xf32>,
    %144 = vector.extract_strided_slice %87 {offsets = [0, 24], sizes = [8, 8], strides = [1, 1]} : vector<8x32xf32> to vector<8x8xf32>
    %145 = vector.extract_strided_slice %88 {offsets = [0, 24], sizes = [8, 8], strides = [1, 1]} : vector<8x32xf32> to vector<8x8xf32>
    %146 = vector.extract_strided_slice %89 {offsets = [0, 24], sizes = [8, 8], strides = [1, 1]} : vector<8x32xf32> to vector<8x8xf32>
    %cst_64 = arith.constant dense<0.000000e+00> : vector<8x8xf32>
    %147 = tpu.matmul %144, %145, %cst_64 {dimension_numbers = #tpu.dot_dimension_numbers<[1], [1], [0], [0], [0, 0, 1, 0], [], []>} : vector<8x8xf32>, vector<8x8xf32>, vector<8x8xf32> -> vector<8x8xf32>
    %cst_65 = arith.constant 0.353553385 : f32
    %148 = vector.broadcast %cst_65 : f32 to vector<8x8xf32>
    %149 = arith.mulf %147, %148 : vector<8x8xf32>
    %cst_66 = arith.constant dense<0xFF800000> : vector<8xf32>
    %150 = vector.multi_reduction <maximumf>, %149, %cst_66 [1] : vector<8x8xf32> to vector<8xf32>
    %151 = vector.shape_cast %150 : vector<8xf32> to vector<8x1xf32>
    %152 = vector.broadcast %151 : vector<8x1xf32> to vector<8x8xf32>
    %153 = arith.subf %149, %152 : vector<8x8xf32>
    %154 = math.exp %153 : vector<8x8xf32>
    %cst_67 = arith.constant dense<0.000000e+00> : vector<8xf32>
    %155 = vector.multi_reduction <add>, %154, %cst_67 [1] : vector<8x8xf32> to vector<8xf32>
    %156 = vector.shape_cast %155 : vector<8xf32> to vector<8x1xf32>
    %157 = tpu.reciprocal %156 {approx = true} : vector<8x1xf32> -> vector<8x1xf32>
    %158 = vector.broadcast %157 : vector<8x1xf32> to vector<8x8xf32>
    %159 = arith.mulf %154, %158 : vector<8x8xf32>
    %cst_68 = arith.constant dense<0.000000e+00> : vector<8x8xf32>
    %160 = tpu.matmul %159, %146, %cst_68 {dimension_numbers = #tpu.dot_dimension_numbers<[1], [0], [0], [1], [0, 0, 1, 1], [], []>} : vector<8x8xf32>, vector<8x8xf32>, vector<8x8xf32> -> vector<8x8xf32>
    %c0_69 = arith.constant 0 : index
    %c24_70 = arith.constant 24 : index
    %161 = vector.load %arg21[%c0_69, %c24_70] : memref<8x32xf32, #tpu.memory_space<vmem>>, vector<8x8xf32>
    tpu.vector_store %arg21[%c0_69, %c24_70], %160 {strides = array<i32>} : memref<8x32xf32, #tpu.memory_space<vmem>>, vector<8x8xf32>,
    %c0_71 = arith.constant 0 : index
    %c0_72 = arith.constant 0 : index
    %162 = vector.load %arg21[%c0_71, %c0_72] : memref<8x32xf32, #tpu.memory_space<vmem>>, vector<8x32xf32>
    %cst_73 = arith.constant dense<0.000000e+00> : vector<8x32xf32>
    %163 = tpu.matmul %162, %5, %cst_73 {dimension_numbers = #tpu.dot_dimension_numbers<[1], [0], [0], [1], [0, 0, 1, 1], [], []>} : vector<8x32xf32>, vector<32x32xf32>, vector<8x32xf32> -> vector<8x32xf32>
    %c8_74 = arith.constant 8 : index
    %c0_75 = arith.constant 0 : index
    %164 = vector.load %arg22[%c8_74, %c0_75] : memref<16x32xf32, #tpu.memory_space<vmem>>, vector<8x32xf32>
    tpu.vector_store %arg22[%c8_74, %c0_75], %163 {strides = array<i32>} : memref<16x32xf32, #tpu.memory_space<vmem>>, vector<8x32xf32>,
    %c0_76 = arith.constant 0 : index
    %c0_77 = arith.constant 0 : index
    %165 = vector.load %arg22[%c0_76, %c0_77] : memref<16x32xf32, #tpu.memory_space<vmem>>, vector<16x32xf32>
    %c0_78 = arith.constant 0 : index
    %c0_79 = arith.constant 0 : index
    %166 = vector.load %arg6[%c0_78, %c0_79] : memref<1x32xf32, #tpu.memory_space<vmem>>, vector<1x32xf32>
    %c0_80 = arith.constant 0 : index
    %c0_81 = arith.constant 0 : index
    %167 = vector.load %arg7[%c0_80, %c0_81] : memref<1x32xf32, #tpu.memory_space<vmem>>, vector<1x32xf32>
    %168 = arith.addf %0, %165 : vector<16x32xf32>
    %cst_82 = arith.constant dense<0.000000e+00> : vector<16xf32>
    %169 = vector.multi_reduction <add>, %168, %cst_82 [1] : vector<16x32xf32> to vector<16xf32>
    %170 = vector.shape_cast %169 : vector<16xf32> to vector<16x1xf32>
    %cst_83 = arith.constant 3.200000e+01 : f32
    %171 = vector.broadcast %cst_83 : f32 to vector<16x1xf32>
    %172 = arith.divf %170, %171 : vector<16x1xf32>
    %173 = vector.broadcast %172 : vector<16x1xf32> to vector<16x32xf32>
    %174 = arith.subf %168, %173 : vector<16x32xf32>
    %175 = arith.mulf %174, %174 : vector<16x32xf32>
    %cst_84 = arith.constant dense<0.000000e+00> : vector<16xf32>
    %176 = vector.multi_reduction <add>, %175, %cst_84 [1] : vector<16x32xf32> to vector<16xf32>
    %177 = vector.shape_cast %176 : vector<16xf32> to vector<16x1xf32>
    %cst_85 = arith.constant 3.200000e+01 : f32
    %178 = vector.broadcast %cst_85 : f32 to vector<16x1xf32>
    %179 = arith.divf %177, %178 : vector<16x1xf32>
    %180 = vector.broadcast %172 : vector<16x1xf32> to vector<16x32xf32>
    %181 = arith.subf %168, %180 : vector<16x32xf32>
    %cst_86 = arith.constant 9.99999974E-6 : f32
    %182 = vector.broadcast %cst_86 : f32 to vector<16x1xf32>
    %183 = arith.addf %179, %182 : vector<16x1xf32>
    %184 = math.rsqrt %183 : vector<16x1xf32>
    %185 = vector.broadcast %184 : vector<16x1xf32> to vector<16x32xf32>
    %186 = arith.mulf %181, %185 : vector<16x32xf32>
    %187 = vector.broadcast %166 : vector<1x32xf32> to vector<16x32xf32>
    %188 = arith.mulf %186, %187 : vector<16x32xf32>
    %189 = vector.broadcast %167 : vector<1x32xf32> to vector<16x32xf32>
    %190 = arith.addf %188, %189 : vector<16x32xf32>
    %c0_87 = arith.constant 0 : index
    %c0_88 = arith.constant 0 : index
    %191 = vector.load %arg8[%c0_87, %c0_88] : memref<32x32xf32, #tpu.memory_space<vmem>>, vector<32x32xf32>
    %c0_89 = arith.constant 0 : index
    %c0_90 = arith.constant 0 : index
    %192 = vector.load %arg9[%c0_89, %c0_90] : memref<32x32xf32, #tpu.memory_space<vmem>>, vector<32x32xf32>
    %c0_91 = arith.constant 0 : index
    %c0_92 = arith.constant 0 : index
    %193 = vector.load %arg10[%c0_91, %c0_92] : memref<32x32xf32, #tpu.memory_space<vmem>>, vector<32x32xf32>
    %c0_93 = arith.constant 0 : index
    %c0_94 = arith.constant 0 : index
    %194 = vector.load %arg11[%c0_93, %c0_94] : memref<32x32xf32, #tpu.memory_space<vmem>>, vector<32x32xf32>
    %cst_95 = arith.constant dense<0.000000e+00> : vector<16x32xf32>
    %195 = tpu.matmul %190, %191, %cst_95 {dimension_numbers = #tpu.dot_dimension_numbers<[1], [0], [0], [1], [0, 0, 1, 1], [], []>} : vector<16x32xf32>, vector<32x32xf32>, vector<16x32xf32> -> vector<16x32xf32>
    %cst_96 = arith.constant dense<0.000000e+00> : vector<16x32xf32>
    %196 = tpu.matmul %1, %192, %cst_96 {dimension_numbers = #tpu.dot_dimension_numbers<[1], [0], [0], [1], [0, 0, 1, 1], [], []>} : vector<16x32xf32>, vector<32x32xf32>, vector<16x32xf32> -> vector<16x32xf32>
    %cst_97 = arith.constant dense<0.000000e+00> : vector<16x32xf32>
    %197 = tpu.matmul %1, %193, %cst_97 {dimension_numbers = #tpu.dot_dimension_numbers<[1], [0], [0], [1], [0, 0, 1, 1], [], []>} : vector<16x32xf32>, vector<32x32xf32>, vector<16x32xf32> -> vector<16x32xf32>
    %198 = vector.extract_strided_slice %195 {offsets = [0, 0], sizes = [8, 32], strides = [1, 1]} : vector<16x32xf32> to vector<8x32xf32>
    %199 = vector.extract_strided_slice %196 {offsets = [0, 0], sizes = [8, 32], strides = [1, 1]} : vector<16x32xf32> to vector<8x32xf32>
    %200 = vector.extract_strided_slice %197 {offsets = [0, 0], sizes = [8, 32], strides = [1, 1]} : vector<16x32xf32> to vector<8x32xf32>
    %201 = vector.extract_strided_slice %198 {offsets = [0, 0], sizes = [8, 8], strides = [1, 1]} : vector<8x32xf32> to vector<8x8xf32>
    %202 = vector.extract_strided_slice %199 {offsets = [0, 0], sizes = [8, 8], strides = [1, 1]} : vector<8x32xf32> to vector<8x8xf32>
    %203 = vector.extract_strided_slice %200 {offsets = [0, 0], sizes = [8, 8], strides = [1, 1]} : vector<8x32xf32> to vector<8x8xf32>
    %cst_98 = arith.constant dense<0.000000e+00> : vector<8x8xf32>
    %204 = tpu.matmul %201, %202, %cst_98 {dimension_numbers = #tpu.dot_dimension_numbers<[1], [1], [0], [0], [0, 0, 1, 0], [], []>} : vector<8x8xf32>, vector<8x8xf32>, vector<8x8xf32> -> vector<8x8xf32>
    %cst_99 = arith.constant 0.353553385 : f32
    %205 = vector.broadcast %cst_99 : f32 to vector<8x8xf32>
    %206 = arith.mulf %204, %205 : vector<8x8xf32>
    %cst_100 = arith.constant dense<0xFF800000> : vector<8xf32>
    %207 = vector.multi_reduction <maximumf>, %206, %cst_100 [1] : vector<8x8xf32> to vector<8xf32>
    %208 = vector.shape_cast %207 : vector<8xf32> to vector<8x1xf32>
    %209 = vector.broadcast %208 : vector<8x1xf32> to vector<8x8xf32>
    %210 = arith.subf %206, %209 : vector<8x8xf32>
    %211 = math.exp %210 : vector<8x8xf32>
    %cst_101 = arith.constant dense<0.000000e+00> : vector<8xf32>
    %212 = vector.multi_reduction <add>, %211, %cst_101 [1] : vector<8x8xf32> to vector<8xf32>
    %213 = vector.shape_cast %212 : vector<8xf32> to vector<8x1xf32>
    %214 = tpu.reciprocal %213 {approx = true} : vector<8x1xf32> -> vector<8x1xf32>
    %215 = vector.broadcast %214 : vector<8x1xf32> to vector<8x8xf32>
    %216 = arith.mulf %211, %215 : vector<8x8xf32>
    %cst_102 = arith.constant dense<0.000000e+00> : vector<8x8xf32>
    %217 = tpu.matmul %216, %203, %cst_102 {dimension_numbers = #tpu.dot_dimension_numbers<[1], [0], [0], [1], [0, 0, 1, 1], [], []>} : vector<8x8xf32>, vector<8x8xf32>, vector<8x8xf32> -> vector<8x8xf32>
    %c0_103 = arith.constant 0 : index
    %c0_104 = arith.constant 0 : index
    %218 = vector.load %arg21[%c0_103, %c0_104] : memref<8x32xf32, #tpu.memory_space<vmem>>, vector<8x8xf32>
    tpu.vector_store %arg21[%c0_103, %c0_104], %217 {strides = array<i32>} : memref<8x32xf32, #tpu.memory_space<vmem>>, vector<8x8xf32>,
    %219 = vector.extract_strided_slice %198 {offsets = [0, 8], sizes = [8, 8], strides = [1, 1]} : vector<8x32xf32> to vector<8x8xf32>
    %220 = vector.extract_strided_slice %199 {offsets = [0, 8], sizes = [8, 8], strides = [1, 1]} : vector<8x32xf32> to vector<8x8xf32>
    %221 = vector.extract_strided_slice %200 {offsets = [0, 8], sizes = [8, 8], strides = [1, 1]} : vector<8x32xf32> to vector<8x8xf32>
    %cst_105 = arith.constant dense<0.000000e+00> : vector<8x8xf32>
    %222 = tpu.matmul %219, %220, %cst_105 {dimension_numbers = #tpu.dot_dimension_numbers<[1], [1], [0], [0], [0, 0, 1, 0], [], []>} : vector<8x8xf32>, vector<8x8xf32>, vector<8x8xf32> -> vector<8x8xf32>
    %cst_106 = arith.constant 0.353553385 : f32
    %223 = vector.broadcast %cst_106 : f32 to vector<8x8xf32>
    %224 = arith.mulf %222, %223 : vector<8x8xf32>
    %cst_107 = arith.constant dense<0xFF800000> : vector<8xf32>
    %225 = vector.multi_reduction <maximumf>, %224, %cst_107 [1] : vector<8x8xf32> to vector<8xf32>
    %226 = vector.shape_cast %225 : vector<8xf32> to vector<8x1xf32>
    %227 = vector.broadcast %226 : vector<8x1xf32> to vector<8x8xf32>
    %228 = arith.subf %224, %227 : vector<8x8xf32>
    %229 = math.exp %228 : vector<8x8xf32>
    %cst_108 = arith.constant dense<0.000000e+00> : vector<8xf32>
    %230 = vector.multi_reduction <add>, %229, %cst_108 [1] : vector<8x8xf32> to vector<8xf32>
    %231 = vector.shape_cast %230 : vector<8xf32> to vector<8x1xf32>
    %232 = tpu.reciprocal %231 {approx = true} : vector<8x1xf32> -> vector<8x1xf32>
    %233 = vector.broadcast %232 : vector<8x1xf32> to vector<8x8xf32>
    %234 = arith.mulf %229, %233 : vector<8x8xf32>
    %cst_109 = arith.constant dense<0.000000e+00> : vector<8x8xf32>
    %235 = tpu.matmul %234, %221, %cst_109 {dimension_numbers = #tpu.dot_dimension_numbers<[1], [0], [0], [1], [0, 0, 1, 1], [], []>} : vector<8x8xf32>, vector<8x8xf32>, vector<8x8xf32> -> vector<8x8xf32>
    %c0_110 = arith.constant 0 : index
    %c8_111 = arith.constant 8 : index
    %236 = vector.load %arg21[%c0_110, %c8_111] : memref<8x32xf32, #tpu.memory_space<vmem>>, vector<8x8xf32>
    tpu.vector_store %arg21[%c0_110, %c8_111], %235 {strides = array<i32>} : memref<8x32xf32, #tpu.memory_space<vmem>>, vector<8x8xf32>,
    %237 = vector.extract_strided_slice %198 {offsets = [0, 16], sizes = [8, 8], strides = [1, 1]} : vector<8x32xf32> to vector<8x8xf32>
    %238 = vector.extract_strided_slice %199 {offsets = [0, 16], sizes = [8, 8], strides = [1, 1]} : vector<8x32xf32> to vector<8x8xf32>
    %239 = vector.extract_strided_slice %200 {offsets = [0, 16], sizes = [8, 8], strides = [1, 1]} : vector<8x32xf32> to vector<8x8xf32>
    %cst_112 = arith.constant dense<0.000000e+00> : vector<8x8xf32>
    %240 = tpu.matmul %237, %238, %cst_112 {dimension_numbers = #tpu.dot_dimension_numbers<[1], [1], [0], [0], [0, 0, 1, 0], [], []>} : vector<8x8xf32>, vector<8x8xf32>, vector<8x8xf32> -> vector<8x8xf32>
    %cst_113 = arith.constant 0.353553385 : f32
    %241 = vector.broadcast %cst_113 : f32 to vector<8x8xf32>
    %242 = arith.mulf %240, %241 : vector<8x8xf32>
    %cst_114 = arith.constant dense<0xFF800000> : vector<8xf32>
    %243 = vector.multi_reduction <maximumf>, %242, %cst_114 [1] : vector<8x8xf32> to vector<8xf32>
    %244 = vector.shape_cast %243 : vector<8xf32> to vector<8x1xf32>
    %245 = vector.broadcast %244 : vector<8x1xf32> to vector<8x8xf32>
    %246 = arith.subf %242, %245 : vector<8x8xf32>
    %247 = math.exp %246 : vector<8x8xf32>
    %cst_115 = arith.constant dense<0.000000e+00> : vector<8xf32>
    %248 = vector.multi_reduction <add>, %247, %cst_115 [1] : vector<8x8xf32> to vector<8xf32>
    %249 = vector.shape_cast %248 : vector<8xf32> to vector<8x1xf32>
    %250 = tpu.reciprocal %249 {approx = true} : vector<8x1xf32> -> vector<8x1xf32>
    %251 = vector.broadcast %250 : vector<8x1xf32> to vector<8x8xf32>
    %252 = arith.mulf %247, %251 : vector<8x8xf32>
    %cst_116 = arith.constant dense<0.000000e+00> : vector<8x8xf32>
    %253 = tpu.matmul %252, %239, %cst_116 {dimension_numbers = #tpu.dot_dimension_numbers<[1], [0], [0], [1], [0, 0, 1, 1], [], []>} : vector<8x8xf32>, vector<8x8xf32>, vector<8x8xf32> -> vector<8x8xf32>
    %c0_117 = arith.constant 0 : index
    %c16_118 = arith.constant 16 : index
    %254 = vector.load %arg21[%c0_117, %c16_118] : memref<8x32xf32, #tpu.memory_space<vmem>>, vector<8x8xf32>
    tpu.vector_store %arg21[%c0_117, %c16_118], %253 {strides = array<i32>} : memref<8x32xf32, #tpu.memory_space<vmem>>, vector<8x8xf32>,
    %255 = vector.extract_strided_slice %198 {offsets = [0, 24], sizes = [8, 8], strides = [1, 1]} : vector<8x32xf32> to vector<8x8xf32>
    %256 = vector.extract_strided_slice %199 {offsets = [0, 24], sizes = [8, 8], strides = [1, 1]} : vector<8x32xf32> to vector<8x8xf32>
    %257 = vector.extract_strided_slice %200 {offsets = [0, 24], sizes = [8, 8], strides = [1, 1]} : vector<8x32xf32> to vector<8x8xf32>
    %cst_119 = arith.constant dense<0.000000e+00> : vector<8x8xf32>
    %258 = tpu.matmul %255, %256, %cst_119 {dimension_numbers = #tpu.dot_dimension_numbers<[1], [1], [0], [0], [0, 0, 1, 0], [], []>} : vector<8x8xf32>, vector<8x8xf32>, vector<8x8xf32> -> vector<8x8xf32>
    %cst_120 = arith.constant 0.353553385 : f32
    %259 = vector.broadcast %cst_120 : f32 to vector<8x8xf32>
    %260 = arith.mulf %258, %259 : vector<8x8xf32>
    %cst_121 = arith.constant dense<0xFF800000> : vector<8xf32>
    %261 = vector.multi_reduction <maximumf>, %260, %cst_121 [1] : vector<8x8xf32> to vector<8xf32>
    %262 = vector.shape_cast %261 : vector<8xf32> to vector<8x1xf32>
    %263 = vector.broadcast %262 : vector<8x1xf32> to vector<8x8xf32>
    %264 = arith.subf %260, %263 : vector<8x8xf32>
    %265 = math.exp %264 : vector<8x8xf32>
    %cst_122 = arith.constant dense<0.000000e+00> : vector<8xf32>
    %266 = vector.multi_reduction <add>, %265, %cst_122 [1] : vector<8x8xf32> to vector<8xf32>
    %267 = vector.shape_cast %266 : vector<8xf32> to vector<8x1xf32>
    %268 = tpu.reciprocal %267 {approx = true} : vector<8x1xf32> -> vector<8x1xf32>
    %269 = vector.broadcast %268 : vector<8x1xf32> to vector<8x8xf32>
    %270 = arith.mulf %265, %269 : vector<8x8xf32>
    %cst_123 = arith.constant dense<0.000000e+00> : vector<8x8xf32>
    %271 = tpu.matmul %270, %257, %cst_123 {dimension_numbers = #tpu.dot_dimension_numbers<[1], [0], [0], [1], [0, 0, 1, 1], [], []>} : vector<8x8xf32>, vector<8x8xf32>, vector<8x8xf32> -> vector<8x8xf32>
    %c0_124 = arith.constant 0 : index
    %c24_125 = arith.constant 24 : index
    %272 = vector.load %arg21[%c0_124, %c24_125] : memref<8x32xf32, #tpu.memory_space<vmem>>, vector<8x8xf32>
    tpu.vector_store %arg21[%c0_124, %c24_125], %271 {strides = array<i32>} : memref<8x32xf32, #tpu.memory_space<vmem>>, vector<8x8xf32>,
    %c0_126 = arith.constant 0 : index
    %c0_127 = arith.constant 0 : index
    %273 = vector.load %arg21[%c0_126, %c0_127] : memref<8x32xf32, #tpu.memory_space<vmem>>, vector<8x32xf32>
    %cst_128 = arith.constant dense<0.000000e+00> : vector<8x32xf32>
    %274 = tpu.matmul %273, %194, %cst_128 {dimension_numbers = #tpu.dot_dimension_numbers<[1], [0], [0], [1], [0, 0, 1, 1], [], []>} : vector<8x32xf32>, vector<32x32xf32>, vector<8x32xf32> -> vector<8x32xf32>
    %c0_129 = arith.constant 0 : index
    %c0_130 = arith.constant 0 : index
    %275 = vector.load %arg22[%c0_129, %c0_130] : memref<16x32xf32, #tpu.memory_space<vmem>>, vector<8x32xf32>
    tpu.vector_store %arg22[%c0_129, %c0_130], %274 {strides = array<i32>} : memref<16x32xf32, #tpu.memory_space<vmem>>, vector<8x32xf32>,
    %276 = vector.extract_strided_slice %195 {offsets = [8, 0], sizes = [8, 32], strides = [1, 1]} : vector<16x32xf32> to vector<8x32xf32>
    %277 = vector.extract_strided_slice %196 {offsets = [8, 0], sizes = [8, 32], strides = [1, 1]} : vector<16x32xf32> to vector<8x32xf32>
    %278 = vector.extract_strided_slice %197 {offsets = [8, 0], sizes = [8, 32], strides = [1, 1]} : vector<16x32xf32> to vector<8x32xf32>
    %279 = vector.extract_strided_slice %276 {offsets = [0, 0], sizes = [8, 8], strides = [1, 1]} : vector<8x32xf32> to vector<8x8xf32>
    %280 = vector.extract_strided_slice %277 {offsets = [0, 0], sizes = [8, 8], strides = [1, 1]} : vector<8x32xf32> to vector<8x8xf32>
    %281 = vector.extract_strided_slice %278 {offsets = [0, 0], sizes = [8, 8], strides = [1, 1]} : vector<8x32xf32> to vector<8x8xf32>
    %cst_131 = arith.constant dense<0.000000e+00> : vector<8x8xf32>
    %282 = tpu.matmul %279, %280, %cst_131 {dimension_numbers = #tpu.dot_dimension_numbers<[1], [1], [0], [0], [0, 0, 1, 0], [], []>} : vector<8x8xf32>, vector<8x8xf32>, vector<8x8xf32> -> vector<8x8xf32>
    %cst_132 = arith.constant 0.353553385 : f32
    %283 = vector.broadcast %cst_132 : f32 to vector<8x8xf32>
    %284 = arith.mulf %282, %283 : vector<8x8xf32>
    %cst_133 = arith.constant dense<0xFF800000> : vector<8xf32>
    %285 = vector.multi_reduction <maximumf>, %284, %cst_133 [1] : vector<8x8xf32> to vector<8xf32>
    %286 = vector.shape_cast %285 : vector<8xf32> to vector<8x1xf32>
    %287 = vector.broadcast %286 : vector<8x1xf32> to vector<8x8xf32>
    %288 = arith.subf %284, %287 : vector<8x8xf32>
    %289 = math.exp %288 : vector<8x8xf32>
    %cst_134 = arith.constant dense<0.000000e+00> : vector<8xf32>
    %290 = vector.multi_reduction <add>, %289, %cst_134 [1] : vector<8x8xf32> to vector<8xf32>
    %291 = vector.shape_cast %290 : vector<8xf32> to vector<8x1xf32>
    %292 = tpu.reciprocal %291 {approx = true} : vector<8x1xf32> -> vector<8x1xf32>
    %293 = vector.broadcast %292 : vector<8x1xf32> to vector<8x8xf32>
    %294 = arith.mulf %289, %293 : vector<8x8xf32>
    %cst_135 = arith.constant dense<0.000000e+00> : vector<8x8xf32>
    %295 = tpu.matmul %294, %281, %cst_135 {dimension_numbers = #tpu.dot_dimension_numbers<[1], [0], [0], [1], [0, 0, 1, 1], [], []>} : vector<8x8xf32>, vector<8x8xf32>, vector<8x8xf32> -> vector<8x8xf32>
    %c0_136 = arith.constant 0 : index
    %c0_137 = arith.constant 0 : index
    %296 = vector.load %arg21[%c0_136, %c0_137] : memref<8x32xf32, #tpu.memory_space<vmem>>, vector<8x8xf32>
    tpu.vector_store %arg21[%c0_136, %c0_137], %295 {strides = array<i32>} : memref<8x32xf32, #tpu.memory_space<vmem>>, vector<8x8xf32>,
    %297 = vector.extract_strided_slice %276 {offsets = [0, 8], sizes = [8, 8], strides = [1, 1]} : vector<8x32xf32> to vector<8x8xf32>
    %298 = vector.extract_strided_slice %277 {offsets = [0, 8], sizes = [8, 8], strides = [1, 1]} : vector<8x32xf32> to vector<8x8xf32>
    %299 = vector.extract_strided_slice %278 {offsets = [0, 8], sizes = [8, 8], strides = [1, 1]} : vector<8x32xf32> to vector<8x8xf32>
    %cst_138 = arith.constant dense<0.000000e+00> : vector<8x8xf32>
    %300 = tpu.matmul %297, %298, %cst_138 {dimension_numbers = #tpu.dot_dimension_numbers<[1], [1], [0], [0], [0, 0, 1, 0], [], []>} : vector<8x8xf32>, vector<8x8xf32>, vector<8x8xf32> -> vector<8x8xf32>
    %cst_139 = arith.constant 0.353553385 : f32
    %301 = vector.broadcast %cst_139 : f32 to vector<8x8xf32>
    %302 = arith.mulf %300, %301 : vector<8x8xf32>
    %cst_140 = arith.constant dense<0xFF800000> : vector<8xf32>
    %303 = vector.multi_reduction <maximumf>, %302, %cst_140 [1] : vector<8x8xf32> to vector<8xf32>
    %304 = vector.shape_cast %303 : vector<8xf32> to vector<8x1xf32>
    %305 = vector.broadcast %304 : vector<8x1xf32> to vector<8x8xf32>
    %306 = arith.subf %302, %305 : vector<8x8xf32>
    %307 = math.exp %306 : vector<8x8xf32>
    %cst_141 = arith.constant dense<0.000000e+00> : vector<8xf32>
    %308 = vector.multi_reduction <add>, %307, %cst_141 [1] : vector<8x8xf32> to vector<8xf32>
    %309 = vector.shape_cast %308 : vector<8xf32> to vector<8x1xf32>
    %310 = tpu.reciprocal %309 {approx = true} : vector<8x1xf32> -> vector<8x1xf32>
    %311 = vector.broadcast %310 : vector<8x1xf32> to vector<8x8xf32>
    %312 = arith.mulf %307, %311 : vector<8x8xf32>
    %cst_142 = arith.constant dense<0.000000e+00> : vector<8x8xf32>
    %313 = tpu.matmul %312, %299, %cst_142 {dimension_numbers = #tpu.dot_dimension_numbers<[1], [0], [0], [1], [0, 0, 1, 1], [], []>} : vector<8x8xf32>, vector<8x8xf32>, vector<8x8xf32> -> vector<8x8xf32>
    %c0_143 = arith.constant 0 : index
    %c8_144 = arith.constant 8 : index
    %314 = vector.load %arg21[%c0_143, %c8_144] : memref<8x32xf32, #tpu.memory_space<vmem>>, vector<8x8xf32>
    tpu.vector_store %arg21[%c0_143, %c8_144], %313 {strides = array<i32>} : memref<8x32xf32, #tpu.memory_space<vmem>>, vector<8x8xf32>,
    %315 = vector.extract_strided_slice %276 {offsets = [0, 16], sizes = [8, 8], strides = [1, 1]} : vector<8x32xf32> to vector<8x8xf32>
    %316 = vector.extract_strided_slice %277 {offsets = [0, 16], sizes = [8, 8], strides = [1, 1]} : vector<8x32xf32> to vector<8x8xf32>
    %317 = vector.extract_strided_slice %278 {offsets = [0, 16], sizes = [8, 8], strides = [1, 1]} : vector<8x32xf32> to vector<8x8xf32>
    %cst_145 = arith.constant dense<0.000000e+00> : vector<8x8xf32>
    %318 = tpu.matmul %315, %316, %cst_145 {dimension_numbers = #tpu.dot_dimension_numbers<[1], [1], [0], [0], [0, 0, 1, 0], [], []>} : vector<8x8xf32>, vector<8x8xf32>, vector<8x8xf32> -> vector<8x8xf32>
    %cst_146 = arith.constant 0.353553385 : f32
    %319 = vector.broadcast %cst_146 : f32 to vector<8x8xf32>
    %320 = arith.mulf %318, %319 : vector<8x8xf32>
    %cst_147 = arith.constant dense<0xFF800000> : vector<8xf32>
    %321 = vector.multi_reduction <maximumf>, %320, %cst_147 [1] : vector<8x8xf32> to vector<8xf32>
    %322 = vector.shape_cast %321 : vector<8xf32> to vector<8x1xf32>
    %323 = vector.broadcast %322 : vector<8x1xf32> to vector<8x8xf32>
    %324 = arith.subf %320, %323 : vector<8x8xf32>
    %325 = math.exp %324 : vector<8x8xf32>
    %cst_148 = arith.constant dense<0.000000e+00> : vector<8xf32>
    %326 = vector.multi_reduction <add>, %325, %cst_148 [1] : vector<8x8xf32> to vector<8xf32>
    %327 = vector.shape_cast %326 : vector<8xf32> to vector<8x1xf32>
    %328 = tpu.reciprocal %327 {approx = true} : vector<8x1xf32> -> vector<8x1xf32>
    %329 = vector.broadcast %328 : vector<8x1xf32> to vector<8x8xf32>
    %330 = arith.mulf %325, %329 : vector<8x8xf32>
    %cst_149 = arith.constant dense<0.000000e+00> : vector<8x8xf32>
    %331 = tpu.matmul %330, %317, %cst_149 {dimension_numbers = #tpu.dot_dimension_numbers<[1], [0], [0], [1], [0, 0, 1, 1], [], []>} : vector<8x8xf32>, vector<8x8xf32>, vector<8x8xf32> -> vector<8x8xf32>
    %c0_150 = arith.constant 0 : index
    %c16_151 = arith.constant 16 : index
    %332 = vector.load %arg21[%c0_150, %c16_151] : memref<8x32xf32, #tpu.memory_space<vmem>>, vector<8x8xf32>
    tpu.vector_store %arg21[%c0_150, %c16_151], %331 {strides = array<i32>} : memref<8x32xf32, #tpu.memory_space<vmem>>, vector<8x8xf32>,
    %333 = vector.extract_strided_slice %276 {offsets = [0, 24], sizes = [8, 8], strides = [1, 1]} : vector<8x32xf32> to vector<8x8xf32>
    %334 = vector.extract_strided_slice %277 {offsets = [0, 24], sizes = [8, 8], strides = [1, 1]} : vector<8x32xf32> to vector<8x8xf32>
    %335 = vector.extract_strided_slice %278 {offsets = [0, 24], sizes = [8, 8], strides = [1, 1]} : vector<8x32xf32> to vector<8x8xf32>
    %cst_152 = arith.constant dense<0.000000e+00> : vector<8x8xf32>
    %336 = tpu.matmul %333, %334, %cst_152 {dimension_numbers = #tpu.dot_dimension_numbers<[1], [1], [0], [0], [0, 0, 1, 0], [], []>} : vector<8x8xf32>, vector<8x8xf32>, vector<8x8xf32> -> vector<8x8xf32>
    %cst_153 = arith.constant 0.353553385 : f32
    %337 = vector.broadcast %cst_153 : f32 to vector<8x8xf32>
    %338 = arith.mulf %336, %337 : vector<8x8xf32>
    %cst_154 = arith.constant dense<0xFF800000> : vector<8xf32>
    %339 = vector.multi_reduction <maximumf>, %338, %cst_154 [1] : vector<8x8xf32> to vector<8xf32>
    %340 = vector.shape_cast %339 : vector<8xf32> to vector<8x1xf32>
    %341 = vector.broadcast %340 : vector<8x1xf32> to vector<8x8xf32>
    %342 = arith.subf %338, %341 : vector<8x8xf32>
    %343 = math.exp %342 : vector<8x8xf32>
    %cst_155 = arith.constant dense<0.000000e+00> : vector<8xf32>
    %344 = vector.multi_reduction <add>, %343, %cst_155 [1] : vector<8x8xf32> to vector<8xf32>
    %345 = vector.shape_cast %344 : vector<8xf32> to vector<8x1xf32>
    %346 = tpu.reciprocal %345 {approx = true} : vector<8x1xf32> -> vector<8x1xf32>
    %347 = vector.broadcast %346 : vector<8x1xf32> to vector<8x8xf32>
    %348 = arith.mulf %343, %347 : vector<8x8xf32>
    %cst_156 = arith.constant dense<0.000000e+00> : vector<8x8xf32>
    %349 = tpu.matmul %348, %335, %cst_156 {dimension_numbers = #tpu.dot_dimension_numbers<[1], [0], [0], [1], [0, 0, 1, 1], [], []>} : vector<8x8xf32>, vector<8x8xf32>, vector<8x8xf32> -> vector<8x8xf32>
    %c0_157 = arith.constant 0 : index
    %c24_158 = arith.constant 24 : index
    %350 = vector.load %arg21[%c0_157, %c24_158] : memref<8x32xf32, #tpu.memory_space<vmem>>, vector<8x8xf32>
    tpu.vector_store %arg21[%c0_157, %c24_158], %349 {strides = array<i32>} : memref<8x32xf32, #tpu.memory_space<vmem>>, vector<8x8xf32>,
    %c0_159 = arith.constant 0 : index
    %c0_160 = arith.constant 0 : index
    %351 = vector.load %arg21[%c0_159, %c0_160] : memref<8x32xf32, #tpu.memory_space<vmem>>, vector<8x32xf32>
    %cst_161 = arith.constant dense<0.000000e+00> : vector<8x32xf32>
    %352 = tpu.matmul %351, %194, %cst_161 {dimension_numbers = #tpu.dot_dimension_numbers<[1], [0], [0], [1], [0, 0, 1, 1], [], []>} : vector<8x32xf32>, vector<32x32xf32>, vector<8x32xf32> -> vector<8x32xf32>
    %c8_162 = arith.constant 8 : index
    %c0_163 = arith.constant 0 : index
    %353 = vector.load %arg22[%c8_162, %c0_163] : memref<16x32xf32, #tpu.memory_space<vmem>>, vector<8x32xf32>
    tpu.vector_store %arg22[%c8_162, %c0_163], %352 {strides = array<i32>} : memref<16x32xf32, #tpu.memory_space<vmem>>, vector<8x32xf32>,
    %c0_164 = arith.constant 0 : index
    %c0_165 = arith.constant 0 : index
    %354 = vector.load %arg22[%c0_164, %c0_165] : memref<16x32xf32, #tpu.memory_space<vmem>>, vector<16x32xf32>
    %c0_166 = arith.constant 0 : index
    %c0_167 = arith.constant 0 : index
    %355 = vector.load %arg12[%c0_166, %c0_167] : memref<1x32xf32, #tpu.memory_space<vmem>>, vector<1x32xf32>
    %c0_168 = arith.constant 0 : index
    %c0_169 = arith.constant 0 : index
    %356 = vector.load %arg13[%c0_168, %c0_169] : memref<1x32xf32, #tpu.memory_space<vmem>>, vector<1x32xf32>
    %357 = arith.addf %190, %354 : vector<16x32xf32>
    %cst_170 = arith.constant dense<0.000000e+00> : vector<16xf32>
    %358 = vector.multi_reduction <add>, %357, %cst_170 [1] : vector<16x32xf32> to vector<16xf32>
    %359 = vector.shape_cast %358 : vector<16xf32> to vector<16x1xf32>
    %cst_171 = arith.constant 3.200000e+01 : f32
    %360 = vector.broadcast %cst_171 : f32 to vector<16x1xf32>
    %361 = arith.divf %359, %360 : vector<16x1xf32>
    %362 = vector.broadcast %361 : vector<16x1xf32> to vector<16x32xf32>
    %363 = arith.subf %357, %362 : vector<16x32xf32>
    %364 = arith.mulf %363, %363 : vector<16x32xf32>
    %cst_172 = arith.constant dense<0.000000e+00> : vector<16xf32>
    %365 = vector.multi_reduction <add>, %364, %cst_172 [1] : vector<16x32xf32> to vector<16xf32>
    %366 = vector.shape_cast %365 : vector<16xf32> to vector<16x1xf32>
    %cst_173 = arith.constant 3.200000e+01 : f32
    %367 = vector.broadcast %cst_173 : f32 to vector<16x1xf32>
    %368 = arith.divf %366, %367 : vector<16x1xf32>
    %369 = vector.broadcast %361 : vector<16x1xf32> to vector<16x32xf32>
    %370 = arith.subf %357, %369 : vector<16x32xf32>
    %cst_174 = arith.constant 9.99999974E-6 : f32
    %371 = vector.broadcast %cst_174 : f32 to vector<16x1xf32>
    %372 = arith.addf %368, %371 : vector<16x1xf32>
    %373 = math.rsqrt %372 : vector<16x1xf32>
    %374 = vector.broadcast %373 : vector<16x1xf32> to vector<16x32xf32>
    %375 = arith.mulf %370, %374 : vector<16x32xf32>
    %376 = vector.broadcast %355 : vector<1x32xf32> to vector<16x32xf32>
    %377 = arith.mulf %375, %376 : vector<16x32xf32>
    %378 = vector.broadcast %356 : vector<1x32xf32> to vector<16x32xf32>
    %379 = arith.addf %377, %378 : vector<16x32xf32>
    %c0_175 = arith.constant 0 : index
    %c0_176 = arith.constant 0 : index
    %380 = vector.load %arg14[%c0_175, %c0_176] : memref<32x64xf32, #tpu.memory_space<vmem>>, vector<32x64xf32>
    %c0_177 = arith.constant 0 : index
    %c0_178 = arith.constant 0 : index
    %381 = vector.load %arg15[%c0_177, %c0_178] : memref<1x64xf32, #tpu.memory_space<vmem>>, vector<1x64xf32>
    %c0_179 = arith.constant 0 : index
    %c0_180 = arith.constant 0 : index
    %382 = vector.load %arg16[%c0_179, %c0_180] : memref<64x32xf32, #tpu.memory_space<vmem>>, vector<64x32xf32>
    %c0_181 = arith.constant 0 : index
    %c0_182 = arith.constant 0 : index
    %383 = vector.load %arg17[%c0_181, %c0_182] : memref<1x32xf32, #tpu.memory_space<vmem>>, vector<1x32xf32>
    %cst_183 = arith.constant dense<0.000000e+00> : vector<16x64xf32>
    %384 = tpu.matmul %379, %380, %cst_183 {dimension_numbers = #tpu.dot_dimension_numbers<[1], [0], [0], [1], [0, 0, 1, 1], [], []>} : vector<16x32xf32>, vector<32x64xf32>, vector<16x64xf32> -> vector<16x64xf32>
    %385 = vector.broadcast %381 : vector<1x64xf32> to vector<16x64xf32>
    %386 = arith.addf %384, %385 : vector<16x64xf32>
    %cst_184 = arith.constant 0.000000e+00 : f32
    %387 = vector.broadcast %cst_184 : f32 to vector<16x64xf32>
    %388 = arith.maximumf %386, %387 : vector<16x64xf32>
    %cst_185 = arith.constant dense<0.000000e+00> : vector<16x32xf32>
    %389 = tpu.matmul %388, %382, %cst_185 {dimension_numbers = #tpu.dot_dimension_numbers<[1], [0], [0], [1], [0, 0, 1, 1], [], []>} : vector<16x64xf32>, vector<64x32xf32>, vector<16x32xf32> -> vector<16x32xf32>
    %390 = vector.broadcast %383 : vector<1x32xf32> to vector<16x32xf32>
    %391 = arith.addf %389, %390 : vector<16x32xf32>
    %c0_186 = arith.constant 0 : index
    %c0_187 = arith.constant 0 : index
    %392 = vector.load %arg18[%c0_186, %c0_187] : memref<1x32xf32, #tpu.memory_space<vmem>>, vector<1x32xf32>
    %c0_188 = arith.constant 0 : index
    %c0_189 = arith.constant 0 : index
    %393 = vector.load %arg19[%c0_188, %c0_189] : memref<1x32xf32, #tpu.memory_space<vmem>>, vector<1x32xf32>
    %394 = arith.addf %379, %391 : vector<16x32xf32>
    %cst_190 = arith.constant dense<0.000000e+00> : vector<16xf32>
    %395 = vector.multi_reduction <add>, %394, %cst_190 [1] : vector<16x32xf32> to vector<16xf32>
    %396 = vector.shape_cast %395 : vector<16xf32> to vector<16x1xf32>
    %cst_191 = arith.constant 3.200000e+01 : f32
    %397 = vector.broadcast %cst_191 : f32 to vector<16x1xf32>
    %398 = arith.divf %396, %397 : vector<16x1xf32>
    %399 = vector.broadcast %398 : vector<16x1xf32> to vector<16x32xf32>
    %400 = arith.subf %394, %399 : vector<16x32xf32>
    %401 = arith.mulf %400, %400 : vector<16x32xf32>
    %cst_192 = arith.constant dense<0.000000e+00> : vector<16xf32>
    %402 = vector.multi_reduction <add>, %401, %cst_192 [1] : vector<16x32xf32> to vector<16xf32>
    %403 = vector.shape_cast %402 : vector<16xf32> to vector<16x1xf32>
    %cst_193 = arith.constant 3.200000e+01 : f32
    %404 = vector.broadcast %cst_193 : f32 to vector<16x1xf32>
    %405 = arith.divf %403, %404 : vector<16x1xf32>
    %406 = vector.broadcast %398 : vector<16x1xf32> to vector<16x32xf32>
    %407 = arith.subf %394, %406 : vector<16x32xf32>
    %cst_194 = arith.constant 9.99999974E-6 : f32
    %408 = vector.broadcast %cst_194 : f32 to vector<16x1xf32>
    %409 = arith.addf %405, %408 : vector<16x1xf32>
    %410 = math.rsqrt %409 : vector<16x1xf32>
    %411 = vector.broadcast %410 : vector<16x1xf32> to vector<16x32xf32>
    %412 = arith.mulf %407, %411 : vector<16x32xf32>
    %413 = vector.broadcast %392 : vector<1x32xf32> to vector<16x32xf32>
    %414 = arith.mulf %412, %413 : vector<16x32xf32>
    %415 = vector.broadcast %393 : vector<1x32xf32> to vector<16x32xf32>
    %416 = arith.addf %414, %415 : vector<16x32xf32>
    %c0_195 = arith.constant 0 : index
    %c0_196 = arith.constant 0 : index
    %417 = vector.load %arg20[%c0_195, %c0_196] : memref<16x32xf32, #tpu.memory_space<vmem>>, vector<16x32xf32>
    tpu.vector_store %arg20[%c0_195, %c0_196], %416 {strides = array<i32>} : memref<16x32xf32, #tpu.memory_space<vmem>>, vector<16x32xf32>,
    return
  }
}

module attributes {stable_mosaic.version = 11 : i64} {
  func.func @_decoder_layer_kernel(%arg0: memref<16x32xf32, #tpu.memory_space<vmem>>, %arg1: memref<16x32xf32, #tpu.memory_space<vmem>>, %arg2: memref<32x32xf32, #tpu.memory_space<vmem>>, %arg3: memref<32x32xf32, #tpu.memory_space<vmem>>, %arg4: memref<32x32xf32, #tpu.memory_space<vmem>>, %arg5: memref<32x32xf32, #tpu.memory_space<vmem>>, %arg6: memref<1x32xf32, #tpu.memory_space<vmem>>, %arg7: memref<1x32xf32, #tpu.memory_space<vmem>>, %arg8: memref<32x32xf32, #tpu.memory_space<vmem>>, %arg9: memref<32x32xf32, #tpu.memory_space<vmem>>, %arg10: memref<32x32xf32, #tpu.memory_space<vmem>>, %arg11: memref<32x32xf32, #tpu.memory_space<vmem>>, %arg12: memref<1x32xf32, #tpu.memory_space<vmem>>, %arg13: memref<1x32xf32, #tpu.memory_space<vmem>>, %arg14: memref<32x64xf32, #tpu.memory_space<vmem>>, %arg15: memref<1x64xf32, #tpu.memory_space<vmem>>, %arg16: memref<64x32xf32, #tpu.memory_space<vmem>>, %arg17: memref<1x32xf32, #tpu.memory_space<vmem>>, %arg18: memref<1x32xf32, #tpu.memory_space<vmem>>, %arg19: memref<1x32xf32, #tpu.memory_space<vmem>>, %arg20: memref<16x32xf32, #tpu.memory_space<vmem>>, %arg21: memref<8x32xf32, #tpu.memory_space<vmem>>, %arg22: memref<16x32xf32, #tpu.memory_space<vmem>>) attributes {dimension_semantics = [], scalar_prefetch = 0 : i64, scratch_operands = 2 : i64, tpu.core_type = #tpu.core_type<tc>} {
    %c0 = arith.constant 0 : index
    %c0_0 = arith.constant 0 : index
    %0 = vector.load %arg0[%c0, %c0_0] : memref<16x32xf32, #tpu.memory_space<vmem>>, vector<16x32xf32>
    %c0_1 = arith.constant 0 : index
    %c0_2 = arith.constant 0 : index
    %1 = vector.load %arg1[%c0_1, %c0_2] : memref<16x32xf32, #tpu.memory_space<vmem>>, vector<16x32xf32>
    %c0_3 = arith.constant 0 : index
    %c0_4 = arith.constant 0 : index
    %2 = vector.load %arg2[%c0_3, %c0_4] : memref<32x32xf32, #tpu.memory_space<vmem>>, vector<32x32xf32>
    %c0_5 = arith.constant 0 : index
    %c0_6 = arith.constant 0 : index
    %3 = vector.load %arg3[%c0_5, %c0_6] : memref<32x32xf32, #tpu.memory_space<vmem>>, vector<32x32xf32>
    %c0_7 = arith.constant 0 : index
    %c0_8 = arith.constant 0 : index
    %4 = vector.load %arg4[%c0_7, %c0_8] : memref<32x32xf32, #tpu.memory_space<vmem>>, vector<32x32xf32>
    %c0_9 = arith.constant 0 : index
    %c0_10 = arith.constant 0 : index
    %5 = vector.load %arg5[%c0_9, %c0_10] : memref<32x32xf32, #tpu.memory_space<vmem>>, vector<32x32xf32>
    %cst = arith.constant dense<0.000000e+00> : vector<16x32xf32>
    %6 = tpu.matmul %0, %2, %cst {dimension_numbers = #tpu.dot_dimension_numbers<[1], [0], [0], [1], [0, 0, 1, 1], [], []>} : vector<16x32xf32>, vector<32x32xf32>, vector<16x32xf32> -> vector<16x32xf32>
    %cst_11 = arith.constant dense<0.000000e+00> : vector<16x32xf32>
    %7 = tpu.matmul %0, %3, %cst_11 {dimension_numbers = #tpu.dot_dimension_numbers<[1], [0], [0], [1], [0, 0, 1, 1], [], []>} : vector<16x32xf32>, vector<32x32xf32>, vector<16x32xf32> -> vector<16x32xf32>
    %cst_12 = arith.constant dense<0.000000e+00> : vector<16x32xf32>
    %8 = tpu.matmul %0, %4, %cst_12 {dimension_numbers = #tpu.dot_dimension_numbers<[1], [0], [0], [1], [0, 0, 1, 1], [], []>} : vector<16x32xf32>, vector<32x32xf32>, vector<16x32xf32> -> vector<16x32xf32>
    %9 = vector.extract_strided_slice %6 {offsets = [0, 0], sizes = [8, 32], strides = [1, 1]} : vector<16x32xf32> to vector<8x32xf32>
    %10 = vector.extract_strided_slice %7 {offsets = [0, 0], sizes = [8, 32], strides = [1, 1]} : vector<16x32xf32> to vector<8x32xf32>
    %11 = vector.extract_strided_slice %8 {offsets = [0, 0], sizes = [8, 32], strides = [1, 1]} : vector<16x32xf32> to vector<8x32xf32>
    %12 = vector.extract_strided_slice %9 {offsets = [0, 0], sizes = [8, 8], strides = [1, 1]} : vector<8x32xf32> to vector<8x8xf32>
    %13 = vector.extract_strided_slice %10 {offsets = [0, 0], sizes = [8, 8], strides = [1, 1]} : vector<8x32xf32> to vector<8x8xf32>
    %14 = vector.extract_strided_slice %11 {offsets = [0, 0], sizes = [8, 8], strides = [1, 1]} : vector<8x32xf32> to vector<8x8xf32>
    %cst_13 = arith.constant dense<0.000000e+00> : vector<8x8xf32>
    %15 = tpu.matmul %12, %13, %cst_13 {dimension_numbers = #tpu.dot_dimension_numbers<[1], [1], [0], [0], [0, 0, 1, 0], [], []>} : vector<8x8xf32>, vector<8x8xf32>, vector<8x8xf32> -> vector<8x8xf32>
    %cst_14 = arith.constant 0.353553385 : f32
    %16 = vector.broadcast %cst_14 : f32 to vector<8x8xf32>
    %17 = arith.mulf %15, %16 : vector<8x8xf32>
    %cst_15 = arith.constant dense<0xFF800000> : vector<8xf32>
    %18 = vector.multi_reduction <maximumf>, %17, %cst_15 [1] : vector<8x8xf32> to vector<8xf32>
    %19 = vector.shape_cast %18 : vector<8xf32> to vector<8x1xf32>
    %20 = vector.broadcast %19 : vector<8x1xf32> to vector<8x8xf32>
    %21 = arith.subf %17, %20 : vector<8x8xf32>
    %22 = math.exp %21 : vector<8x8xf32>
    %cst_16 = arith.constant dense<0.000000e+00> : vector<8xf32>
    %23 = vector.multi_reduction <add>, %22, %cst_16 [1] : vector<8x8xf32> to vector<8xf32>
    %24 = vector.shape_cast %23 : vector<8xf32> to vector<8x1xf32>
    %25 = tpu.reciprocal %24 {approx = true} : vector<8x1xf32> -> vector<8x1xf32>
    %26 = vector.broadcast %25 : vector<8x1xf32> to vector<8x8xf32>
    %27 = arith.mulf %22, %26 : vector<8x8xf32>
    %cst_17 = arith.constant dense<0.000000e+00> : vector<8x8xf32>
    %28 = tpu.matmul %27, %14, %cst_17 {dimension_numbers = #tpu.dot_dimension_numbers<[1], [0], [0], [1], [0, 0, 1, 1], [], []>} : vector<8x8xf32>, vector<8x8xf32>, vector<8x8xf32> -> vector<8x8xf32>
    %c0_18 = arith.constant 0 : index
    %c0_19 = arith.constant 0 : index
    %29 = vector.load %arg21[%c0_18, %c0_19] : memref<8x32xf32, #tpu.memory_space<vmem>>, vector<8x8xf32>
    tpu.vector_store %arg21[%c0_18, %c0_19], %28 {strides = array<i32>} : memref<8x32xf32, #tpu.memory_space<vmem>>, vector<8x8xf32>,
    %30 = vector.extract_strided_slice %9 {offsets = [0, 8], sizes = [8, 8], strides = [1, 1]} : vector<8x32xf32> to vector<8x8xf32>
    %31 = vector.extract_strided_slice %10 {offsets = [0, 8], sizes = [8, 8], strides = [1, 1]} : vector<8x32xf32> to vector<8x8xf32>
    %32 = vector.extract_strided_slice %11 {offsets = [0, 8], sizes = [8, 8], strides = [1, 1]} : vector<8x32xf32> to vector<8x8xf32>
    %cst_20 = arith.constant dense<0.000000e+00> : vector<8x8xf32>
    %33 = tpu.matmul %30, %31, %cst_20 {dimension_numbers = #tpu.dot_dimension_numbers<[1], [1], [0], [0], [0, 0, 1, 0], [], []>} : vector<8x8xf32>, vector<8x8xf32>, vector<8x8xf32> -> vector<8x8xf32>
    %cst_21 = arith.constant 0.353553385 : f32
    %34 = vector.broadcast %cst_21 : f32 to vector<8x8xf32>
    %35 = arith.mulf %33, %34 : vector<8x8xf32>
    %cst_22 = arith.constant dense<0xFF800000> : vector<8xf32>
    %36 = vector.multi_reduction <maximumf>, %35, %cst_22 [1] : vector<8x8xf32> to vector<8xf32>
    %37 = vector.shape_cast %36 : vector<8xf32> to vector<8x1xf32>
    %38 = vector.broadcast %37 : vector<8x1xf32> to vector<8x8xf32>
    %39 = arith.subf %35, %38 : vector<8x8xf32>
    %40 = math.exp %39 : vector<8x8xf32>
    %cst_23 = arith.constant dense<0.000000e+00> : vector<8xf32>
    %41 = vector.multi_reduction <add>, %40, %cst_23 [1] : vector<8x8xf32> to vector<8xf32>
    %42 = vector.shape_cast %41 : vector<8xf32> to vector<8x1xf32>
    %43 = tpu.reciprocal %42 {approx = true} : vector<8x1xf32> -> vector<8x1xf32>
    %44 = vector.broadcast %43 : vector<8x1xf32> to vector<8x8xf32>
    %45 = arith.mulf %40, %44 : vector<8x8xf32>
    %cst_24 = arith.constant dense<0.000000e+00> : vector<8x8xf32>
    %46 = tpu.matmul %45, %32, %cst_24 {dimension_numbers = #tpu.dot_dimension_numbers<[1], [0], [0], [1], [0, 0, 1, 1], [], []>} : vector<8x8xf32>, vector<8x8xf32>, vector<8x8xf32> -> vector<8x8xf32>
    %c0_25 = arith.constant 0 : index
    %c8 = arith.constant 8 : index
    %47 = vector.load %arg21[%c0_25, %c8] : memref<8x32xf32, #tpu.memory_space<vmem>>, vector<8x8xf32>
    tpu.vector_store %arg21[%c0_25, %c8], %46 {strides = array<i32>} : memref<8x32xf32, #tpu.memory_space<vmem>>, vector<8x8xf32>,
    %48 = vector.extract_strided_slice %9 {offsets = [0, 16], sizes = [8, 8], strides = [1, 1]} : vector<8x32xf32> to vector<8x8xf32>
    %49 = vector.extract_strided_slice %10 {offsets = [0, 16], sizes = [8, 8], strides = [1, 1]} : vector<8x32xf32> to vector<8x8xf32>
    %50 = vector.extract_strided_slice %11 {offsets = [0, 16], sizes = [8, 8], strides = [1, 1]} : vector<8x32xf32> to vector<8x8xf32>
    %cst_26 = arith.constant dense<0.000000e+00> : vector<8x8xf32>
    %51 = tpu.matmul %48, %49, %cst_26 {dimension_numbers = #tpu.dot_dimension_numbers<[1], [1], [0], [0], [0, 0, 1, 0], [], []>} : vector<8x8xf32>, vector<8x8xf32>, vector<8x8xf32> -> vector<8x8xf32>
    %cst_27 = arith.constant 0.353553385 : f32
    %52 = vector.broadcast %cst_27 : f32 to vector<8x8xf32>
    %53 = arith.mulf %51, %52 : vector<8x8xf32>
    %cst_28 = arith.constant dense<0xFF800000> : vector<8xf32>
    %54 = vector.multi_reduction <maximumf>, %53, %cst_28 [1] : vector<8x8xf32> to vector<8xf32>
    %55 = vector.shape_cast %54 : vector<8xf32> to vector<8x1xf32>
    %56 = vector.broadcast %55 : vector<8x1xf32> to vector<8x8xf32>
    %57 = arith.subf %53, %56 : vector<8x8xf32>
    %58 = math.exp %57 : vector<8x8xf32>
    %cst_29 = arith.constant dense<0.000000e+00> : vector<8xf32>
    %59 = vector.multi_reduction <add>, %58, %cst_29 [1] : vector<8x8xf32> to vector<8xf32>
    %60 = vector.shape_cast %59 : vector<8xf32> to vector<8x1xf32>
    %61 = tpu.reciprocal %60 {approx = true} : vector<8x1xf32> -> vector<8x1xf32>
    %62 = vector.broadcast %61 : vector<8x1xf32> to vector<8x8xf32>
    %63 = arith.mulf %58, %62 : vector<8x8xf32>
    %cst_30 = arith.constant dense<0.000000e+00> : vector<8x8xf32>
    %64 = tpu.matmul %63, %50, %cst_30 {dimension_numbers = #tpu.dot_dimension_numbers<[1], [0], [0], [1], [0, 0, 1, 1], [], []>} : vector<8x8xf32>, vector<8x8xf32>, vector<8x8xf32> -> vector<8x8xf32>
    %c0_31 = arith.constant 0 : index
    %c16 = arith.constant 16 : index
    %65 = vector.load %arg21[%c0_31, %c16] : memref<8x32xf32, #tpu.memory_space<vmem>>, vector<8x8xf32>
    tpu.vector_store %arg21[%c0_31, %c16], %64 {strides = array<i32>} : memref<8x32xf32, #tpu.memory_space<vmem>>, vector<8x8xf32>,
    %66 = vector.extract_strided_slice %9 {offsets = [0, 24], sizes = [8, 8], strides = [1, 1]} : vector<8x32xf32> to vector<8x8xf32>
    %67 = vector.extract_strided_slice %10 {offsets = [0, 24], sizes = [8, 8], strides = [1, 1]} : vector<8x32xf32> to vector<8x8xf32>
    %68 = vector.extract_strided_slice %11 {offsets = [0, 24], sizes = [8, 8], strides = [1, 1]} : vector<8x32xf32> to vector<8x8xf32>
    %cst_32 = arith.constant dense<0.000000e+00> : vector<8x8xf32>
    %69 = tpu.matmul %66, %67, %cst_32 {dimension_numbers = #tpu.dot_dimension_numbers<[1], [1], [0], [0], [0, 0, 1, 0], [], []>} : vector<8x8xf32>, vector<8x8xf32>, vector<8x8xf32> -> vector<8x8xf32>
    %cst_33 = arith.constant 0.353553385 : f32
    %70 = vector.broadcast %cst_33 : f32 to vector<8x8xf32>
    %71 = arith.mulf %69, %70 : vector<8x8xf32>
    %cst_34 = arith.constant dense<0xFF800000> : vector<8xf32>
    %72 = vector.multi_reduction <maximumf>, %71, %cst_34 [1] : vector<8x8xf32> to vector<8xf32>
    %73 = vector.shape_cast %72 : vector<8xf32> to vector<8x1xf32>
    %74 = vector.broadcast %73 : vector<8x1xf32> to vector<8x8xf32>
    %75 = arith.subf %71, %74 : vector<8x8xf32>
    %76 = math.exp %75 : vector<8x8xf32>
    %cst_35 = arith.constant dense<0.000000e+00> : vector<8xf32>
    %77 = vector.multi_reduction <add>, %76, %cst_35 [1] : vector<8x8xf32> to vector<8xf32>
    %78 = vector.shape_cast %77 : vector<8xf32> to vector<8x1xf32>
    %79 = tpu.reciprocal %78 {approx = true} : vector<8x1xf32> -> vector<8x1xf32>
    %80 = vector.broadcast %79 : vector<8x1xf32> to vector<8x8xf32>
    %81 = arith.mulf %76, %80 : vector<8x8xf32>
    %cst_36 = arith.constant dense<0.000000e+00> : vector<8x8xf32>
    %82 = tpu.matmul %81, %68, %cst_36 {dimension_numbers = #tpu.dot_dimension_numbers<[1], [0], [0], [1], [0, 0, 1, 1], [], []>} : vector<8x8xf32>, vector<8x8xf32>, vector<8x8xf32> -> vector<8x8xf32>
    %c0_37 = arith.constant 0 : index
    %c24 = arith.constant 24 : index
    %83 = vector.load %arg21[%c0_37, %c24] : memref<8x32xf32, #tpu.memory_space<vmem>>, vector<8x8xf32>
    tpu.vector_store %arg21[%c0_37, %c24], %82 {strides = array<i32>} : memref<8x32xf32, #tpu.memory_space<vmem>>, vector<8x8xf32>,
    %c0_38 = arith.constant 0 : index
    %c0_39 = arith.constant 0 : index
    %84 = vector.load %arg21[%c0_38, %c0_39] : memref<8x32xf32, #tpu.memory_space<vmem>>, vector<8x32xf32>
    %cst_40 = arith.constant dense<0.000000e+00> : vector<8x32xf32>
    %85 = tpu.matmul %84, %5, %cst_40 {dimension_numbers = #tpu.dot_dimension_numbers<[1], [0], [0], [1], [0, 0, 1, 1], [], []>} : vector<8x32xf32>, vector<32x32xf32>, vector<8x32xf32> -> vector<8x32xf32>
    %c0_41 = arith.constant 0 : index
    %c0_42 = arith.constant 0 : index
    %86 = vector.load %arg22[%c0_41, %c0_42] : memref<16x32xf32, #tpu.memory_space<vmem>>, vector<8x32xf32>
    tpu.vector_store %arg22[%c0_41, %c0_42], %85 {strides = array<i32>} : memref<16x32xf32, #tpu.memory_space<vmem>>, vector<8x32xf32>,
    %87 = vector.extract_strided_slice %6 {offsets = [8, 0], sizes = [8, 32], strides = [1, 1]} : vector<16x32xf32> to vector<8x32xf32>
    %88 = vector.extract_strided_slice %7 {offsets = [8, 0], sizes = [8, 32], strides = [1, 1]} : vector<16x32xf32> to vector<8x32xf32>
    %89 = vector.extract_strided_slice %8 {offsets = [8, 0], sizes = [8, 32], strides = [1, 1]} : vector<16x32xf32> to vector<8x32xf32>
    %90 = vector.extract_strided_slice %87 {offsets = [0, 0], sizes = [8, 8], strides = [1, 1]} : vector<8x32xf32> to vector<8x8xf32>
    %91 = vector.extract_strided_slice %88 {offsets = [0, 0], sizes = [8, 8], strides = [1, 1]} : vector<8x32xf32> to vector<8x8xf32>
    %92 = vector.extract_strided_slice %89 {offsets = [0, 0], sizes = [8, 8], strides = [1, 1]} : vector<8x32xf32> to vector<8x8xf32>
    %cst_43 = arith.constant dense<0.000000e+00> : vector<8x8xf32>
    %93 = tpu.matmul %90, %91, %cst_43 {dimension_numbers = #tpu.dot_dimension_numbers<[1], [1], [0], [0], [0, 0, 1, 0], [], []>} : vector<8x8xf32>, vector<8x8xf32>, vector<8x8xf32> -> vector<8x8xf32>
    %cst_44 = arith.constant 0.353553385 : f32
    %94 = vector.broadcast %cst_44 : f32 to vector<8x8xf32>
    %95 = arith.mulf %93, %94 : vector<8x8xf32>
    %cst_45 = arith.constant dense<0xFF800000> : vector<8xf32>
    %96 = vector.multi_reduction <maximumf>, %95, %cst_45 [1] : vector<8x8xf32> to vector<8xf32>
    %97 = vector.shape_cast %96 : vector<8xf32> to vector<8x1xf32>
    %98 = vector.broadcast %97 : vector<8x1xf32> to vector<8x8xf32>
    %99 = arith.subf %95, %98 : vector<8x8xf32>
    %100 = math.exp %99 : vector<8x8xf32>
    %cst_46 = arith.constant dense<0.000000e+00> : vector<8xf32>
    %101 = vector.multi_reduction <add>, %100, %cst_46 [1] : vector<8x8xf32> to vector<8xf32>
    %102 = vector.shape_cast %101 : vector<8xf32> to vector<8x1xf32>
    %103 = tpu.reciprocal %102 {approx = true} : vector<8x1xf32> -> vector<8x1xf32>
    %104 = vector.broadcast %103 : vector<8x1xf32> to vector<8x8xf32>
    %105 = arith.mulf %100, %104 : vector<8x8xf32>
    %cst_47 = arith.constant dense<0.000000e+00> : vector<8x8xf32>
    %106 = tpu.matmul %105, %92, %cst_47 {dimension_numbers = #tpu.dot_dimension_numbers<[1], [0], [0], [1], [0, 0, 1, 1], [], []>} : vector<8x8xf32>, vector<8x8xf32>, vector<8x8xf32> -> vector<8x8xf32>
    %c0_48 = arith.constant 0 : index
    %c0_49 = arith.constant 0 : index
    %107 = vector.load %arg21[%c0_48, %c0_49] : memref<8x32xf32, #tpu.memory_space<vmem>>, vector<8x8xf32>
    tpu.vector_store %arg21[%c0_48, %c0_49], %106 {strides = array<i32>} : memref<8x32xf32, #tpu.memory_space<vmem>>, vector<8x8xf32>,
    %108 = vector.extract_strided_slice %87 {offsets = [0, 8], sizes = [8, 8], strides = [1, 1]} : vector<8x32xf32> to vector<8x8xf32>
    %109 = vector.extract_strided_slice %88 {offsets = [0, 8], sizes = [8, 8], strides = [1, 1]} : vector<8x32xf32> to vector<8x8xf32>
    %110 = vector.extract_strided_slice %89 {offsets = [0, 8], sizes = [8, 8], strides = [1, 1]} : vector<8x32xf32> to vector<8x8xf32>
    %cst_50 = arith.constant dense<0.000000e+00> : vector<8x8xf32>
    %111 = tpu.matmul %108, %109, %cst_50 {dimension_numbers = #tpu.dot_dimension_numbers<[1], [1], [0], [0], [0, 0, 1, 0], [], []>} : vector<8x8xf32>, vector<8x8xf32>, vector<8x8xf32> -> vector<8x8xf32>
    %cst_51 = arith.constant 0.353553385 : f32
    %112 = vector.broadcast %cst_51 : f32 to vector<8x8xf32>
    %113 = arith.mulf %111, %112 : vector<8x8xf32>
    %cst_52 = arith.constant dense<0xFF800000> : vector<8xf32>
    %114 = vector.multi_reduction <maximumf>, %113, %cst_52 [1] : vector<8x8xf32> to vector<8xf32>
    %115 = vector.shape_cast %114 : vector<8xf32> to vector<8x1xf32>
    %116 = vector.broadcast %115 : vector<8x1xf32> to vector<8x8xf32>
    %117 = arith.subf %113, %116 : vector<8x8xf32>
    %118 = math.exp %117 : vector<8x8xf32>
    %cst_53 = arith.constant dense<0.000000e+00> : vector<8xf32>
    %119 = vector.multi_reduction <add>, %118, %cst_53 [1] : vector<8x8xf32> to vector<8xf32>
    %120 = vector.shape_cast %119 : vector<8xf32> to vector<8x1xf32>
    %121 = tpu.reciprocal %120 {approx = true} : vector<8x1xf32> -> vector<8x1xf32>
    %122 = vector.broadcast %121 : vector<8x1xf32> to vector<8x8xf32>
    %123 = arith.mulf %118, %122 : vector<8x8xf32>
    %cst_54 = arith.constant dense<0.000000e+00> : vector<8x8xf32>
    %124 = tpu.matmul %123, %110, %cst_54 {dimension_numbers = #tpu.dot_dimension_numbers<[1], [0], [0], [1], [0, 0, 1, 1], [], []>} : vector<8x8xf32>, vector<8x8xf32>, vector<8x8xf32> -> vector<8x8xf32>
    %c0_55 = arith.constant 0 : index
    %c8_56 = arith.constant 8 : index
    %125 = vector.load %arg21[%c0_55, %c8_56] : memref<8x32xf32, #tpu.memory_space<vmem>>, vector<8x8xf32>
    tpu.vector_store %arg21[%c0_55, %c8_56], %124 {strides = array<i32>} : memref<8x32xf32, #tpu.memory_space<vmem>>, vector<8x8xf32>,
    %126 = vector.extract_strided_slice %87 {offsets = [0, 16], sizes = [8, 8], strides = [1, 1]} : vector<8x32xf32> to vector<8x8xf32>
    %127 = vector.extract_strided_slice %88 {offsets = [0, 16], sizes = [8, 8], strides = [1, 1]} : vector<8x32xf32> to vector<8x8xf32>
    %128 = vector.extract_strided_slice %89 {offsets = [0, 16], sizes = [8, 8], strides = [1, 1]} : vector<8x32xf32> to vector<8x8xf32>
    %cst_57 = arith.constant dense<0.000000e+00> : vector<8x8xf32>
    %129 = tpu.matmul %126, %127, %cst_57 {dimension_numbers = #tpu.dot_dimension_numbers<[1], [1], [0], [0], [0, 0, 1, 0], [], []>} : vector<8x8xf32>, vector<8x8xf32>, vector<8x8xf32> -> vector<8x8xf32>
    %cst_58 = arith.constant 0.353553385 : f32
    %130 = vector.broadcast %cst_58 : f32 to vector<8x8xf32>
    %131 = arith.mulf %129, %130 : vector<8x8xf32>
    %cst_59 = arith.constant dense<0xFF800000> : vector<8xf32>
    %132 = vector.multi_reduction <maximumf>, %131, %cst_59 [1] : vector<8x8xf32> to vector<8xf32>
    %133 = vector.shape_cast %132 : vector<8xf32> to vector<8x1xf32>
    %134 = vector.broadcast %133 : vector<8x1xf32> to vector<8x8xf32>
    %135 = arith.subf %131, %134 : vector<8x8xf32>
    %136 = math.exp %135 : vector<8x8xf32>
    %cst_60 = arith.constant dense<0.000000e+00> : vector<8xf32>
    %137 = vector.multi_reduction <add>, %136, %cst_60 [1] : vector<8x8xf32> to vector<8xf32>
    %138 = vector.shape_cast %137 : vector<8xf32> to vector<8x1xf32>
    %139 = tpu.reciprocal %138 {approx = true} : vector<8x1xf32> -> vector<8x1xf32>
    %140 = vector.broadcast %139 : vector<8x1xf32> to vector<8x8xf32>
    %141 = arith.mulf %136, %140 : vector<8x8xf32>
    %cst_61 = arith.constant dense<0.000000e+00> : vector<8x8xf32>
    %142 = tpu.matmul %141, %128, %cst_61 {dimension_numbers = #tpu.dot_dimension_numbers<[1], [0], [0], [1], [0, 0, 1, 1], [], []>} : vector<8x8xf32>, vector<8x8xf32>, vector<8x8xf32> -> vector<8x8xf32>
    %c0_62 = arith.constant 0 : index
    %c16_63 = arith.constant 16 : index
    %143 = vector.load %arg21[%c0_62, %c16_63] : memref<8x32xf32, #tpu.memory_space<vmem>>, vector<8x8xf32>
    tpu.vector_store %arg21[%c0_62, %c16_63], %142 {strides = array<i32>} : memref<8x32xf32, #tpu.memory_space<vmem>>, vector<8x8xf32>,
    %144 = vector.extract_strided_slice %87 {offsets = [0, 24], sizes = [8, 8], strides = [1, 1]} : vector<8x32xf32> to vector<8x8xf32>
    %145 = vector.extract_strided_slice %88 {offsets = [0, 24], sizes = [8, 8], strides = [1, 1]} : vector<8x32xf32> to vector<8x8xf32>
    %146 = vector.extract_strided_slice %89 {offsets = [0, 24], sizes = [8, 8], strides = [1, 1]} : vector<8x32xf32> to vector<8x8xf32>
    %cst_64 = arith.constant dense<0.000000e+00> : vector<8x8xf32>
    %147 = tpu.matmul %144, %145, %cst_64 {dimension_numbers = #tpu.dot_dimension_numbers<[1], [1], [0], [0], [0, 0, 1, 0], [], []>} : vector<8x8xf32>, vector<8x8xf32>, vector<8x8xf32> -> vector<8x8xf32>
    %cst_65 = arith.constant 0.353553385 : f32
    %148 = vector.broadcast %cst_65 : f32 to vector<8x8xf32>
    %149 = arith.mulf %147, %148 : vector<8x8xf32>
    %cst_66 = arith.constant dense<0xFF800000> : vector<8xf32>
    %150 = vector.multi_reduction <maximumf>, %149, %cst_66 [1] : vector<8x8xf32> to vector<8xf32>
    %151 = vector.shape_cast %150 : vector<8xf32> to vector<8x1xf32>
    %152 = vector.broadcast %151 : vector<8x1xf32> to vector<8x8xf32>
    %153 = arith.subf %149, %152 : vector<8x8xf32>
    %154 = math.exp %153 : vector<8x8xf32>
    %cst_67 = arith.constant dense<0.000000e+00> : vector<8xf32>
    %155 = vector.multi_reduction <add>, %154, %cst_67 [1] : vector<8x8xf32> to vector<8xf32>
    %156 = vector.shape_cast %155 : vector<8xf32> to vector<8x1xf32>
    %157 = tpu.reciprocal %156 {approx = true} : vector<8x1xf32> -> vector<8x1xf32>
    %158 = vector.broadcast %157 : vector<8x1xf32> to vector<8x8xf32>
    %159 = arith.mulf %154, %158 : vector<8x8xf32>
    %cst_68 = arith.constant dense<0.000000e+00> : vector<8x8xf32>
    %160 = tpu.matmul %159, %146, %cst_68 {dimension_numbers = #tpu.dot_dimension_numbers<[1], [0], [0], [1], [0, 0, 1, 1], [], []>} : vector<8x8xf32>, vector<8x8xf32>, vector<8x8xf32> -> vector<8x8xf32>
    %c0_69 = arith.constant 0 : index
    %c24_70 = arith.constant 24 : index
    %161 = vector.load %arg21[%c0_69, %c24_70] : memref<8x32xf32, #tpu.memory_space<vmem>>, vector<8x8xf32>
    tpu.vector_store %arg21[%c0_69, %c24_70], %160 {strides = array<i32>} : memref<8x32xf32, #tpu.memory_space<vmem>>, vector<8x8xf32>,
    %c0_71 = arith.constant 0 : index
    %c0_72 = arith.constant 0 : index
    %162 = vector.load %arg21[%c0_71, %c0_72] : memref<8x32xf32, #tpu.memory_space<vmem>>, vector<8x32xf32>
    %cst_73 = arith.constant dense<0.000000e+00> : vector<8x32xf32>
    %163 = tpu.matmul %162, %5, %cst_73 {dimension_numbers = #tpu.dot_dimension_numbers<[1], [0], [0], [1], [0, 0, 1, 1], [], []>} : vector<8x32xf32>, vector<32x32xf32>, vector<8x32xf32> -> vector<8x32xf32>
    %c8_74 = arith.constant 8 : index
    %c0_75 = arith.constant 0 : index
    %164 = vector.load %arg22[%c8_74, %c0_75] : memref<16x32xf32, #tpu.memory_space<vmem>>, vector<8x32xf32>
    tpu.vector_store %arg22[%c8_74, %c0_75], %163 {strides = array<i32>} : memref<16x32xf32, #tpu.memory_space<vmem>>, vector<8x32xf32>,
    %c0_76 = arith.constant 0 : index
    %c0_77 = arith.constant 0 : index
    %165 = vector.load %arg22[%c0_76, %c0_77] : memref<16x32xf32, #tpu.memory_space<vmem>>, vector<16x32xf32>
    %c0_78 = arith.constant 0 : index
    %c0_79 = arith.constant 0 : index
    %166 = vector.load %arg6[%c0_78, %c0_79] : memref<1x32xf32, #tpu.memory_space<vmem>>, vector<1x32xf32>
    %c0_80 = arith.constant 0 : index
    %c0_81 = arith.constant 0 : index
    %167 = vector.load %arg7[%c0_80, %c0_81] : memref<1x32xf32, #tpu.memory_space<vmem>>, vector<1x32xf32>
    %168 = arith.addf %0, %165 : vector<16x32xf32>
    %cst_82 = arith.constant dense<0.000000e+00> : vector<16xf32>
    %169 = vector.multi_reduction <add>, %168, %cst_82 [1] : vector<16x32xf32> to vector<16xf32>
    %170 = vector.shape_cast %169 : vector<16xf32> to vector<16x1xf32>
    %cst_83 = arith.constant 3.200000e+01 : f32
    %171 = vector.broadcast %cst_83 : f32 to vector<16x1xf32>
    %172 = arith.divf %170, %171 : vector<16x1xf32>
    %173 = vector.broadcast %172 : vector<16x1xf32> to vector<16x32xf32>
    %174 = arith.subf %168, %173 : vector<16x32xf32>
    %175 = arith.mulf %174, %174 : vector<16x32xf32>
    %cst_84 = arith.constant dense<0.000000e+00> : vector<16xf32>
    %176 = vector.multi_reduction <add>, %175, %cst_84 [1] : vector<16x32xf32> to vector<16xf32>
    %177 = vector.shape_cast %176 : vector<16xf32> to vector<16x1xf32>
    %cst_85 = arith.constant 3.200000e+01 : f32
    %178 = vector.broadcast %cst_85 : f32 to vector<16x1xf32>
    %179 = arith.divf %177, %178 : vector<16x1xf32>
    %180 = vector.broadcast %172 : vector<16x1xf32> to vector<16x32xf32>
    %181 = arith.subf %168, %180 : vector<16x32xf32>
    %cst_86 = arith.constant 9.99999974E-6 : f32
    %182 = vector.broadcast %cst_86 : f32 to vector<16x1xf32>
    %183 = arith.addf %179, %182 : vector<16x1xf32>
    %184 = math.rsqrt %183 : vector<16x1xf32>
    %185 = vector.broadcast %184 : vector<16x1xf32> to vector<16x32xf32>
    %186 = arith.mulf %181, %185 : vector<16x32xf32>
    %187 = vector.broadcast %166 : vector<1x32xf32> to vector<16x32xf32>
    %188 = arith.mulf %186, %187 : vector<16x32xf32>
    %189 = vector.broadcast %167 : vector<1x32xf32> to vector<16x32xf32>
    %190 = arith.addf %188, %189 : vector<16x32xf32>
    %c0_87 = arith.constant 0 : index
    %c0_88 = arith.constant 0 : index
    %191 = vector.load %arg8[%c0_87, %c0_88] : memref<32x32xf32, #tpu.memory_space<vmem>>, vector<32x32xf32>
    %c0_89 = arith.constant 0 : index
    %c0_90 = arith.constant 0 : index
    %192 = vector.load %arg9[%c0_89, %c0_90] : memref<32x32xf32, #tpu.memory_space<vmem>>, vector<32x32xf32>
    %c0_91 = arith.constant 0 : index
    %c0_92 = arith.constant 0 : index
    %193 = vector.load %arg10[%c0_91, %c0_92] : memref<32x32xf32, #tpu.memory_space<vmem>>, vector<32x32xf32>
    %c0_93 = arith.constant 0 : index
    %c0_94 = arith.constant 0 : index
    %194 = vector.load %arg11[%c0_93, %c0_94] : memref<32x32xf32, #tpu.memory_space<vmem>>, vector<32x32xf32>
    %cst_95 = arith.constant dense<0.000000e+00> : vector<16x32xf32>
    %195 = tpu.matmul %190, %191, %cst_95 {dimension_numbers = #tpu.dot_dimension_numbers<[1], [0], [0], [1], [0, 0, 1, 1], [], []>} : vector<16x32xf32>, vector<32x32xf32>, vector<16x32xf32> -> vector<16x32xf32>
    %cst_96 = arith.constant dense<0.000000e+00> : vector<16x32xf32>
    %196 = tpu.matmul %1, %192, %cst_96 {dimension_numbers = #tpu.dot_dimension_numbers<[1], [0], [0], [1], [0, 0, 1, 1], [], []>} : vector<16x32xf32>, vector<32x32xf32>, vector<16x32xf32> -> vector<16x32xf32>
    %cst_97 = arith.constant dense<0.000000e+00> : vector<16x32xf32>
    %197 = tpu.matmul %1, %193, %cst_97 {dimension_numbers = #tpu.dot_dimension_numbers<[1], [0], [0], [1], [0, 0, 1, 1], [], []>} : vector<16x32xf32>, vector<32x32xf32>, vector<16x32xf32> -> vector<16x32xf32>
    %198 = vector.extract_strided_slice %195 {offsets = [0, 0], sizes = [8, 32], strides = [1, 1]} : vector<16x32xf32> to vector<8x32xf32>
    %199 = vector.extract_strided_slice %196 {offsets = [0, 0], sizes = [8, 32], strides = [1, 1]} : vector<16x32xf32> to vector<8x32xf32>
    %200 = vector.extract_strided_slice %197 {offsets = [0, 0], sizes = [8, 32], strides = [1, 1]} : vector<16x32xf32> to vector<8x32xf32>
    %201 = vector.extract_strided_slice %198 {offsets = [0, 0], sizes = [8, 8], strides = [1, 1]} : vector<8x32xf32> to vector<8x8xf32>
    %202 = vector.extract_strided_slice %199 {offsets = [0, 0], sizes = [8, 8], strides = [1, 1]} : vector<8x32xf32> to vector<8x8xf32>
    %203 = vector.extract_strided_slice %200 {offsets = [0, 0], sizes = [8, 8], strides = [1, 1]} : vector<8x32xf32> to vector<8x8xf32>
    %cst_98 = arith.constant dense<0.000000e+00> : vector<8x8xf32>
    %204 = tpu.matmul %201, %202, %cst_98 {dimension_numbers = #tpu.dot_dimension_numbers<[1], [1], [0], [0], [0, 0, 1, 0], [], []>} : vector<8x8xf32>, vector<8x8xf32>, vector<8x8xf32> -> vector<8x8xf32>
    %cst_99 = arith.constant 0.353553385 : f32
    %205 = vector.broadcast %cst_99 : f32 to vector<8x8xf32>
    %206 = arith.mulf %204, %205 : vector<8x8xf32>
    %cst_100 = arith.constant dense<0xFF800000> : vector<8xf32>
    %207 = vector.multi_reduction <maximumf>, %206, %cst_100 [1] : vector<8x8xf32> to vector<8xf32>
    %208 = vector.shape_cast %207 : vector<8xf32> to vector<8x1xf32>
    %209 = vector.broadcast %208 : vector<8x1xf32> to vector<8x8xf32>
    %210 = arith.subf %206, %209 : vector<8x8xf32>
    %211 = math.exp %210 : vector<8x8xf32>
    %cst_101 = arith.constant dense<0.000000e+00> : vector<8xf32>
    %212 = vector.multi_reduction <add>, %211, %cst_101 [1] : vector<8x8xf32> to vector<8xf32>
    %213 = vector.shape_cast %212 : vector<8xf32> to vector<8x1xf32>
    %214 = tpu.reciprocal %213 {approx = true} : vector<8x1xf32> -> vector<8x1xf32>
    %215 = vector.broadcast %214 : vector<8x1xf32> to vector<8x8xf32>
    %216 = arith.mulf %211, %215 : vector<8x8xf32>
    %cst_102 = arith.constant dense<0.000000e+00> : vector<8x8xf32>
    %217 = tpu.matmul %216, %203, %cst_102 {dimension_numbers = #tpu.dot_dimension_numbers<[1], [0], [0], [1], [0, 0, 1, 1], [], []>} : vector<8x8xf32>, vector<8x8xf32>, vector<8x8xf32> -> vector<8x8xf32>
    %c0_103 = arith.constant 0 : index
    %c0_104 = arith.constant 0 : index
    %218 = vector.load %arg21[%c0_103, %c0_104] : memref<8x32xf32, #tpu.memory_space<vmem>>, vector<8x8xf32>
    tpu.vector_store %arg21[%c0_103, %c0_104], %217 {strides = array<i32>} : memref<8x32xf32, #tpu.memory_space<vmem>>, vector<8x8xf32>,
    %219 = vector.extract_strided_slice %198 {offsets = [0, 8], sizes = [8, 8], strides = [1, 1]} : vector<8x32xf32> to vector<8x8xf32>
    %220 = vector.extract_strided_slice %199 {offsets = [0, 8], sizes = [8, 8], strides = [1, 1]} : vector<8x32xf32> to vector<8x8xf32>
    %221 = vector.extract_strided_slice %200 {offsets = [0, 8], sizes = [8, 8], strides = [1, 1]} : vector<8x32xf32> to vector<8x8xf32>
    %cst_105 = arith.constant dense<0.000000e+00> : vector<8x8xf32>
    %222 = tpu.matmul %219, %220, %cst_105 {dimension_numbers = #tpu.dot_dimension_numbers<[1], [1], [0], [0], [0, 0, 1, 0], [], []>} : vector<8x8xf32>, vector<8x8xf32>, vector<8x8xf32> -> vector<8x8xf32>
    %cst_106 = arith.constant 0.353553385 : f32
    %223 = vector.broadcast %cst_106 : f32 to vector<8x8xf32>
    %224 = arith.mulf %222, %223 : vector<8x8xf32>
    %cst_107 = arith.constant dense<0xFF800000> : vector<8xf32>
    %225 = vector.multi_reduction <maximumf>, %224, %cst_107 [1] : vector<8x8xf32> to vector<8xf32>
    %226 = vector.shape_cast %225 : vector<8xf32> to vector<8x1xf32>
    %227 = vector.broadcast %226 : vector<8x1xf32> to vector<8x8xf32>
    %228 = arith.subf %224, %227 : vector<8x8xf32>
    %229 = math.exp %228 : vector<8x8xf32>
    %cst_108 = arith.constant dense<0.000000e+00> : vector<8xf32>
    %230 = vector.multi_reduction <add>, %229, %cst_108 [1] : vector<8x8xf32> to vector<8xf32>
    %231 = vector.shape_cast %230 : vector<8xf32> to vector<8x1xf32>
    %232 = tpu.reciprocal %231 {approx = true} : vector<8x1xf32> -> vector<8x1xf32>
    %233 = vector.broadcast %232 : vector<8x1xf32> to vector<8x8xf32>
    %234 = arith.mulf %229, %233 : vector<8x8xf32>
    %cst_109 = arith.constant dense<0.000000e+00> : vector<8x8xf32>
    %235 = tpu.matmul %234, %221, %cst_109 {dimension_numbers = #tpu.dot_dimension_numbers<[1], [0], [0], [1], [0, 0, 1, 1], [], []>} : vector<8x8xf32>, vector<8x8xf32>, vector<8x8xf32> -> vector<8x8xf32>
    %c0_110 = arith.constant 0 : index
    %c8_111 = arith.constant 8 : index
    %236 = vector.load %arg21[%c0_110, %c8_111] : memref<8x32xf32, #tpu.memory_space<vmem>>, vector<8x8xf32>
    tpu.vector_store %arg21[%c0_110, %c8_111], %235 {strides = array<i32>} : memref<8x32xf32, #tpu.memory_space<vmem>>, vector<8x8xf32>,
    %237 = vector.extract_strided_slice %198 {offsets = [0, 16], sizes = [8, 8], strides = [1, 1]} : vector<8x32xf32> to vector<8x8xf32>
    %238 = vector.extract_strided_slice %199 {offsets = [0, 16], sizes = [8, 8], strides = [1, 1]} : vector<8x32xf32> to vector<8x8xf32>
    %239 = vector.extract_strided_slice %200 {offsets = [0, 16], sizes = [8, 8], strides = [1, 1]} : vector<8x32xf32> to vector<8x8xf32>
    %cst_112 = arith.constant dense<0.000000e+00> : vector<8x8xf32>
    %240 = tpu.matmul %237, %238, %cst_112 {dimension_numbers = #tpu.dot_dimension_numbers<[1], [1], [0], [0], [0, 0, 1, 0], [], []>} : vector<8x8xf32>, vector<8x8xf32>, vector<8x8xf32> -> vector<8x8xf32>
    %cst_113 = arith.constant 0.353553385 : f32
    %241 = vector.broadcast %cst_113 : f32 to vector<8x8xf32>
    %242 = arith.mulf %240, %241 : vector<8x8xf32>
    %cst_114 = arith.constant dense<0xFF800000> : vector<8xf32>
    %243 = vector.multi_reduction <maximumf>, %242, %cst_114 [1] : vector<8x8xf32> to vector<8xf32>
    %244 = vector.shape_cast %243 : vector<8xf32> to vector<8x1xf32>
    %245 = vector.broadcast %244 : vector<8x1xf32> to vector<8x8xf32>
    %246 = arith.subf %242, %245 : vector<8x8xf32>
    %247 = math.exp %246 : vector<8x8xf32>
    %cst_115 = arith.constant dense<0.000000e+00> : vector<8xf32>
    %248 = vector.multi_reduction <add>, %247, %cst_115 [1] : vector<8x8xf32> to vector<8xf32>
    %249 = vector.shape_cast %248 : vector<8xf32> to vector<8x1xf32>
    %250 = tpu.reciprocal %249 {approx = true} : vector<8x1xf32> -> vector<8x1xf32>
    %251 = vector.broadcast %250 : vector<8x1xf32> to vector<8x8xf32>
    %252 = arith.mulf %247, %251 : vector<8x8xf32>
    %cst_116 = arith.constant dense<0.000000e+00> : vector<8x8xf32>
    %253 = tpu.matmul %252, %239, %cst_116 {dimension_numbers = #tpu.dot_dimension_numbers<[1], [0], [0], [1], [0, 0, 1, 1], [], []>} : vector<8x8xf32>, vector<8x8xf32>, vector<8x8xf32> -> vector<8x8xf32>
    %c0_117 = arith.constant 0 : index
    %c16_118 = arith.constant 16 : index
    %254 = vector.load %arg21[%c0_117, %c16_118] : memref<8x32xf32, #tpu.memory_space<vmem>>, vector<8x8xf32>
    tpu.vector_store %arg21[%c0_117, %c16_118], %253 {strides = array<i32>} : memref<8x32xf32, #tpu.memory_space<vmem>>, vector<8x8xf32>,
    %255 = vector.extract_strided_slice %198 {offsets = [0, 24], sizes = [8, 8], strides = [1, 1]} : vector<8x32xf32> to vector<8x8xf32>
    %256 = vector.extract_strided_slice %199 {offsets = [0, 24], sizes = [8, 8], strides = [1, 1]} : vector<8x32xf32> to vector<8x8xf32>
    %257 = vector.extract_strided_slice %200 {offsets = [0, 24], sizes = [8, 8], strides = [1, 1]} : vector<8x32xf32> to vector<8x8xf32>
    %cst_119 = arith.constant dense<0.000000e+00> : vector<8x8xf32>
    %258 = tpu.matmul %255, %256, %cst_119 {dimension_numbers = #tpu.dot_dimension_numbers<[1], [1], [0], [0], [0, 0, 1, 0], [], []>} : vector<8x8xf32>, vector<8x8xf32>, vector<8x8xf32> -> vector<8x8xf32>
    %cst_120 = arith.constant 0.353553385 : f32
    %259 = vector.broadcast %cst_120 : f32 to vector<8x8xf32>
    %260 = arith.mulf %258, %259 : vector<8x8xf32>
    %cst_121 = arith.constant dense<0xFF800000> : vector<8xf32>
    %261 = vector.multi_reduction <maximumf>, %260, %cst_121 [1] : vector<8x8xf32> to vector<8xf32>
    %262 = vector.shape_cast %261 : vector<8xf32> to vector<8x1xf32>
    %263 = vector.broadcast %262 : vector<8x1xf32> to vector<8x8xf32>
    %264 = arith.subf %260, %263 : vector<8x8xf32>
    %265 = math.exp %264 : vector<8x8xf32>
    %cst_122 = arith.constant dense<0.000000e+00> : vector<8xf32>
    %266 = vector.multi_reduction <add>, %265, %cst_122 [1] : vector<8x8xf32> to vector<8xf32>
    %267 = vector.shape_cast %266 : vector<8xf32> to vector<8x1xf32>
    %268 = tpu.reciprocal %267 {approx = true} : vector<8x1xf32> -> vector<8x1xf32>
    %269 = vector.broadcast %268 : vector<8x1xf32> to vector<8x8xf32>
    %270 = arith.mulf %265, %269 : vector<8x8xf32>
    %cst_123 = arith.constant dense<0.000000e+00> : vector<8x8xf32>
    %271 = tpu.matmul %270, %257, %cst_123 {dimension_numbers = #tpu.dot_dimension_numbers<[1], [0], [0], [1], [0, 0, 1, 1], [], []>} : vector<8x8xf32>, vector<8x8xf32>, vector<8x8xf32> -> vector<8x8xf32>
    %c0_124 = arith.constant 0 : index
    %c24_125 = arith.constant 24 : index
    %272 = vector.load %arg21[%c0_124, %c24_125] : memref<8x32xf32, #tpu.memory_space<vmem>>, vector<8x8xf32>
    tpu.vector_store %arg21[%c0_124, %c24_125], %271 {strides = array<i32>} : memref<8x32xf32, #tpu.memory_space<vmem>>, vector<8x8xf32>,
    %c0_126 = arith.constant 0 : index
    %c0_127 = arith.constant 0 : index
    %273 = vector.load %arg21[%c0_126, %c0_127] : memref<8x32xf32, #tpu.memory_space<vmem>>, vector<8x32xf32>
    %cst_128 = arith.constant dense<0.000000e+00> : vector<8x32xf32>
    %274 = tpu.matmul %273, %194, %cst_128 {dimension_numbers = #tpu.dot_dimension_numbers<[1], [0], [0], [1], [0, 0, 1, 1], [], []>} : vector<8x32xf32>, vector<32x32xf32>, vector<8x32xf32> -> vector<8x32xf32>
    %c0_129 = arith.constant 0 : index
    %c0_130 = arith.constant 0 : index
    %275 = vector.load %arg22[%c0_129, %c0_130] : memref<16x32xf32, #tpu.memory_space<vmem>>, vector<8x32xf32>
    tpu.vector_store %arg22[%c0_129, %c0_130], %274 {strides = array<i32>} : memref<16x32xf32, #tpu.memory_space<vmem>>, vector<8x32xf32>,
    %276 = vector.extract_strided_slice %195 {offsets = [8, 0], sizes = [8, 32], strides = [1, 1]} : vector<16x32xf32> to vector<8x32xf32>
    %277 = vector.extract_strided_slice %196 {offsets = [8, 0], sizes = [8, 32], strides = [1, 1]} : vector<16x32xf32> to vector<8x32xf32>
    %278 = vector.extract_strided_slice %197 {offsets = [8, 0], sizes = [8, 32], strides = [1, 1]} : vector<16x32xf32> to vector<8x32xf32>
    %279 = vector.extract_strided_slice %276 {offsets = [0, 0], sizes = [8, 8], strides = [1, 1]} : vector<8x32xf32> to vector<8x8xf32>
    %280 = vector.extract_strided_slice %277 {offsets = [0, 0], sizes = [8, 8], strides = [1, 1]} : vector<8x32xf32> to vector<8x8xf32>
    %281 = vector.extract_strided_slice %278 {offsets = [0, 0], sizes = [8, 8], strides = [1, 1]} : vector<8x32xf32> to vector<8x8xf32>
    %cst_131 = arith.constant dense<0.000000e+00> : vector<8x8xf32>
    %282 = tpu.matmul %279, %280, %cst_131 {dimension_numbers = #tpu.dot_dimension_numbers<[1], [1], [0], [0], [0, 0, 1, 0], [], []>} : vector<8x8xf32>, vector<8x8xf32>, vector<8x8xf32> -> vector<8x8xf32>
    %cst_132 = arith.constant 0.353553385 : f32
    %283 = vector.broadcast %cst_132 : f32 to vector<8x8xf32>
    %284 = arith.mulf %282, %283 : vector<8x8xf32>
    %cst_133 = arith.constant dense<0xFF800000> : vector<8xf32>
    %285 = vector.multi_reduction <maximumf>, %284, %cst_133 [1] : vector<8x8xf32> to vector<8xf32>
    %286 = vector.shape_cast %285 : vector<8xf32> to vector<8x1xf32>
    %287 = vector.broadcast %286 : vector<8x1xf32> to vector<8x8xf32>
    %288 = arith.subf %284, %287 : vector<8x8xf32>
    %289 = math.exp %288 : vector<8x8xf32>
    %cst_134 = arith.constant dense<0.000000e+00> : vector<8xf32>
    %290 = vector.multi_reduction <add>, %289, %cst_134 [1] : vector<8x8xf32> to vector<8xf32>
    %291 = vector.shape_cast %290 : vector<8xf32> to vector<8x1xf32>
    %292 = tpu.reciprocal %291 {approx = true} : vector<8x1xf32> -> vector<8x1xf32>
    %293 = vector.broadcast %292 : vector<8x1xf32> to vector<8x8xf32>
    %294 = arith.mulf %289, %293 : vector<8x8xf32>
    %cst_135 = arith.constant dense<0.000000e+00> : vector<8x8xf32>
    %295 = tpu.matmul %294, %281, %cst_135 {dimension_numbers = #tpu.dot_dimension_numbers<[1], [0], [0], [1], [0, 0, 1, 1], [], []>} : vector<8x8xf32>, vector<8x8xf32>, vector<8x8xf32> -> vector<8x8xf32>
    %c0_136 = arith.constant 0 : index
    %c0_137 = arith.constant 0 : index
    %296 = vector.load %arg21[%c0_136, %c0_137] : memref<8x32xf32, #tpu.memory_space<vmem>>, vector<8x8xf32>
    tpu.vector_store %arg21[%c0_136, %c0_137], %295 {strides = array<i32>} : memref<8x32xf32, #tpu.memory_space<vmem>>, vector<8x8xf32>,
    %297 = vector.extract_strided_slice %276 {offsets = [0, 8], sizes = [8, 8], strides = [1, 1]} : vector<8x32xf32> to vector<8x8xf32>
    %298 = vector.extract_strided_slice %277 {offsets = [0, 8], sizes = [8, 8], strides = [1, 1]} : vector<8x32xf32> to vector<8x8xf32>
    %299 = vector.extract_strided_slice %278 {offsets = [0, 8], sizes = [8, 8], strides = [1, 1]} : vector<8x32xf32> to vector<8x8xf32>
    %cst_138 = arith.constant dense<0.000000e+00> : vector<8x8xf32>
    %300 = tpu.matmul %297, %298, %cst_138 {dimension_numbers = #tpu.dot_dimension_numbers<[1], [1], [0], [0], [0, 0, 1, 0], [], []>} : vector<8x8xf32>, vector<8x8xf32>, vector<8x8xf32> -> vector<8x8xf32>
    %cst_139 = arith.constant 0.353553385 : f32
    %301 = vector.broadcast %cst_139 : f32 to vector<8x8xf32>
    %302 = arith.mulf %300, %301 : vector<8x8xf32>
    %cst_140 = arith.constant dense<0xFF800000> : vector<8xf32>
    %303 = vector.multi_reduction <maximumf>, %302, %cst_140 [1] : vector<8x8xf32> to vector<8xf32>
    %304 = vector.shape_cast %303 : vector<8xf32> to vector<8x1xf32>
    %305 = vector.broadcast %304 : vector<8x1xf32> to vector<8x8xf32>
    %306 = arith.subf %302, %305 : vector<8x8xf32>
    %307 = math.exp %306 : vector<8x8xf32>
    %cst_141 = arith.constant dense<0.000000e+00> : vector<8xf32>
    %308 = vector.multi_reduction <add>, %307, %cst_141 [1] : vector<8x8xf32> to vector<8xf32>
    %309 = vector.shape_cast %308 : vector<8xf32> to vector<8x1xf32>
    %310 = tpu.reciprocal %309 {approx = true} : vector<8x1xf32> -> vector<8x1xf32>
    %311 = vector.broadcast %310 : vector<8x1xf32> to vector<8x8xf32>
    %312 = arith.mulf %307, %311 : vector<8x8xf32>
    %cst_142 = arith.constant dense<0.000000e+00> : vector<8x8xf32>
    %313 = tpu.matmul %312, %299, %cst_142 {dimension_numbers = #tpu.dot_dimension_numbers<[1], [0], [0], [1], [0, 0, 1, 1], [], []>} : vector<8x8xf32>, vector<8x8xf32>, vector<8x8xf32> -> vector<8x8xf32>
    %c0_143 = arith.constant 0 : index
    %c8_144 = arith.constant 8 : index
    %314 = vector.load %arg21[%c0_143, %c8_144] : memref<8x32xf32, #tpu.memory_space<vmem>>, vector<8x8xf32>
    tpu.vector_store %arg21[%c0_143, %c8_144], %313 {strides = array<i32>} : memref<8x32xf32, #tpu.memory_space<vmem>>, vector<8x8xf32>,
    %315 = vector.extract_strided_slice %276 {offsets = [0, 16], sizes = [8, 8], strides = [1, 1]} : vector<8x32xf32> to vector<8x8xf32>
    %316 = vector.extract_strided_slice %277 {offsets = [0, 16], sizes = [8, 8], strides = [1, 1]} : vector<8x32xf32> to vector<8x8xf32>
    %317 = vector.extract_strided_slice %278 {offsets = [0, 16], sizes = [8, 8], strides = [1, 1]} : vector<8x32xf32> to vector<8x8xf32>
    %cst_145 = arith.constant dense<0.000000e+00> : vector<8x8xf32>
    %318 = tpu.matmul %315, %316, %cst_145 {dimension_numbers = #tpu.dot_dimension_numbers<[1], [1], [0], [0], [0, 0, 1, 0], [], []>} : vector<8x8xf32>, vector<8x8xf32>, vector<8x8xf32> -> vector<8x8xf32>
    %cst_146 = arith.constant 0.353553385 : f32
    %319 = vector.broadcast %cst_146 : f32 to vector<8x8xf32>
    %320 = arith.mulf %318, %319 : vector<8x8xf32>
    %cst_147 = arith.constant dense<0xFF800000> : vector<8xf32>
    %321 = vector.multi_reduction <maximumf>, %320, %cst_147 [1] : vector<8x8xf32> to vector<8xf32>
    %322 = vector.shape_cast %321 : vector<8xf32> to vector<8x1xf32>
    %323 = vector.broadcast %322 : vector<8x1xf32> to vector<8x8xf32>
    %324 = arith.subf %320, %323 : vector<8x8xf32>
    %325 = math.exp %324 : vector<8x8xf32>
    %cst_148 = arith.constant dense<0.000000e+00> : vector<8xf32>
    %326 = vector.multi_reduction <add>, %325, %cst_148 [1] : vector<8x8xf32> to vector<8xf32>
    %327 = vector.shape_cast %326 : vector<8xf32> to vector<8x1xf32>
    %328 = tpu.reciprocal %327 {approx = true} : vector<8x1xf32> -> vector<8x1xf32>
    %329 = vector.broadcast %328 : vector<8x1xf32> to vector<8x8xf32>
    %330 = arith.mulf %325, %329 : vector<8x8xf32>
    %cst_149 = arith.constant dense<0.000000e+00> : vector<8x8xf32>
    %331 = tpu.matmul %330, %317, %cst_149 {dimension_numbers = #tpu.dot_dimension_numbers<[1], [0], [0], [1], [0, 0, 1, 1], [], []>} : vector<8x8xf32>, vector<8x8xf32>, vector<8x8xf32> -> vector<8x8xf32>
    %c0_150 = arith.constant 0 : index
    %c16_151 = arith.constant 16 : index
    %332 = vector.load %arg21[%c0_150, %c16_151] : memref<8x32xf32, #tpu.memory_space<vmem>>, vector<8x8xf32>
    tpu.vector_store %arg21[%c0_150, %c16_151], %331 {strides = array<i32>} : memref<8x32xf32, #tpu.memory_space<vmem>>, vector<8x8xf32>,
    %333 = vector.extract_strided_slice %276 {offsets = [0, 24], sizes = [8, 8], strides = [1, 1]} : vector<8x32xf32> to vector<8x8xf32>
    %334 = vector.extract_strided_slice %277 {offsets = [0, 24], sizes = [8, 8], strides = [1, 1]} : vector<8x32xf32> to vector<8x8xf32>
    %335 = vector.extract_strided_slice %278 {offsets = [0, 24], sizes = [8, 8], strides = [1, 1]} : vector<8x32xf32> to vector<8x8xf32>
    %cst_152 = arith.constant dense<0.000000e+00> : vector<8x8xf32>
    %336 = tpu.matmul %333, %334, %cst_152 {dimension_numbers = #tpu.dot_dimension_numbers<[1], [1], [0], [0], [0, 0, 1, 0], [], []>} : vector<8x8xf32>, vector<8x8xf32>, vector<8x8xf32> -> vector<8x8xf32>
    %cst_153 = arith.constant 0.353553385 : f32
    %337 = vector.broadcast %cst_153 : f32 to vector<8x8xf32>
    %338 = arith.mulf %336, %337 : vector<8x8xf32>
    %cst_154 = arith.constant dense<0xFF800000> : vector<8xf32>
    %339 = vector.multi_reduction <maximumf>, %338, %cst_154 [1] : vector<8x8xf32> to vector<8xf32>
    %340 = vector.shape_cast %339 : vector<8xf32> to vector<8x1xf32>
    %341 = vector.broadcast %340 : vector<8x1xf32> to vector<8x8xf32>
    %342 = arith.subf %338, %341 : vector<8x8xf32>
    %343 = math.exp %342 : vector<8x8xf32>
    %cst_155 = arith.constant dense<0.000000e+00> : vector<8xf32>
    %344 = vector.multi_reduction <add>, %343, %cst_155 [1] : vector<8x8xf32> to vector<8xf32>
    %345 = vector.shape_cast %344 : vector<8xf32> to vector<8x1xf32>
    %346 = tpu.reciprocal %345 {approx = true} : vector<8x1xf32> -> vector<8x1xf32>
    %347 = vector.broadcast %346 : vector<8x1xf32> to vector<8x8xf32>
    %348 = arith.mulf %343, %347 : vector<8x8xf32>
    %cst_156 = arith.constant dense<0.000000e+00> : vector<8x8xf32>
    %349 = tpu.matmul %348, %335, %cst_156 {dimension_numbers = #tpu.dot_dimension_numbers<[1], [0], [0], [1], [0, 0, 1, 1], [], []>} : vector<8x8xf32>, vector<8x8xf32>, vector<8x8xf32> -> vector<8x8xf32>
    %c0_157 = arith.constant 0 : index
    %c24_158 = arith.constant 24 : index
    %350 = vector.load %arg21[%c0_157, %c24_158] : memref<8x32xf32, #tpu.memory_space<vmem>>, vector<8x8xf32>
    tpu.vector_store %arg21[%c0_157, %c24_158], %349 {strides = array<i32>} : memref<8x32xf32, #tpu.memory_space<vmem>>, vector<8x8xf32>,
    %c0_159 = arith.constant 0 : index
    %c0_160 = arith.constant 0 : index
    %351 = vector.load %arg21[%c0_159, %c0_160] : memref<8x32xf32, #tpu.memory_space<vmem>>, vector<8x32xf32>
    %cst_161 = arith.constant dense<0.000000e+00> : vector<8x32xf32>
    %352 = tpu.matmul %351, %194, %cst_161 {dimension_numbers = #tpu.dot_dimension_numbers<[1], [0], [0], [1], [0, 0, 1, 1], [], []>} : vector<8x32xf32>, vector<32x32xf32>, vector<8x32xf32> -> vector<8x32xf32>
    %c8_162 = arith.constant 8 : index
    %c0_163 = arith.constant 0 : index
    %353 = vector.load %arg22[%c8_162, %c0_163] : memref<16x32xf32, #tpu.memory_space<vmem>>, vector<8x32xf32>
    tpu.vector_store %arg22[%c8_162, %c0_163], %352 {strides = array<i32>} : memref<16x32xf32, #tpu.memory_space<vmem>>, vector<8x32xf32>,
    %c0_164 = arith.constant 0 : index
    %c0_165 = arith.constant 0 : index
    %354 = vector.load %arg22[%c0_164, %c0_165] : memref<16x32xf32, #tpu.memory_space<vmem>>, vector<16x32xf32>
    %c0_166 = arith.constant 0 : index
    %c0_167 = arith.constant 0 : index
    %355 = vector.load %arg12[%c0_166, %c0_167] : memref<1x32xf32, #tpu.memory_space<vmem>>, vector<1x32xf32>
    %c0_168 = arith.constant 0 : index
    %c0_169 = arith.constant 0 : index
    %356 = vector.load %arg13[%c0_168, %c0_169] : memref<1x32xf32, #tpu.memory_space<vmem>>, vector<1x32xf32>
    %357 = arith.addf %190, %354 : vector<16x32xf32>
    %cst_170 = arith.constant dense<0.000000e+00> : vector<16xf32>
    %358 = vector.multi_reduction <add>, %357, %cst_170 [1] : vector<16x32xf32> to vector<16xf32>
    %359 = vector.shape_cast %358 : vector<16xf32> to vector<16x1xf32>
    %cst_171 = arith.constant 3.200000e+01 : f32
    %360 = vector.broadcast %cst_171 : f32 to vector<16x1xf32>
    %361 = arith.divf %359, %360 : vector<16x1xf32>
    %362 = vector.broadcast %361 : vector<16x1xf32> to vector<16x32xf32>
    %363 = arith.subf %357, %362 : vector<16x32xf32>
    %364 = arith.mulf %363, %363 : vector<16x32xf32>
    %cst_172 = arith.constant dense<0.000000e+00> : vector<16xf32>
    %365 = vector.multi_reduction <add>, %364, %cst_172 [1] : vector<16x32xf32> to vector<16xf32>
    %366 = vector.shape_cast %365 : vector<16xf32> to vector<16x1xf32>
    %cst_173 = arith.constant 3.200000e+01 : f32
    %367 = vector.broadcast %cst_173 : f32 to vector<16x1xf32>
    %368 = arith.divf %366, %367 : vector<16x1xf32>
    %369 = vector.broadcast %361 : vector<16x1xf32> to vector<16x32xf32>
    %370 = arith.subf %357, %369 : vector<16x32xf32>
    %cst_174 = arith.constant 9.99999974E-6 : f32
    %371 = vector.broadcast %cst_174 : f32 to vector<16x1xf32>
    %372 = arith.addf %368, %371 : vector<16x1xf32>
    %373 = math.rsqrt %372 : vector<16x1xf32>
    %374 = vector.broadcast %373 : vector<16x1xf32> to vector<16x32xf32>
    %375 = arith.mulf %370, %374 : vector<16x32xf32>
    %376 = vector.broadcast %355 : vector<1x32xf32> to vector<16x32xf32>
    %377 = arith.mulf %375, %376 : vector<16x32xf32>
    %378 = vector.broadcast %356 : vector<1x32xf32> to vector<16x32xf32>
    %379 = arith.addf %377, %378 : vector<16x32xf32>
    %c0_175 = arith.constant 0 : index
    %c0_176 = arith.constant 0 : index
    %380 = vector.load %arg14[%c0_175, %c0_176] : memref<32x64xf32, #tpu.memory_space<vmem>>, vector<32x64xf32>
    %c0_177 = arith.constant 0 : index
    %c0_178 = arith.constant 0 : index
    %381 = vector.load %arg15[%c0_177, %c0_178] : memref<1x64xf32, #tpu.memory_space<vmem>>, vector<1x64xf32>
    %c0_179 = arith.constant 0 : index
    %c0_180 = arith.constant 0 : index
    %382 = vector.load %arg16[%c0_179, %c0_180] : memref<64x32xf32, #tpu.memory_space<vmem>>, vector<64x32xf32>
    %c0_181 = arith.constant 0 : index
    %c0_182 = arith.constant 0 : index
    %383 = vector.load %arg17[%c0_181, %c0_182] : memref<1x32xf32, #tpu.memory_space<vmem>>, vector<1x32xf32>
    %cst_183 = arith.constant dense<0.000000e+00> : vector<16x64xf32>
    %384 = tpu.matmul %379, %380, %cst_183 {dimension_numbers = #tpu.dot_dimension_numbers<[1], [0], [0], [1], [0, 0, 1, 1], [], []>} : vector<16x32xf32>, vector<32x64xf32>, vector<16x64xf32> -> vector<16x64xf32>
    %385 = vector.broadcast %381 : vector<1x64xf32> to vector<16x64xf32>
    %386 = arith.addf %384, %385 : vector<16x64xf32>
    %cst_184 = arith.constant 0.000000e+00 : f32
    %387 = vector.broadcast %cst_184 : f32 to vector<16x64xf32>
    %388 = arith.maximumf %386, %387 : vector<16x64xf32>
    %cst_185 = arith.constant dense<0.000000e+00> : vector<16x32xf32>
    %389 = tpu.matmul %388, %382, %cst_185 {dimension_numbers = #tpu.dot_dimension_numbers<[1], [0], [0], [1], [0, 0, 1, 1], [], []>} : vector<16x64xf32>, vector<64x32xf32>, vector<16x32xf32> -> vector<16x32xf32>
    %390 = vector.broadcast %383 : vector<1x32xf32> to vector<16x32xf32>
    %391 = arith.addf %389, %390 : vector<16x32xf32>
    %c0_186 = arith.constant 0 : index
    %c0_187 = arith.constant 0 : index
    %392 = vector.load %arg18[%c0_186, %c0_187] : memref<1x32xf32, #tpu.memory_space<vmem>>, vector<1x32xf32>
    %c0_188 = arith.constant 0 : index
    %c0_189 = arith.constant 0 : index
    %393 = vector.load %arg19[%c0_188, %c0_189] : memref<1x32xf32, #tpu.memory_space<vmem>>, vector<1x32xf32>
    %394 = arith.addf %379, %391 : vector<16x32xf32>
    %cst_190 = arith.constant dense<0.000000e+00> : vector<16xf32>
    %395 = vector.multi_reduction <add>, %394, %cst_190 [1] : vector<16x32xf32> to vector<16xf32>
    %396 = vector.shape_cast %395 : vector<16xf32> to vector<16x1xf32>
    %cst_191 = arith.constant 3.200000e+01 : f32
    %397 = vector.broadcast %cst_191 : f32 to vector<16x1xf32>
    %398 = arith.divf %396, %397 : vector<16x1xf32>
    %399 = vector.broadcast %398 : vector<16x1xf32> to vector<16x32xf32>
    %400 = arith.subf %394, %399 : vector<16x32xf32>
    %401 = arith.mulf %400, %400 : vector<16x32xf32>
    %cst_192 = arith.constant dense<0.000000e+00> : vector<16xf32>
    %402 = vector.multi_reduction <add>, %401, %cst_192 [1] : vector<16x32xf32> to vector<16xf32>
    %403 = vector.shape_cast %402 : vector<16xf32> to vector<16x1xf32>
    %cst_193 = arith.constant 3.200000e+01 : f32
    %404 = vector.broadcast %cst_193 : f32 to vector<16x1xf32>
    %405 = arith.divf %403, %404 : vector<16x1xf32>
    %406 = vector.broadcast %398 : vector<16x1xf32> to vector<16x32xf32>
    %407 = arith.subf %394, %406 : vector<16x32xf32>
    %cst_194 = arith.constant 9.99999974E-6 : f32
    %408 = vector.broadcast %cst_194 : f32 to vector<16x1xf32>
    %409 = arith.addf %405, %408 : vector<16x1xf32>
    %410 = math.rsqrt %409 : vector<16x1xf32>
    %411 = vector.broadcast %410 : vector<16x1xf32> to vector<16x32xf32>
    %412 = arith.mulf %407, %411 : vector<16x32xf32>
    %413 = vector.broadcast %392 : vector<1x32xf32> to vector<16x32xf32>
    %414 = arith.mulf %412, %413 : vector<16x32xf32>
    %415 = vector.broadcast %393 : vector<1x32xf32> to vector<16x32xf32>
    %416 = arith.addf %414, %415 : vector<16x32xf32>
    %c0_195 = arith.constant 0 : index
    %c0_196 = arith.constant 0 : index
    %417 = vector.load %arg20[%c0_195, %c0_196] : memref<16x32xf32, #tpu.memory_space<vmem>>, vector<16x32xf32>
    tpu.vector_store %arg20[%c0_195, %c0_196], %416 {strides = array<i32>} : memref<16x32xf32, #tpu.memory_space<vmem>>, vector<16x32xf32>,
    return
  }
}

</mosaic_0001>

<bundles_post_ra>
// kernel: transformer_forward.4
= control target key start
LH: loop header
LB: loop body
LE: loop exit
PB: predicated region body
PF: predicated region fallthrough
CT: control target
= control target key end

     0   :  { %vm62_vm0 = vcmask 261120   ;;  %vm138_vm1 = vcmask 64512   ;;  %s1053_s17 = smov 104   ;;  %s1054_s18 = smov 8   ;;  %vm272_vm2 = vcmask 130112   ;;  %vm344_vm3 = vcmask 195712   ;;  %s1372_s1 = inlined_call_operand.vmem [shape: f32[32,32], index: 1, kind: input, shape index: {}]   ;;  %s1373_s0 = inlined_call_operand.vmem [shape: f32[16,32], index: 0, kind: input, shape index: {}]   ;;  %s1374_s2 = inlined_call_operand.vmem [shape: f32[32,32], index: 2, kind: input, shape index: {}]   ;;  %s1375_s3 = inlined_call_operand.vmem [shape: f32[32,32], index: 3, kind: input, shape index: {}]   ;;  %s1376_s4 = inlined_call_operand.vmem [shape: f32[32,32], index: 4, kind: input, shape index: {}]   ;;  %s1377_s5 = inlined_call_operand.vmem [shape: f32[1,32], index: 5, kind: input, shape index: {}]   ;;  %s1378_s6 = inlined_call_operand.vmem [shape: f32[1,32], index: 6, kind: input, shape index: {}]   ;;  %s1379_s8 = inlined_call_operand.vmem [shape: f32[1,64], index: 8, kind: input, shape index: {}]   ;;  %s1380_s7 = inlined_call_operand.vmem [shape: f32[32,64], index: 7, kind: input, shape index: {}]   ;;  %s1381_s9 = inlined_call_operand.vmem [shape: f32[64,32], index: 9, kind: input, shape index: {}]   ;;  %s1382_s10 = inlined_call_operand.vmem [shape: f32[1,32], index: 10, kind: input, shape index: {}]   ;;  %s1383_s11 = inlined_call_operand.vmem [shape: f32[1,32], index: 11, kind: input, shape index: {}]   ;;  %s1384_s12 = inlined_call_operand.vmem [shape: f32[1,32], index: 12, kind: input, shape index: {}]   ;;  %s1385_s13 = inlined_call_operand.vmem [shape: f32[16,32], index: 13, kind: output, shape index: {}]  }
   0x1   :  { %v49_v0 = vld [vmem:[%s1372_s1 + $0x18] sm:$0xff]  ;;  %v48_v1 = vld [vmem:[%s1372_s1 + $0x10] sm:$0xff]  ;;  %v47_v2 = vld [vmem:[%s1372_s1 + $0x8] sm:$0xff]  ;;  %s1055_s19 = smov 16   ;;  %s1056_s20 = smov 24   ;;  %vm416_vm4 = vcmask 261312  }
   0x2   :  { %81 = vmatpush.msra.mxu1 %v49_v0  ;;  %992 = vmatpush.msra.mxu2 %v49_v0  ;;  %v46_v3 = vld [vmem:[%s1372_s1] sm:$0xff]  ;;  %v1148_v5 = vld [vmem:[%s1373_s0 + $0x8] sm:$0xff]  ;;  %v53_v6 = vld [vmem:[%s1374_s2 + $0x18] sm:$0xff]  ;;  %vm862_vm9 = vcmask 523264  }
   0x3   :  { %v1143_v4 = vld [vmem:[%s1373_s0] sm:$0xff]  ;;  %v57_v7 = vld [vmem:[%s1375_s3 + $0x18] sm:$0xff]  ;;  %v52_v8 = vld [vmem:[%s1374_s2 + $0x10] sm:$0xff] }
   0x4   :  { %82 = vmatpush.msra.mxu1 %v48_v1  ;;  %993 = vmatpush.msra.mxu2 %v48_v1  ;;  %v56_v9 = vld [vmem:[%s1375_s3 + $0x10] sm:$0xff]  ;;  %v51_v10 = vld [vmem:[%s1374_s2 + $0x8] sm:$0xff]  ;;  %v50_v12 = vld [vmem:[%s1374_s2] sm:$0xff]  ;;  %s1051_s2 = smov 120  }
   0x5   :  { %v55_v11 = vld [vmem:[%s1375_s3 + $0x8] sm:$0xff]  ;;  %v54_v13 = vld [vmem:[%s1375_s3] sm:$0xff]  ;;  %s1052_s3 = smov 112  }
   0x6   :  { %83 = vmatpush.msra.mxu1 %v47_v2  ;;  %994 = vmatpush.msra.mxu2 %v47_v2 }
   0x8   :  { %84 = vmatpush.msra.mxu1 %v46_v3  ;;  %995 = vmatpush.msra.mxu2 %v46_v3 }
   0x9   :  { %956 = vmatmul.msk.f32.vlgmr.msra.gmra.mxu1 %vm62_vm0, %v1143_v4  ;;  %957 = vmatmul.msk.f32.vlgmr.msra.gmra.mxu2 %vm62_vm0, %v1148_v5 }
   0xa   :  { %104 = vmatpush.msrb.mxu1 %v53_v6  ;;  %127 = vmatpush.msrb.mxu2 %v57_v7 }
   0xc   :  { %105 = vmatpush.msrb.mxu1 %v52_v8  ;;  %128 = vmatpush.msrb.mxu2 %v56_v9 }
   0xe   :  { %106 = vmatpush.msrb.mxu1 %v51_v10  ;;  %129 = vmatpush.msrb.mxu2 %v55_v11 }
  0x10   :  { %107 = vmatpush.msrb.mxu1 %v50_v12  ;;  %130 = vmatpush.msrb.mxu2 %v54_v13 }
  0x11   :  { %958 = vmatmul.msk.f32.vlgmr.msrb.gmra.mxu1 %vm62_vm0, %v1143_v4  ;;  %960 = vmatmul.msk.f32.vlgmr.msrb.gmra.mxu2 %vm62_vm0, %v1143_v4 }
  0x19   :  { %959 = vmatmul.msk.f32.gmra.mxu1 %vm62_vm0, %v1148_v5  ;;  %961 = vmatmul.msk.f32.gmra.mxu2 %vm62_vm0, %v1148_v5 }
  0x86   :  { %v86_v14 = vpop.f32.mrf.mxu1 }
  0x87   :  { %201 = vrot.lane.b32.xlu1 %v86_v14, %s1051_s2 }
  0x8c   :  { %v1194_v16 = vpop.f32.mrf.mxu2 }
  0x8e   :  { %v109_v15 = vpop.f32.mrf.mxu1 }
  0x8f   :  { %274 = vrot.lane.b32.xlu1 %v86_v14, %s1052_s3  ;;  %348 = vrot.lane.b32.xlu2 %v109_v15, %s1053_s17 }
  0x90   :  { %203 = vrot.lane.b32.xlu0 %v109_v15, %s1051_s2  ;;  %962 = vmatpush.xpose.msk.msra.mxu3 %vm138_vm1, %v109_v15 }
  0x93   :  { %963 = vmatmul.msk.f32.vlgmr.msra.gmra.mxu3 %vm138_vm1, %v86_v14 }
  0x94   :  { %v132_v17 = vpop.f32.mrf.mxu2 }
  0x95   :  { %195 = vmatpush.msra.mxu0 %v132_v17 }
  0x96   :  { %v112_v27 = vpop.f32.mrf.mxu1 }
  0x97   :  { %346 = vrot.lane.b32.xlu2 %v86_v14, %s1053_s17 }
  0x98   :  { %276 = vrot.lane.b32.xlu0 %v109_v15, %s1052_s3 }
  0x9c   :  { %v1226_v11 = vpop.f32.mrf.mxu2 }
  0x9f   :  { %242 = vrot.lane.b32.xlu2 %v132_v17, %s1051_s2 }
  0xa0   :  { %314 = vrot.lane.b32.xlu0 %v132_v17, %s1052_s3 }
  0xe9   :  { %v349_v19 = vpop.permute.xlu2 %348 }
  0xf1   :  { %v347_v22 = vpop.permute.xlu2 %346 }
  0xf9   :  { %v202_v20 = vpop.permute.xlu1 %201  ;;  %v243_v37 = vpop.permute.xlu2 %242 }
  0xfa   :  { %263 = vmatpush.msrb.mxu0 %v243_v37 }
 0x101   :  { %v275_v23 = vpop.permute.xlu1 %274 }
 0x102   :  { %v204_v18 = vpop.permute.xlu0 %203 }
 0x103   :  { %965 = vmatpush.xpose.msk.msrb.mxu3 %vm138_vm1, %v204_v18 }
 0x106   :  { %966 = vmatmul.msk.f32.vlgmr.msrb.gmra.mxu3 %vm138_vm1, %v202_v20 }
 0x107   :  { %971 = vmatpush.xpose.msk.msra.mxu3 %vm138_vm1, %v349_v19 }
 0x10a   :  { %v277_v21 = vpop.permute.xlu0 %276 }
 0x10b   :  { %968 = vmatpush.xpose.msk.msra.mxu1 %vm138_vm1, %v277_v21  ;;  %499 = vmatpush.msrb.mxu3 %v1226_v11 }
 0x10e   :  { %969 = vmatmul.msk.f32.vlgmr.msra.gmra.mxu1 %vm138_vm1, %v275_v23  ;;  %972 = vmatmul.msk.f32.vlgmr.msra.gmra.mxu3 %vm138_vm1, %v347_v22 }
 0x112   :  { %v315_v28 = vpop.permute.xlu0 %314 }
 0x113   :  { %335 = vmatpush.msra.mxu2 %v315_v28 }
 0x115   :  { %975 = vmatpush.xpose.msk.msrb.mxu2 %vm138_vm1, %v112_v27 }
 0x116   :  { %v162_v24 = vpop.f32.mrf.mxu3 }
 0x117   :  { %v165_v25 = vmul.f32 0.35355338, %v162_v24 }
 0x119   :  { %v166_v26 = vsel %vm138_vm1, %v165_v25, -inf }
 0x11a   :  { %167 = vmax.xlane.f32.xlu0 %v166_v26 }
 0x12e   :  { %579 = vrot.lane.b32.xlu0 %v112_v27, %s1052_s3 }
 0x136   :  { %577 = vrot.lane.b32.xlu0 %v1194_v16, %s1052_s3 }
 0x189   :  { %v226_v29 = vpop.f32.mrf.mxu3 }
 0x18a   :  { %v229_v30 = vmul.f32 0.35355338, %v226_v29 }
 0x18b   :  { %v299_v31 = vpop.f32.mrf.mxu1 }
 0x18c   :  { %v302_v32 = vmul.f32 0.35355338, %v299_v31  ;;  %v230_v33 = vsel %vm138_vm1, %v229_v30, -inf }
 0x18d   :  { %231 = vmax.xlane.f32.xlu2 %v230_v33  ;;  %v168_v34 = vpop.xlane.xlu0 %167 }
 0x18e   :  { %v169_v35 = vsub.f32 %v165_v25, %v168_v34  ;;  %v303_v36 = vsel %vm138_vm1, %v302_v32, -inf }
 0x18f   :  { %304 = vmax.xlane.f32.xlu1 %v303_v36 }
 0x190   :  { %v170_v38 = vmul.f32 1.442695, %v169_v35 }
 0x191   :  { %v371_v39 = vpop.f32.mrf.mxu3 }
 0x192   :  { %1009 = vpow2.f32 %v170_v38  ;;  %v374_v40 = vmul.f32 0.35355338, %v371_v39 }
 0x194   :  { %v375_v41 = vsel %vm138_vm1, %v374_v40, -inf }
 0x195   :  { %376 = vmax.xlane.f32.xlu2 %v375_v41  ;;  %v60_v41 = vld [vmem:[%s1376_s4 + $0x10] sm:$0xff] }
 0x198   :  { %v1010_v42 = vpop.eup %1009 }
 0x199   :  { %v172_v43 = vsel %vm138_vm1, %v1010_v42, 0.0 }
 0x19a   :  { %173 = vadd.xlane.f32.xlu0 %v172_v43 }
 0x1a0   :  { %v580_v44 = vpop.permute.xlu0 %579 }
 0x1a8   :  { %386 = vrot.lane.b32.xlu1 %v132_v17, %s1053_s17  ;;  %v578_v50 = vpop.permute.xlu0 %577 }
 0x1ad   :  { %507 = vrot.lane.b32.xlu2 %v112_v27, %s1051_s2 }
 0x1ae   :  { %650 = vrot.lane.b32.xlu0 %v112_v27, %s1053_s17 }
 0x200   :  { %v232_v45 = vpop.xlane.xlu2 %231 }
 0x201   :  { %v233_v46 = vsub.f32 %v229_v30, %v232_v45 }
 0x202   :  { %v305_v47 = vpop.xlane.xlu1 %304 }
 0x203   :  { %v234_v48 = vmul.f32 1.442695, %v233_v46  ;;  %v306_v49 = vsub.f32 %v302_v32, %v305_v47  ;;  %v59_v46 = vld [vmem:[%s1376_s4 + $0x8] sm:$0xff]  ;;  %v58_v47 = vld [vmem:[%s1376_s4] sm:$0xff] }
 0x205   :  { %1011 = vpow2.f32 %v234_v48  ;;  %v307_v51 = vmul.f32 1.442695, %v306_v49 }
 0x207   :  { %1013 = vpow2.f32 %v307_v51 }
 0x208   :  { %v377_v52 = vpop.xlane.xlu2 %376 }
 0x209   :  { %v378_v53 = vsub.f32 %v374_v40, %v377_v52  ;;  %v61_v40 = vld [vmem:[%s1376_s4 + $0x18] sm:$0xff] }
 0x20a   :  { %434 = vmatpush.msrb.mxu1 %v61_v40 }
 0x20b   :  { %v1012_v54 = vpop.eup %1011  ;;  %v379_v55 = vmul.f32 1.442695, %v378_v53 }
 0x20c   :  { %v236_v56 = vsel %vm138_vm1, %v1012_v54, 0.0  ;;  %435 = vmatpush.msrb.mxu1 %v60_v41 }
 0x20d   :  { %v1014_v57 = vpop.eup %1013  ;;  %1015 = vpow2.f32 %v379_v55  ;;  %237 = vadd.xlane.f32.xlu2 %v236_v56  ;;  %v174_v58 = vpop.xlane.xlu0 %173 }
 0x20e   :  { %1017 = vrcp.f32 %v174_v58  ;;  %v309_v59 = vsel %vm138_vm1, %v1014_v57, 0.0  ;;  %436 = vmatpush.msrb.mxu1 %v59_v46 }
 0x20f   :  { %310 = vadd.xlane.f32.xlu1 %v309_v59 }
 0x210   :  { %v508_v1 = vpop.permute.xlu2 %507  ;;  %437 = vmatpush.msrb.mxu1 %v58_v47 }
 0x213   :  { %v1016_v60 = vpop.eup %1015 }
 0x214   :  { %v1018_v61 = vpop.eup %1017  ;;  %v381_v63 = vsel %vm138_vm1, %v1016_v60, 0.0 }
 0x215   :  { %v176_v62 = vmul.f32 %v1018_v61, %v1010_v42 }
 0x217   :  { %964 = vmatmul.msk.f32.vlgmr.msra.gmra.mxu0 %vm138_vm1, %v176_v62  ;;  %382 = vadd.xlane.f32.xlu1 %v381_v63 }
 0x21a   :  { %v387_v0 = vpop.permute.xlu1 %386 }
 0x21b   :  { %407 = vmatpush.msra.mxu0 %v387_v0 }
 0x220   :  { %v651_v14 = vpop.permute.xlu0 %650 }
 0x225   :  { %648 = vrot.lane.b32.xlu2 %v1194_v16, %s1053_s17 }
 0x230   :  { %505 = vrot.lane.b32.xlu1 %v1194_v16, %s1051_s2 }
 0x280   :  { %v238_v2 = vpop.xlane.xlu2 %237 }
 0x281   :  { %1019 = vrcp.f32 %v238_v2 }
 0x282   :  { %v311_v3 = vpop.xlane.xlu1 %310 }
 0x283   :  { %1021 = vrcp.f32 %v311_v3 }
 0x287   :  { %v1020_v6 = vpop.eup %1019 }
 0x288   :  { %v240_v7 = vmul.f32 %v1020_v6, %v1012_v54  ;;  %v649_v18 = vpop.permute.xlu2 %648 }
 0x289   :  { %v1022_v8 = vpop.eup %1021 }
 0x28a   :  { %v313_v9 = vmul.f32 %v1022_v8, %v1014_v57  ;;  %967 = vmatmul.msk.f32.vlgmr.msrb.gmra.mxu0 %vm138_vm1, %v240_v7  ;;  %v383_v10 = vpop.xlane.xlu1 %382 }
 0x28b   :  { %978 = vmatpush.xpose.msk.msrb.mxu0 %vm138_vm1, %v508_v1  ;;  %1023 = vrcp.f32 %v383_v10 }
 0x28c   :  { %970 = vmatmul.msk.f32.vlgmr.msra.gmra.mxu2 %vm138_vm1, %v313_v9 }
 0x28d   :  { %981 = vmatpush.xpose.msk.msra.mxu2 %vm138_vm1, %v580_v44 }
 0x291   :  { %v1024_v12 = vpop.eup %1023 }
 0x292   :  { %v385_v13 = vmul.f32 %v1024_v12, %v1016_v60 }
 0x294   :  { %v197_v15 = vpop.f32.mrf.mxu0  ;;  %973 = vmatmul.msk.f32.vlgmr.msra.gmra.mxu0 %vm138_vm1, %v385_v13  ;;  %976 = vmatmul.msk.f32.vlgmr.msrb.gmra.mxu2 %vm138_vm1, %v1194_v16 }
 0x295   :  { %200 = vst.msk [vmem:[#allocation2] sm:$0xff] %vm138_vm1, %v197_v15  ;;  %984 = vmatpush.xpose.msk.msra.mxu0 %vm138_vm1, %v651_v14  ;;  %735 = vmatpush.msrb.mxu2 %v61_v40 }
 0x297   :  { %736 = vmatpush.msrb.mxu2 %v60_v41  ;;  %v814_v41 = vld [vmem:[%s1380_s7 + $0x18] sm:$0xff] }
 0x299   :  { %737 = vmatpush.msrb.mxu2 %v59_v46 }
 0x29b   :  { %738 = vmatpush.msrb.mxu2 %v58_v47 }
 0x29c   :  { %982 = vmatmul.msk.f32.vlgmr.msra.gmra.mxu2 %vm138_vm1, %v578_v50 }
 0x2a2   :  { %v506_v17 = vpop.permute.xlu1 %505 }
 0x2a3   :  { %979 = vmatmul.msk.f32.vlgmr.msrb.gmra.mxu0 %vm138_vm1, %v506_v17 }
 0x2ab   :  { %985 = vmatmul.msk.f32.vlgmr.msra.gmra.mxu0 %vm138_vm1, %v649_v18 }
 0x307   :  { %v265_v20 = vpop.f32.mrf.mxu0 }
 0x30f   :  { %v337_v19 = vpop.f32.mrf.mxu2 }
 0x311   :  { %v409_v22 = vpop.f32.mrf.mxu0 }
 0x317   :  { %v466_v21 = vpop.f32.mrf.mxu2 }
 0x318   :  { %v469_v23 = vmul.f32 0.35355338, %v466_v21 }
 0x31a   :  { %v470_v24 = vsel %vm138_vm1, %v469_v23, -inf }
 0x31b   :  { %471 = vmax.xlane.f32.xlu1 %v470_v24 }
 0x31f   :  { %v602_v16 = vpop.f32.mrf.mxu2 }
 0x320   :  { %v605_v25 = vmul.f32 0.35355338, %v602_v16  ;;  %v530_v26 = vpop.f32.mrf.mxu0 }
 0x321   :  { %v533_v27 = vmul.f32 0.35355338, %v530_v26  ;;  %v1057_v26 = vmov 32.0  }
 0x322   :  { %v606_v28 = vsel %vm138_vm1, %v605_v25, -inf }
 0x323   :  { %607 = vmax.xlane.f32.xlu2 %v606_v28  ;;  %v534_v29 = vsel %vm138_vm1, %v533_v27, -inf }
 0x324   :  { %535 = vmax.xlane.f32.xlu0 %v534_v29 }
 0x328   :  { %v673_v30 = vpop.f32.mrf.mxu0 }
 0x329   :  { %v676_v31 = vmul.f32 0.35355338, %v673_v30 }
 0x32b   :  { %v677_v32 = vsel %vm138_vm1, %v676_v31, -inf }
 0x32c   :  { %678 = vmax.xlane.f32.xlu1 %v677_v32 }
 0x338   :  { %269 = vrot.lane.b32.xlu0 %v265_v20, %s1054_s18 }
 0x33b   :  { %341 = vrot.lane.b32.xlu2 %v337_v19, %s1055_s19 }
 0x345   :  { %413 = vrot.lane.b32.xlu1 %v409_v22, %s1056_s20 }
 0x38e   :  { %v472_v33 = vpop.xlane.xlu1 %471 }
 0x38f   :  { %v473_v34 = vsub.f32 %v469_v23, %v472_v33 }
 0x391   :  { %v474_v35 = vmul.f32 1.442695, %v473_v34 }
 0x393   :  { %1025 = vpow2.f32 %v474_v35 }
 0x396   :  { %v608_v36 = vpop.xlane.xlu2 %607 }
 0x397   :  { %v609_v37 = vsub.f32 %v605_v25, %v608_v36  ;;  %v536_v38 = vpop.xlane.xlu0 %535 }
 0x398   :  { %v537_v39 = vsub.f32 %v533_v27, %v536_v38 }
 0x399   :  { %v1026_v42 = vpop.eup %1025  ;;  %v610_v43 = vmul.f32 1.442695, %v609_v37 }
 0x39a   :  { %v538_v44 = vmul.f32 1.442695, %v537_v39  ;;  %v476_v45 = vsel %vm138_vm1, %v1026_v42, 0.0 }
 0x39b   :  { %1027 = vpow2.f32 %v610_v43  ;;  %477 = vadd.xlane.f32.xlu1 %v476_v45  ;;  %v812_v43 = vld [vmem:[%s1380_s7 + $0x8] sm:$0xff] }
 0x39c   :  { %1029 = vpow2.f32 %v538_v44 }
 0x39e   :  { %v342_v57 = vpop.permute.xlu2 %341 }
 0x39f   :  { %v679_v48 = vpop.xlane.xlu1 %678 }
 0x3a0   :  { %v680_v49 = vsub.f32 %v676_v31, %v679_v48 }
 0x3a1   :  { %v1028_v50 = vpop.eup %1027 }
 0x3a2   :  { %v1030_v51 = vpop.eup %1029  ;;  %v681_v52 = vmul.f32 1.442695, %v680_v49  ;;  %v612_v53 = vsel %vm138_vm1, %v1028_v50, 0.0 }
 0x3a3   :  { %613 = vadd.xlane.f32.xlu2 %v612_v53  ;;  %v540_v54 = vsel %vm138_vm1, %v1030_v51, 0.0  ;;  %v1003_v53 = vld [vmem:[%s1377_s5] ss:$0 sm:$0xff] }
 0x3a4   :  { %1031 = vpow2.f32 %v681_v52  ;;  %541 = vadd.xlane.f32.xlu0 %v540_v54 }
 0x3aa   :  { %v1032_v55 = vpop.eup %1031  ;;  %v270_v56 = vpop.permute.xlu0 %269 }
 0x3ab   :  { %273 = vst.msk [vmem:[#allocation2] sm:$0xff] %vm272_vm2, %v270_v56  ;;  %v683_v58 = vsel %vm138_vm1, %v1032_v55, 0.0  ;;  %v1004_v56 = vld [vmem:[%s1378_s6] ss:$0 sm:$0xff] }
 0x3ac   :  { %684 = vadd.xlane.f32.xlu1 %v683_v58  ;;  %345 = vst.msk [vmem:[#allocation2] sm:$0xff] %vm344_vm3, %v342_v57 }
 0x3b7   :  { %v414_v59 = vpop.permute.xlu1 %413 }
 0x3b8   :  { %417 = vst.msk [vmem:[#allocation2] sm:$0xff] %vm416_vm4, %v414_v59  ;;  %546 = vrot.lane.b32.xlu0 %v1226_v11, %s1051_s2  ;;  %v823_v59 = vld [vmem:[%s1381_s9 + $0x38] sm:$0xff] }
 0x3b9   :  { %877 = vmatpush.msrb.mxu0 %v823_v59 }
 0x3bb   :  { %617 = vrot.lane.b32.xlu2 %v1226_v11, %s1052_s3 }
 0x3bf   :  { %v418_v60 = vld [vmem:[#allocation2] sm:$0xff] }
 0x3c0   :  { %974 = vmatmul.msk.f32.vlgmr.msrb.gmra.mxu1 %vm62_vm0, %v418_v60  ;;  %v822_v60 = vld [vmem:[%s1381_s9 + $0x30] sm:$0xff] }
 0x3c1   :  { %878 = vmatpush.msrb.mxu0 %v822_v60 }
 0x3c5   :  { %688 = vrot.lane.b32.xlu1 %v1226_v11, %s1053_s17 }
 0x40e   :  { %v478_v61 = vpop.xlane.xlu1 %477 }
 0x40f   :  { %1033 = vrcp.f32 %v478_v61  ;;  %v821_v61 = vld [vmem:[%s1381_s9 + $0x28] sm:$0xff] }
 0x410   :  { %879 = vmatpush.msrb.mxu0 %v821_v61 }
 0x415   :  { %v1034_v62 = vpop.eup %1033 }
 0x416   :  { %v480_v63 = vmul.f32 %v1034_v62, %v1026_v42  ;;  %v614_v0 = vpop.xlane.xlu2 %613  ;;  %v813_v42 = vld [vmem:[%s1380_s7 + $0x10] sm:$0xff]  ;;  %v820_v62 = vld [vmem:[%s1381_s9 + $0x20] sm:$0xff] }
 0x417   :  { %1035 = vrcp.f32 %v614_v0  ;;  %v542_v3 = vpop.xlane.xlu0 %541  ;;  %880 = vmatpush.msrb.mxu0 %v820_v62 }
 0x418   :  { %977 = vmatmul.msk.f32.vlgmr.msrb.gmra.mxu3 %vm138_vm1, %v480_v63  ;;  %1037 = vrcp.f32 %v542_v3  ;;  %v819_v63 = vld [vmem:[%s1381_s9 + $0x18] sm:$0xff] }
 0x419   :  { %881 = vmatpush.msrb.mxu0 %v819_v63 }
 0x41d   :  { %v1036_v1 = vpop.eup %1035 }
 0x41e   :  { %v616_v2 = vmul.f32 %v1036_v1, %v1028_v50  ;;  %v618_v6 = vpop.permute.xlu2 %617  ;;  %v1038_v7 = vpop.eup %1037 }
 0x41f   :  { %638 = vmatpush.msra.mxu3 %v618_v6  ;;  %v544_v8 = vmul.f32 %v1038_v7, %v1030_v51  ;;  %v685_v10 = vpop.xlane.xlu1 %684  ;;  %v818_v7 = vld [vmem:[%s1381_s9 + $0x10] sm:$0xff] }
 0x420   :  { %983 = vmatmul.msk.f32.vlgmr.msra.gmra.mxu3 %vm138_vm1, %v616_v2  ;;  %1039 = vrcp.f32 %v685_v10  ;;  %882 = vmatpush.msrb.mxu0 %v818_v7  ;;  %v1005_v10 = vld [vmem:[%s1379_s8] ss:$0 sm:$0xff] }
 0x421   :  { %1041 = vrcp.f32 %v1057_v26  ;;  %846 = vmatpush.msrb.mxu3 %v814_v41 }
 0x423   :  { %847 = vmatpush.msrb.mxu3 %v813_v42 }
 0x425   :  { %848 = vmatpush.msrb.mxu3 %v812_v43 }
 0x426   :  { %v1040_v11 = vpop.eup %1039 }
 0x427   :  { %v687_v12 = vmul.f32 %v1040_v11, %v1032_v55  ;;  %v1042_v27 = vpop.eup %1041 }
 0x428   :  { %v757_v28 = vmul.f32 32.0, %v1042_v27  ;;  %vm761_vm5 = vweird.f32 %v1042_v27 }
 0x42a   :  { %v547_v9 = vpop.permute.xlu0 %546 }
 0x42b   :  { %567 = vmatpush.msra.mxu1 %v547_v9  ;;  %v816_v9 = vld [vmem:[%s1381_s9] sm:$0xff] }
 0x42c   :  { %980 = vmatmul.msk.f32.vlgmr.msra.gmra.mxu1 %vm138_vm1, %v544_v8  ;;  %v817_v8 = vld [vmem:[%s1381_s9 + $0x8] sm:$0xff] }
 0x42d   :  { %883 = vmatpush.msrb.mxu0 %v817_v8 }
 0x42f   :  { %884 = vmatpush.msrb.mxu0 %v816_v9 }
 0x437   :  { %v689_v13 = vpop.permute.xlu1 %688 }
 0x438   :  { %709 = vmatpush.msrb.mxu1 %v689_v13 }
 0x439   :  { %986 = vmatmul.msk.f32.vlgmr.msrb.gmra.mxu1 %vm138_vm1, %v687_v12 }
 0x43d   :  { %v439_v14 = vpop.f32.mrf.mxu1 }
 0x43e   :  { %442 = vst.msk [vmem:[#allocation3] sm:$0xff] %vm62_vm0, %v439_v14 }
 0x445   :  { %v744_v20 = vld [vmem:[#allocation3] sm:$0xff] }
 0x446   :  { %v748_v21 = vadd.f32 %v744_v20, %v1143_v4  ;;  %v758_v4 = vsub.f32 1.0, %v757_v28 }
 0x448   :  { %v750_v22 = vsel %vm62_vm0, %v748_v21, 0.0  ;;  %v759_v29 = vmul.f32 %v1042_v27, %v758_v4 }
 0x44a   :  { %v760_v30 = vadd.f32 %v1042_v27, %v759_v29 }
 0x44c   :  { %v1287_v31 = vsel %vm761_vm5, %v1042_v27, %v760_v30  ;;  %v1006_v27 = vld [vmem:[%s1382_s10] ss:$0 sm:$0xff] }
 0x49b   :  { %v501_v15 = vpop.f32.mrf.mxu3 }
 0x49c   :  { %504 = vst.msk [vmem:[#allocation2] sm:$0xff] %vm138_vm1, %v501_v15 }
 0x4a3   :  { %v640_v18 = vpop.f32.mrf.mxu3 }
 0x4a9   :  { %v569_v17 = vpop.f32.mrf.mxu1 }
 0x4aa   :  { %573 = vrot.lane.b32.xlu0 %v569_v17, %s1054_s18 }
 0x4b2   :  { %644 = vrot.lane.b32.xlu0 %v640_v18, %s1055_s19 }
 0x4b6   :  { %v711_v19 = vpop.f32.mrf.mxu1 }
 0x4b7   :  { %715 = vrot.lane.b32.xlu2 %v711_v19, %s1056_s20 }
 0x4dc   :  { %751 = vadd.xlane.f32.xlu0 %v750_v22 }
 0x511   :  { %v716_v16 = vpop.permute.xlu2 %715 }
 0x51c   :  { %v574_v23 = vpop.permute.xlu0 %573 }
 0x51d   :  { %576 = vst.msk [vmem:[#allocation2] sm:$0xff] %vm272_vm2, %v574_v23 }
 0x524   :  { %v645_v24 = vpop.permute.xlu0 %644 }
 0x525   :  { %647 = vst.msk [vmem:[#allocation2] sm:$0xff] %vm344_vm3, %v645_v24 }
 0x526   :  { %718 = vst.msk [vmem:[#allocation2] sm:$0xff] %vm416_vm4, %v716_v16 }
 0x52d   :  { %v719_v25 = vld [vmem:[#allocation2] sm:$0xff] }
 0x52e   :  { %987 = vmatmul.msk.f32.vlgmr.msrb.gmra.mxu2 %vm62_vm0, %v719_v25 }
 0x54f   :  { %v752_v32 = vpop.xlane.xlu0 %751 }
 0x550   :  { %v763_v33 = vmul.f32 %v1287_v31, %v752_v32 }
 0x552   :  { %v765_v34 = vsub.f32 %v748_v21, %v763_v33 }
 0x554   :  { %v767_v35 = vmul.f32 %v765_v34, %v765_v34 }
 0x556   :  { %v769_v36 = vsel %vm62_vm0, %v767_v35, 0.0 }
 0x557   :  { %770 = vadd.xlane.f32.xlu1 %v769_v36 }
 0x5b1   :  { %v740_v37 = vpop.f32.mrf.mxu2 }
 0x5b2   :  { %743 = vst.msk [vmem:[#allocation3 + $0x8] sm:$0xff] %vm62_vm0, %v740_v37 }
 0x5b9   :  { %v745_v38 = vld [vmem:[#allocation3 + $0x8] sm:$0xff] }
 0x5ba   :  { %v749_v39 = vadd.f32 %v745_v38, %v1148_v5  ;;  %v811_v5 = vld [vmem:[%s1380_s7] sm:$0xff] }
 0x5bb   :  { %849 = vmatpush.msrb.mxu3 %v811_v5 }
 0x5bc   :  { %v753_v40 = vsel %vm62_vm0, %v749_v39, 0.0 }
 0x5bd   :  { %754 = vadd.xlane.f32.xlu2 %v753_v40 }
 0x5ca   :  { %v771_v44 = vpop.xlane.xlu1 %770 }
 0x5cb   :  { %v775_v45 = vmul.f32 %v771_v44, %v1287_v31 }
 0x5cd   :  { %v777_v46 = vadd.f32 1e-05, %v775_v45 }
 0x5cf   :  { %1043 = vrsqrt.f32 %v777_v46  ;;  %vm785_vm7 = vweird.f32 %v777_v46 }
 0x5d5   :  { %v1044_v47 = vpop.eup %1043 }
 0x5d6   :  { %v780_v48 = vmul.f32 %v1044_v47, %v777_v46  ;;  %vm786_vm6 = vweird.f32 %v1044_v47 }
 0x5d7   :  { %vm787_vm8 = vmor %vm785_vm7, %vm786_vm6 }
 0x5d8   :  { %v781_v49 = vmul.f32 %v1044_v47, %v780_v48 }
 0x5da   :  { %v782_v50 = vmul.f32 0.5, %v781_v49 }
 0x5dc   :  { %v783_v51 = vsub.f32 1.5, %v782_v50 }
 0x5de   :  { %v784_v52 = vmul.f32 %v1044_v47, %v783_v51 }
 0x5e0   :  { %v788_v54 = vsel %vm787_vm8, %v1044_v47, %v784_v52  ;;  %v1007_v52 = vld [vmem:[%s1383_s11] ss:$0 sm:$0xff] }
 0x5e1   :  { %v799_v55 = vmul.f32 %v788_v54, %v765_v34  ;;  %v1008_v54 = vld [vmem:[%s1384_s12] ss:$0 sm:$0xff] }
 0x5e3   :  { %v804_v57 = vmul.f32 %v1003_v53, %v799_v55 }
 0x5e5   :  { %v809_v58 = vadd.f32 %v1004_v56, %v804_v57 }
 0x5e7   :  { %988 = vmatmul.msk.f32.vlgmr.msrb.gmra.mxu3 %vm62_vm0, %v809_v58 }
 0x630   :  { %v755_v0 = vpop.xlane.xlu2 %754 }
 0x631   :  { %v764_v1 = vmul.f32 %v1287_v31, %v755_v0 }
 0x633   :  { %v766_v2 = vsub.f32 %v749_v39, %v764_v1 }
 0x635   :  { %v768_v3 = vmul.f32 %v766_v2, %v766_v2 }
 0x637   :  { %v772_v6 = vsel %vm62_vm0, %v768_v3, 0.0 }
 0x638   :  { %773 = vadd.xlane.f32.xlu0 %v772_v6 }
 0x66a   :  { %v851_v11 = vpop.f32.mrf.mxu3 }
 0x66b   :  { %v852_v12 = vadd.f32 %v1005_v10, %v851_v11 }
 0x66d   :  { %v857_v13 = vmax.f32 %v852_v12, 0.0 }
 0x66f   :  { %990 = vmatmul.msk.f32.vlgmr.msrb.gmra.mxu0 %vm862_vm9, %v857_v13 }
 0x6ab   :  { %v774_v14 = vpop.xlane.xlu0 %773 }
 0x6ac   :  { %v776_v15 = vmul.f32 %v774_v14, %v1287_v31 }
 0x6ae   :  { %v778_v17 = vadd.f32 1e-05, %v776_v15 }
 0x6b0   :  { %1045 = vrsqrt.f32 %v778_v17  ;;  %vm795_vm11 = vweird.f32 %v778_v17 }
 0x6b6   :  { %v1046_v18 = vpop.eup %1045 }
 0x6b7   :  { %v790_v19 = vmul.f32 %v1046_v18, %v778_v17  ;;  %vm796_vm10 = vweird.f32 %v1046_v18 }
 0x6b8   :  { %vm797_vm12 = vmor %vm795_vm11, %vm796_vm10 }
 0x6b9   :  { %v791_v20 = vmul.f32 %v1046_v18, %v790_v19 }
 0x6bb   :  { %v792_v21 = vmul.f32 0.5, %v791_v20 }
 0x6bd   :  { %v793_v22 = vsub.f32 1.5, %v792_v21 }
 0x6bf   :  { %v794_v23 = vmul.f32 %v1046_v18, %v793_v22 }
 0x6c1   :  { %v798_v24 = vsel %vm797_vm12, %v1046_v18, %v794_v23 }
 0x6c2   :  { %v800_v16 = vmul.f32 %v798_v24, %v766_v2 }
 0x6c4   :  { %v805_v25 = vmul.f32 %v1003_v53, %v800_v16 }
 0x6c6   :  { %v810_v26 = vadd.f32 %v1004_v56, %v805_v25 }
 0x6c8   :  { %989 = vmatmul.msk.f32.gmra.mxu3 %vm62_vm0, %v810_v26 }
 0x6ec   :  { %v886_v28 = vpop.f32.mrf.mxu0 }
 0x6ed   :  { %v887_v4 = vadd.f32 %v1006_v27, %v886_v28 }
 0x6ef   :  { %v894_v29 = vadd.f32 %v887_v4, %v809_v58 }
 0x6f1   :  { %v896_v30 = vsel %vm62_vm0, %v894_v29, 0.0 }
 0x6f2   :  { %897 = vadd.xlane.f32.xlu2 %v896_v30 }
 0x74b   :  { %v854_v32 = vpop.f32.mrf.mxu3 }
 0x74c   :  { %v855_v33 = vadd.f32 %v1005_v10, %v854_v32 }
 0x74e   :  { %v858_v34 = vmax.f32 %v855_v33, 0.0 }
 0x750   :  { %991 = vmatmul.msk.f32.gmra.mxu0 %vm862_vm9, %v858_v34 }
 0x765   :  { %v898_v35 = vpop.xlane.xlu2 %897 }
 0x766   :  { %v902_v36 = vmul.f32 %v898_v35, %v1287_v31 }
 0x768   :  { %v904_v37 = vsub.f32 %v894_v29, %v902_v36 }
 0x76a   :  { %v906_v38 = vmul.f32 %v904_v37, %v904_v37 }
 0x76c   :  { %v908_v39 = vsel %vm62_vm0, %v906_v38, 0.0 }
 0x76d   :  { %909 = vadd.xlane.f32.xlu0 %v908_v39 }
 0x7cd   :  { %v889_v40 = vpop.f32.mrf.mxu0 }
 0x7ce   :  { %v890_v41 = vadd.f32 %v1006_v27, %v889_v40 }
 0x7d0   :  { %v895_v42 = vadd.f32 %v890_v41, %v810_v26 }
 0x7d2   :  { %v899_v43 = vsel %vm62_vm0, %v895_v42, 0.0 }
 0x7d3   :  { %900 = vadd.xlane.f32.xlu1 %v899_v43 }
 0x7e0   :  { %v910_v5 = vpop.xlane.xlu0 %909 }
 0x7e1   :  { %v914_v44 = vmul.f32 %v910_v5, %v1287_v31 }
 0x7e3   :  { %v916_v45 = vadd.f32 1e-05, %v914_v44 }
 0x7e5   :  { %1047 = vrsqrt.f32 %v916_v45  ;;  %vm924_vm14 = vweird.f32 %v916_v45 }
 0x7eb   :  { %v1048_v46 = vpop.eup %1047 }
 0x7ec   :  { %v919_v47 = vmul.f32 %v1048_v46, %v916_v45  ;;  %vm925_vm13 = vweird.f32 %v1048_v46 }
 0x7ed   :  { %vm926_vm15 = vmor %vm924_vm14, %vm925_vm13 }
 0x7ee   :  { %v920_v48 = vmul.f32 %v1048_v46, %v919_v47 }
 0x7f0   :  { %v921_v49 = vmul.f32 0.5, %v920_v48 }
 0x7f2   :  { %v922_v50 = vsub.f32 1.5, %v921_v49 }
 0x7f4   :  { %v923_v51 = vmul.f32 %v1048_v46, %v922_v50 }
 0x7f6   :  { %v927_v53 = vsel %vm926_vm15, %v1048_v46, %v923_v51 }
 0x7f7   :  { %v938_v55 = vmul.f32 %v927_v53, %v904_v37 }
 0x7f9   :  { %v943_v56 = vmul.f32 %v1007_v52, %v938_v55 }
 0x7fb   :  { %v948_v57 = vadd.f32 %v1008_v54, %v943_v56 }
 0x7fd   :  { %950 = vst.msk [vmem:[%s1385_s13] sm:$0xff] %vm62_vm0, %v948_v57 }
 0x846   :  { %v901_v58 = vpop.xlane.xlu1 %900 }
 0x847   :  { %v903_v59 = vmul.f32 %v901_v58, %v1287_v31 }
 0x849   :  { %v905_v60 = vsub.f32 %v895_v42, %v903_v59 }
 0x84b   :  { %v907_v61 = vmul.f32 %v905_v60, %v905_v60 }
 0x84d   :  { %v911_v62 = vsel %vm62_vm0, %v907_v61, 0.0 }
 0x84e   :  { %912 = vadd.xlane.f32.xlu2 %v911_v62 }
 0x8c1   :  { %v913_v63 = vpop.xlane.xlu2 %912 }
 0x8c2   :  { %v915_v0 = vmul.f32 %v913_v63, %v1287_v31 }
 0x8c4   :  { %v917_v1 = vadd.f32 1e-05, %v915_v0 }
 0x8c6   :  { %1049 = vrsqrt.f32 %v917_v1  ;;  %vm934_vm2 = vweird.f32 %v917_v1 }
 0x8cc   :  { %v1050_v2 = vpop.eup %1049 }
 0x8cd   :  { %v929_v3 = vmul.f32 %v1050_v2, %v917_v1  ;;  %vm935_vm1 = vweird.f32 %v1050_v2 }
 0x8ce   :  { %vm936_vm3 = vmor %vm934_vm2, %vm935_vm1 }
 0x8cf   :  { %v930_v6 = vmul.f32 %v1050_v2, %v929_v3 }
 0x8d1   :  { %v931_v7 = vmul.f32 0.5, %v930_v6 }
 0x8d3   :  { %v932_v8 = vsub.f32 1.5, %v931_v7 }
 0x8d5   :  { %v933_v9 = vmul.f32 %v1050_v2, %v932_v8 }
 0x8d7   :  { %v937_v10 = vsel %vm936_vm3, %v1050_v2, %v933_v9 }
 0x8d8   :  { %v939_v11 = vmul.f32 %v937_v10, %v905_v60 }
 0x8da   :  { %v944_v12 = vmul.f32 %v1007_v52, %v939_v11 }
 0x8dc   :  { %v949_v13 = vadd.f32 %v1008_v54, %v944_v12 }
 0x8de   :  { %951 = vst.msk [vmem:[%s1385_s13 + $0x8] sm:$0xff] %vm62_vm0, %v949_v13 }

// kernel: transformer_forward.6
= control target key start
LH: loop header
LB: loop body
LE: loop exit
PB: predicated region body
PF: predicated region fallthrough
CT: control target
= control target key end

     0   :  { %s2507_s0 = inlined_call_operand.vmem [shape: f32[16,32], index: 0, kind: input, shape index: {}]   ;;  %s2508_s1 = inlined_call_operand.vmem [shape: f32[16,32], index: 1, kind: input, shape index: {}]   ;;  %s2509_s2 = inlined_call_operand.vmem [shape: f32[32,32], index: 2, kind: input, shape index: {}]   ;;  %s2510_s3 = inlined_call_operand.vmem [shape: f32[32,32], index: 3, kind: input, shape index: {}]   ;;  %s2511_s4 = inlined_call_operand.vmem [shape: f32[32,32], index: 4, kind: input, shape index: {}]   ;;  %s2512_s5 = inlined_call_operand.vmem [shape: f32[32,32], index: 5, kind: input, shape index: {}]   ;;  %s2513_s6 = inlined_call_operand.vmem [shape: f32[1,32], index: 6, kind: input, shape index: {}]   ;;  %s2514_s7 = inlined_call_operand.vmem [shape: f32[1,32], index: 7, kind: input, shape index: {}]   ;;  %s2515_s8 = inlined_call_operand.vmem [shape: f32[32,32], index: 8, kind: input, shape index: {}]   ;;  %s2516_s9 = inlined_call_operand.vmem [shape: f32[32,32], index: 9, kind: input, shape index: {}]   ;;  %s2517_s10 = inlined_call_operand.vmem [shape: f32[32,32], index: 10, kind: input, shape index: {}]   ;;  %s2518_s11 = inlined_call_operand.hbm [shape: f32[32,32], index: 11, kind: input, shape index: {}]   ;;  %s2519_s12 = inlined_call_operand.vmem [shape: f32[1,32], index: 12, kind: input, shape index: {}]   ;;  %s2520_s13 = inlined_call_operand.vmem [shape: f32[1,32], index: 13, kind: input, shape index: {}]   ;;  %s2521_s14 = inlined_call_operand.hbm [shape: f32[32,64], index: 14, kind: input, shape index: {}]   ;;  %s2522_s15 = inlined_call_operand.vmem [shape: f32[1,64], index: 15, kind: input, shape index: {}]   ;;  %s2523_s16 = inlined_call_operand.vmem [shape: f32[64,32], index: 16, kind: input, shape index: {}]   ;;  %s2524_s17 = inlined_call_operand.vmem [shape: f32[1,32], index: 17, kind: input, shape index: {}]   ;;  %s2525_s18 = inlined_call_operand.vmem [shape: f32[1,32], index: 18, kind: input, shape index: {}]   ;;  %s2526_s19 = inlined_call_operand.vmem [shape: f32[1,32], index: 19, kind: input, shape index: {}]   ;;  %s2527_s20 = inlined_call_operand.vmem [shape: f32[16,32], index: 20, kind: output, shape index: {}]  }
   0x1   :  { %2533 = sst [smem:[#allocation10_spill]] %s2507_s0 }
   0x2   :  { %2534 = sst [smem:[#allocation11_spill]] %s2508_s1 }
   0x3   :  { %2535 = sst [smem:[#allocation12_spill]] %s2509_s2 }
   0x4   :  { %2536 = sst [smem:[#allocation13_spill]] %s2510_s3 }
   0x5   :  { %2537 = sst [smem:[#allocation14_spill]] %s2511_s4 }
   0x6   :  { %25 = vsyncpa [#allocation5], 0  ;;  %s53_s23 = sshll.u32 %s2518_s11, 4  ;;  %s54_s23 = int_to_ptr.hbm [resolvable:$true] %s53_s23 }
   0x7   :  { %26 = vsyncpa [#allocation7], 0  ;;  %s1992_s24 = smov [#allocation4]   ;;  %s70_s26 = sshll.u32 %s2521_s14, 4  ;;  %s71_s26 = int_to_ptr.hbm [resolvable:$true] %s70_s26 }
   0x8   :  { %s55_s2 = sshll.u32 %s1992_s24, 4  ;;  %s1993_s27 = smov 128   ;;  %s56_s2 = int_to_ptr.vmem [resolvable:$true] %s55_s2 }
   0x9   :  { %s1994_s28 = smov 8   ;;  %s1995_s4 = smov [#allocation6]  }
   0xa   :  { %61 = dma.hbm_to_vmem [thread:$0]  %s54_s23, 512, %s56_s2, [#allocation5], %s1993_s27, %s1993_s27, %s1994_s28  }
   0xb   :  { %s72_s29 = sshll.u32 %s1995_s4, 4  ;;  %s73_s29 = int_to_ptr.vmem [resolvable:$true] %s72_s29 }
   0xc   :  { %78 = dma.hbm_to_vmem [thread:$0]  %s71_s26, 512, %s73_s29, [#allocation7], %s1993_s27, %s1993_s27, %s1994_s28  }
   0xd   :  { %1988 = dma.done.wait [#allocation5], 512  }
   0xe   :  { %1989 = vsyncadd [#allocation5], 4294966784 }
   0xf   :  { %1990 = dma.done.wait [#allocation7], 512  }
  0x10   :  { %1991 = vsyncadd [#allocation7], 4294966784  ;;  %s2538_s0 = sld [smem:[#allocation12_spill]]  ;;  %vm117_vm0 = vcmask 261120   ;;  %vm193_vm1 = vcmask 64512   ;;  %s1997_s30 = smov 112  }
  0x11   :  { %s2539_s3 = sld [smem:[#allocation10_spill]]  ;;  %s2000_s14 = smov 24   ;;  %vm327_vm2 = vcmask 130112   ;;  %vm399_vm3 = vcmask 195712   ;;  %vm471_vm4 = vcmask 261312   ;;  %vm1676_vm15 = vcmask 523264  }
  0x12   :  { %s2540_s4 = sld [smem:[#allocation13_spill]] }
  0x13   :  { %s2541_s21 = sld [smem:[#allocation14_spill]] }
  0x16   :  { %v104_v0 = vld [vmem:[%s2538_s0 + $0x18] sm:$0xff]  ;;  %v103_v1 = vld [vmem:[%s2538_s0 + $0x10] sm:$0xff]  ;;  %v102_v2 = vld [vmem:[%s2538_s0 + $0x8] sm:$0xff] }
  0x17   :  { %136 = vmatpush.msra.mxu1 %v104_v0  ;;  %1840 = vmatpush.msra.mxu2 %v104_v0  ;;  %v101_v3 = vld [vmem:[%s2538_s0] sm:$0xff]  ;;  %v2138_v6 = vld [vmem:[%s2539_s3 + $0x8] sm:$0xff]  ;;  %s1998_s0 = smov 104  }
  0x18   :  { %v2130_v4 = vld [vmem:[%s2539_s3] sm:$0xff]  ;;  %v108_v5 = vld [vmem:[%s2540_s4 + $0x18] sm:$0xff]  ;;  %v107_v8 = vld [vmem:[%s2540_s4 + $0x10] sm:$0xff]  ;;  %s2542_s3 = sld [smem:[#allocation11_spill]] }
  0x19   :  { %137 = vmatpush.msra.mxu1 %v103_v1  ;;  %1841 = vmatpush.msra.mxu2 %v103_v1  ;;  %v112_v7 = vld [vmem:[%s2541_s21 + $0x18] sm:$0xff]  ;;  %v111_v9 = vld [vmem:[%s2541_s21 + $0x10] sm:$0xff]  ;;  %v106_v10 = vld [vmem:[%s2540_s4 + $0x8] sm:$0xff] }
  0x1a   :  { %v110_v11 = vld [vmem:[%s2541_s21 + $0x8] sm:$0xff]  ;;  %v105_v12 = vld [vmem:[%s2540_s4] sm:$0xff]  ;;  %s1996_s4 = smov 120  }
  0x1b   :  { %138 = vmatpush.msra.mxu1 %v102_v2  ;;  %1842 = vmatpush.msra.mxu2 %v102_v2  ;;  %v109_v13 = vld [vmem:[%s2541_s21] sm:$0xff]  ;;  %s1999_s21 = smov 16  }
  0x1d   :  { %139 = vmatpush.msra.mxu1 %v101_v3  ;;  %1843 = vmatpush.msra.mxu2 %v101_v3 }
  0x1e   :  { %1772 = vmatmul.msk.f32.vlgmr.msra.gmra.mxu1 %vm117_vm0, %v2130_v4  ;;  %1773 = vmatmul.msk.f32.vlgmr.msra.gmra.mxu2 %vm117_vm0, %v2138_v6 }
  0x1f   :  { %159 = vmatpush.msrb.mxu1 %v108_v5  ;;  %182 = vmatpush.msrb.mxu2 %v112_v7 }
  0x21   :  { %160 = vmatpush.msrb.mxu1 %v107_v8  ;;  %183 = vmatpush.msrb.mxu2 %v111_v9 }
  0x23   :  { %161 = vmatpush.msrb.mxu1 %v106_v10  ;;  %184 = vmatpush.msrb.mxu2 %v110_v11 }
  0x25   :  { %162 = vmatpush.msrb.mxu1 %v105_v12  ;;  %185 = vmatpush.msrb.mxu2 %v109_v13 }
  0x26   :  { %1774 = vmatmul.msk.f32.vlgmr.msrb.gmra.mxu1 %vm117_vm0, %v2130_v4  ;;  %1776 = vmatmul.msk.f32.vlgmr.msrb.gmra.mxu2 %vm117_vm0, %v2130_v4 }
  0x2e   :  { %1775 = vmatmul.msk.f32.gmra.mxu1 %vm117_vm0, %v2138_v6  ;;  %1777 = vmatmul.msk.f32.gmra.mxu2 %vm117_vm0, %v2138_v6 }
  0x9b   :  { %v141_v14 = vpop.f32.mrf.mxu1 }
  0x9c   :  { %256 = vrot.lane.b32.xlu1 %v141_v14, %s1996_s4 }
  0xa1   :  { %v2181_v16 = vpop.f32.mrf.mxu2 }
  0xa3   :  { %v164_v15 = vpop.f32.mrf.mxu1 }
  0xa4   :  { %329 = vrot.lane.b32.xlu1 %v141_v14, %s1997_s30  ;;  %403 = vrot.lane.b32.xlu2 %v164_v15, %s1998_s0 }
  0xa5   :  { %258 = vrot.lane.b32.xlu0 %v164_v15, %s1996_s4  ;;  %1778 = vmatpush.xpose.msk.msra.mxu3 %vm193_vm1, %v164_v15 }
  0xa8   :  { %1779 = vmatmul.msk.f32.vlgmr.msra.gmra.mxu3 %vm193_vm1, %v141_v14 }
  0xa9   :  { %v187_v17 = vpop.f32.mrf.mxu2 }
  0xaa   :  { %250 = vmatpush.msra.mxu0 %v187_v17 }
  0xab   :  { %v167_v27 = vpop.f32.mrf.mxu1 }
  0xac   :  { %401 = vrot.lane.b32.xlu2 %v141_v14, %s1998_s0 }
  0xad   :  { %331 = vrot.lane.b32.xlu0 %v164_v15, %s1997_s30 }
  0xb1   :  { %v2213_v11 = vpop.f32.mrf.mxu2 }
  0xb4   :  { %297 = vrot.lane.b32.xlu2 %v187_v17, %s1996_s4 }
  0xb5   :  { %369 = vrot.lane.b32.xlu0 %v187_v17, %s1997_s30 }
  0xfe   :  { %v404_v19 = vpop.permute.xlu2 %403 }
 0x106   :  { %v402_v22 = vpop.permute.xlu2 %401 }
 0x10e   :  { %v257_v20 = vpop.permute.xlu1 %256  ;;  %v298_v37 = vpop.permute.xlu2 %297 }
 0x10f   :  { %318 = vmatpush.msrb.mxu0 %v298_v37 }
 0x116   :  { %v330_v23 = vpop.permute.xlu1 %329 }
 0x117   :  { %v259_v18 = vpop.permute.xlu0 %258 }
 0x118   :  { %1781 = vmatpush.xpose.msk.msrb.mxu3 %vm193_vm1, %v259_v18 }
 0x11b   :  { %1782 = vmatmul.msk.f32.vlgmr.msrb.gmra.mxu3 %vm193_vm1, %v257_v20 }
 0x11c   :  { %1787 = vmatpush.xpose.msk.msra.mxu3 %vm193_vm1, %v404_v19 }
 0x11f   :  { %v332_v21 = vpop.permute.xlu0 %331 }
 0x120   :  { %1784 = vmatpush.xpose.msk.msra.mxu1 %vm193_vm1, %v332_v21  ;;  %554 = vmatpush.msrb.mxu3 %v2213_v11 }
 0x123   :  { %1785 = vmatmul.msk.f32.vlgmr.msra.gmra.mxu1 %vm193_vm1, %v330_v23  ;;  %1788 = vmatmul.msk.f32.vlgmr.msra.gmra.mxu3 %vm193_vm1, %v402_v22 }
 0x127   :  { %v370_v28 = vpop.permute.xlu0 %369 }
 0x128   :  { %390 = vmatpush.msra.mxu2 %v370_v28 }
 0x12a   :  { %1791 = vmatpush.xpose.msk.msrb.mxu2 %vm193_vm1, %v167_v27 }
 0x12b   :  { %v217_v24 = vpop.f32.mrf.mxu3 }
 0x12c   :  { %v220_v25 = vmul.f32 0.35355338, %v217_v24 }
 0x12e   :  { %v221_v26 = vsel %vm193_vm1, %v220_v25, -inf }
 0x12f   :  { %222 = vmax.xlane.f32.xlu0 %v221_v26 }
 0x143   :  { %634 = vrot.lane.b32.xlu0 %v167_v27, %s1997_s30 }
 0x14b   :  { %632 = vrot.lane.b32.xlu0 %v2181_v16, %s1997_s30 }
 0x19e   :  { %v281_v29 = vpop.f32.mrf.mxu3 }
 0x19f   :  { %v284_v30 = vmul.f32 0.35355338, %v281_v29 }
 0x1a0   :  { %v354_v31 = vpop.f32.mrf.mxu1 }
 0x1a1   :  { %v357_v32 = vmul.f32 0.35355338, %v354_v31  ;;  %v285_v33 = vsel %vm193_vm1, %v284_v30, -inf }
 0x1a2   :  { %286 = vmax.xlane.f32.xlu2 %v285_v33  ;;  %v223_v34 = vpop.xlane.xlu0 %222 }
 0x1a3   :  { %v224_v35 = vsub.f32 %v220_v25, %v223_v34  ;;  %v358_v36 = vsel %vm193_vm1, %v357_v32, -inf }
 0x1a4   :  { %359 = vmax.xlane.f32.xlu1 %v358_v36 }
 0x1a5   :  { %v225_v38 = vmul.f32 1.442695, %v224_v35 }
 0x1a6   :  { %v426_v39 = vpop.f32.mrf.mxu3 }
 0x1a7   :  { %1862 = vpow2.f32 %v225_v38  ;;  %v429_v40 = vmul.f32 0.35355338, %v426_v39 }
 0x1a9   :  { %v430_v41 = vsel %vm193_vm1, %v429_v40, -inf }
 0x1aa   :  { %431 = vmax.xlane.f32.xlu2 %v430_v41  ;;  %v115_v41 = vld [vmem:[%s2512_s5 + $0x10] sm:$0xff] }
 0x1ad   :  { %v1863_v42 = vpop.eup %1862 }
 0x1ae   :  { %v227_v43 = vsel %vm193_vm1, %v1863_v42, 0.0 }
 0x1af   :  { %228 = vadd.xlane.f32.xlu0 %v227_v43 }
 0x1b5   :  { %v635_v44 = vpop.permute.xlu0 %634 }
 0x1bd   :  { %441 = vrot.lane.b32.xlu1 %v187_v17, %s1998_s0  ;;  %v633_v50 = vpop.permute.xlu0 %632 }
 0x1c2   :  { %562 = vrot.lane.b32.xlu2 %v167_v27, %s1996_s4 }
 0x1c3   :  { %705 = vrot.lane.b32.xlu0 %v167_v27, %s1998_s0 }
 0x215   :  { %v287_v45 = vpop.xlane.xlu2 %286 }
 0x216   :  { %v288_v46 = vsub.f32 %v284_v30, %v287_v45 }
 0x217   :  { %v360_v47 = vpop.xlane.xlu1 %359 }
 0x218   :  { %v289_v48 = vmul.f32 1.442695, %v288_v46  ;;  %v361_v49 = vsub.f32 %v357_v32, %v360_v47  ;;  %v114_v46 = vld [vmem:[%s2512_s5 + $0x8] sm:$0xff]  ;;  %v113_v47 = vld [vmem:[%s2512_s5] sm:$0xff] }
 0x21a   :  { %1864 = vpow2.f32 %v289_v48  ;;  %v362_v51 = vmul.f32 1.442695, %v361_v49 }
 0x21c   :  { %1866 = vpow2.f32 %v362_v51 }
 0x21d   :  { %v432_v52 = vpop.xlane.xlu2 %431 }
 0x21e   :  { %v433_v53 = vsub.f32 %v429_v40, %v432_v52  ;;  %v116_v40 = vld [vmem:[%s2512_s5 + $0x18] sm:$0xff] }
 0x21f   :  { %489 = vmatpush.msrb.mxu1 %v116_v40 }
 0x220   :  { %v1865_v54 = vpop.eup %1864  ;;  %v434_v55 = vmul.f32 1.442695, %v433_v53 }
 0x221   :  { %v291_v56 = vsel %vm193_vm1, %v1865_v54, 0.0  ;;  %490 = vmatpush.msrb.mxu1 %v115_v41 }
 0x222   :  { %v1867_v57 = vpop.eup %1866  ;;  %1868 = vpow2.f32 %v434_v55  ;;  %292 = vadd.xlane.f32.xlu2 %v291_v56  ;;  %v229_v58 = vpop.xlane.xlu0 %228 }
 0x223   :  { %1870 = vrcp.f32 %v229_v58  ;;  %v364_v59 = vsel %vm193_vm1, %v1867_v57, 0.0  ;;  %491 = vmatpush.msrb.mxu1 %v114_v46 }
 0x224   :  { %365 = vadd.xlane.f32.xlu1 %v364_v59 }
 0x225   :  { %v563_v1 = vpop.permute.xlu2 %562  ;;  %492 = vmatpush.msrb.mxu1 %v113_v47 }
 0x228   :  { %v1869_v60 = vpop.eup %1868 }
 0x229   :  { %v1871_v61 = vpop.eup %1870  ;;  %v436_v63 = vsel %vm193_vm1, %v1869_v60, 0.0 }
 0x22a   :  { %v231_v62 = vmul.f32 %v1871_v61, %v1863_v42 }
 0x22c   :  { %1780 = vmatmul.msk.f32.vlgmr.msra.gmra.mxu0 %vm193_vm1, %v231_v62  ;;  %437 = vadd.xlane.f32.xlu1 %v436_v63 }
 0x22f   :  { %v442_v0 = vpop.permute.xlu1 %441 }
 0x230   :  { %462 = vmatpush.msra.mxu0 %v442_v0 }
 0x235   :  { %v706_v14 = vpop.permute.xlu0 %705 }
 0x23a   :  { %703 = vrot.lane.b32.xlu2 %v2181_v16, %s1998_s0 }
 0x245   :  { %560 = vrot.lane.b32.xlu1 %v2181_v16, %s1996_s4 }
 0x295   :  { %v293_v2 = vpop.xlane.xlu2 %292 }
 0x296   :  { %1872 = vrcp.f32 %v293_v2 }
 0x297   :  { %v366_v3 = vpop.xlane.xlu1 %365 }
 0x298   :  { %1874 = vrcp.f32 %v366_v3 }
 0x29c   :  { %v1873_v5 = vpop.eup %1872 }
 0x29d   :  { %v295_v7 = vmul.f32 %v1873_v5, %v1865_v54  ;;  %v704_v18 = vpop.permute.xlu2 %703 }
 0x29e   :  { %v1875_v8 = vpop.eup %1874 }
 0x29f   :  { %v368_v9 = vmul.f32 %v1875_v8, %v1867_v57  ;;  %1783 = vmatmul.msk.f32.vlgmr.msrb.gmra.mxu0 %vm193_vm1, %v295_v7  ;;  %v438_v10 = vpop.xlane.xlu1 %437 }
 0x2a0   :  { %1794 = vmatpush.xpose.msk.msrb.mxu0 %vm193_vm1, %v563_v1  ;;  %1876 = vrcp.f32 %v438_v10 }
 0x2a1   :  { %1786 = vmatmul.msk.f32.vlgmr.msra.gmra.mxu2 %vm193_vm1, %v368_v9 }
 0x2a2   :  { %1797 = vmatpush.xpose.msk.msra.mxu2 %vm193_vm1, %v635_v44 }
 0x2a6   :  { %v1877_v12 = vpop.eup %1876 }
 0x2a7   :  { %v440_v13 = vmul.f32 %v1877_v12, %v1869_v60 }
 0x2a9   :  { %v252_v15 = vpop.f32.mrf.mxu0  ;;  %1789 = vmatmul.msk.f32.vlgmr.msra.gmra.mxu0 %vm193_vm1, %v440_v13  ;;  %1792 = vmatmul.msk.f32.vlgmr.msrb.gmra.mxu2 %vm193_vm1, %v2181_v16 }
 0x2aa   :  { %255 = vst.msk [vmem:[#allocation2] sm:$0xff] %vm193_vm1, %v252_v15  ;;  %1800 = vmatpush.xpose.msk.msra.mxu0 %vm193_vm1, %v706_v14  ;;  %790 = vmatpush.msrb.mxu2 %v116_v40 }
 0x2ac   :  { %791 = vmatpush.msrb.mxu2 %v115_v41  ;;  %v870_v41 = vld [vmem:[%s2516_s9] sm:$0xff] }
 0x2ae   :  { %792 = vmatpush.msrb.mxu2 %v114_v46  ;;  %v869_v46 = vld [vmem:[%s2515_s8 + $0x18] sm:$0xff] }
 0x2b0   :  { %793 = vmatpush.msrb.mxu2 %v113_v47  ;;  %v868_v47 = vld [vmem:[%s2515_s8 + $0x10] sm:$0xff] }
 0x2b1   :  { %1798 = vmatmul.msk.f32.vlgmr.msra.gmra.mxu2 %vm193_vm1, %v633_v50 }
 0x2b7   :  { %v561_v17 = vpop.permute.xlu1 %560 }
 0x2b8   :  { %1795 = vmatmul.msk.f32.vlgmr.msrb.gmra.mxu0 %vm193_vm1, %v561_v17 }
 0x2c0   :  { %1801 = vmatmul.msk.f32.vlgmr.msra.gmra.mxu0 %vm193_vm1, %v704_v18 }
 0x31c   :  { %v320_v20 = vpop.f32.mrf.mxu0 }
 0x324   :  { %v392_v19 = vpop.f32.mrf.mxu2 }
 0x326   :  { %v464_v22 = vpop.f32.mrf.mxu0 }
 0x32c   :  { %v521_v21 = vpop.f32.mrf.mxu2 }
 0x32d   :  { %v524_v23 = vmul.f32 0.35355338, %v521_v21 }
 0x32f   :  { %v525_v24 = vsel %vm193_vm1, %v524_v23, -inf }
 0x330   :  { %526 = vmax.xlane.f32.xlu1 %v525_v24 }
 0x334   :  { %v657_v16 = vpop.f32.mrf.mxu2 }
 0x335   :  { %v660_v25 = vmul.f32 0.35355338, %v657_v16  ;;  %v585_v26 = vpop.f32.mrf.mxu0 }
 0x336   :  { %v588_v27 = vmul.f32 0.35355338, %v585_v26  ;;  %v2001_v26 = vmov 32.0  }
 0x337   :  { %v661_v28 = vsel %vm193_vm1, %v660_v25, -inf }
 0x338   :  { %662 = vmax.xlane.f32.xlu2 %v661_v28  ;;  %v589_v29 = vsel %vm193_vm1, %v588_v27, -inf }
 0x339   :  { %590 = vmax.xlane.f32.xlu0 %v589_v29 }
 0x33d   :  { %v728_v30 = vpop.f32.mrf.mxu0 }
 0x33e   :  { %v731_v31 = vmul.f32 0.35355338, %v728_v30 }
 0x340   :  { %v732_v32 = vsel %vm193_vm1, %v731_v31, -inf }
 0x341   :  { %733 = vmax.xlane.f32.xlu1 %v732_v32 }
 0x34d   :  { %324 = vrot.lane.b32.xlu0 %v320_v20, %s1994_s28 }
 0x350   :  { %396 = vrot.lane.b32.xlu2 %v392_v19, %s1999_s21 }
 0x35a   :  { %468 = vrot.lane.b32.xlu1 %v464_v22, %s2000_s14 }
 0x3a3   :  { %v527_v33 = vpop.xlane.xlu1 %526 }
 0x3a4   :  { %v528_v34 = vsub.f32 %v524_v23, %v527_v33 }
 0x3a6   :  { %v529_v35 = vmul.f32 1.442695, %v528_v34 }
 0x3a8   :  { %1878 = vpow2.f32 %v529_v35 }
 0x3ab   :  { %v663_v36 = vpop.xlane.xlu2 %662 }
 0x3ac   :  { %v664_v37 = vsub.f32 %v660_v25, %v663_v36  ;;  %v591_v38 = vpop.xlane.xlu0 %590 }
 0x3ad   :  { %v592_v39 = vsub.f32 %v588_v27, %v591_v38  ;;  %v872_v38 = vld [vmem:[%s2516_s9 + $0x10] sm:$0xff] }
 0x3ae   :  { %v1879_v42 = vpop.eup %1878  ;;  %v665_v43 = vmul.f32 1.442695, %v664_v37  ;;  %v873_v37 = vld [vmem:[%s2516_s9 + $0x18] sm:$0xff] }
 0x3af   :  { %v593_v44 = vmul.f32 1.442695, %v592_v39  ;;  %v531_v45 = vsel %vm193_vm1, %v1879_v42, 0.0  ;;  %929 = vmatpush.msrb.mxu0 %v873_v37  ;;  %v871_v39 = vld [vmem:[%s2516_s9 + $0x8] sm:$0xff] }
 0x3b0   :  { %1880 = vpow2.f32 %v665_v43  ;;  %532 = vadd.xlane.f32.xlu1 %v531_v45 }
 0x3b1   :  { %1882 = vpow2.f32 %v593_v44  ;;  %930 = vmatpush.msrb.mxu0 %v872_v38 }
 0x3b3   :  { %v397_v57 = vpop.permute.xlu2 %396  ;;  %931 = vmatpush.msrb.mxu0 %v871_v39 }
 0x3b4   :  { %v734_v48 = vpop.xlane.xlu1 %733 }
 0x3b5   :  { %v735_v49 = vsub.f32 %v731_v31, %v734_v48  ;;  %932 = vmatpush.msrb.mxu0 %v870_v41  ;;  %v867_v48 = vld [vmem:[%s2515_s8 + $0x8] sm:$0xff] }
 0x3b6   :  { %v1881_v50 = vpop.eup %1880 }
 0x3b7   :  { %v1883_v51 = vpop.eup %1882  ;;  %v736_v52 = vmul.f32 1.442695, %v735_v49  ;;  %v667_v53 = vsel %vm193_vm1, %v1881_v50, 0.0 }
 0x3b8   :  { %668 = vadd.xlane.f32.xlu2 %v667_v53  ;;  %v595_v54 = vsel %vm193_vm1, %v1883_v51, 0.0 }
 0x3b9   :  { %1884 = vpow2.f32 %v736_v52  ;;  %596 = vadd.xlane.f32.xlu0 %v595_v54 }
 0x3bf   :  { %v1885_v55 = vpop.eup %1884  ;;  %v325_v56 = vpop.permute.xlu0 %324 }
 0x3c0   :  { %328 = vst.msk [vmem:[#allocation2] sm:$0xff] %vm327_vm2, %v325_v56  ;;  %v738_v58 = vsel %vm193_vm1, %v1885_v55, 0.0 }
 0x3c1   :  { %739 = vadd.xlane.f32.xlu1 %v738_v58  ;;  %400 = vst.msk [vmem:[#allocation2] sm:$0xff] %vm399_vm3, %v397_v57  ;;  %v2313_v58 = vld [vmem:[%s2513_s6] ss:$0 sm:$0xff] }
 0x3cc   :  { %v469_v59 = vpop.permute.xlu1 %468 }
 0x3cd   :  { %472 = vst.msk [vmem:[#allocation2] sm:$0xff] %vm471_vm4, %v469_v59  ;;  %601 = vrot.lane.b32.xlu0 %v2213_v11, %s1996_s4 }
 0x3d0   :  { %672 = vrot.lane.b32.xlu2 %v2213_v11, %s1997_s30 }
 0x3d4   :  { %v473_v60 = vld [vmem:[#allocation2] sm:$0xff] }
 0x3d5   :  { %1790 = vmatmul.msk.f32.vlgmr.msrb.gmra.mxu1 %vm117_vm0, %v473_v60 }
 0x3da   :  { %743 = vrot.lane.b32.xlu1 %v2213_v11, %s1998_s0 }
 0x423   :  { %v533_v61 = vpop.xlane.xlu1 %532 }
 0x424   :  { %1886 = vrcp.f32 %v533_v61  ;;  %v2318_v61 = vld [vmem:[%s2514_s7] ss:$0 sm:$0xff] }
 0x42a   :  { %v1887_v62 = vpop.eup %1886 }
 0x42b   :  { %v535_v63 = vmul.f32 %v1887_v62, %v1879_v42  ;;  %v669_v0 = vpop.xlane.xlu2 %668  ;;  %v99_v42 = vld [vmem:[%s2542_s3] sm:$0xff] }
 0x42c   :  { %1888 = vrcp.f32 %v669_v0  ;;  %v597_v3 = vpop.xlane.xlu0 %596  ;;  %1806 = vmatmul.msk.f32.vlgmr.msrb.gmra.mxu0 %vm117_vm0, %v99_v42 }
 0x42d   :  { %1793 = vmatmul.msk.f32.vlgmr.msrb.gmra.mxu3 %vm193_vm1, %v535_v63  ;;  %1890 = vrcp.f32 %v597_v3 }
 0x432   :  { %v1889_v1 = vpop.eup %1888 }
 0x433   :  { %v671_v2 = vmul.f32 %v1889_v1, %v1881_v50  ;;  %v673_v5 = vpop.permute.xlu2 %672  ;;  %v1891_v7 = vpop.eup %1890 }
 0x434   :  { %693 = vmatpush.msra.mxu3 %v673_v5  ;;  %v599_v8 = vmul.f32 %v1891_v7, %v1883_v51  ;;  %v740_v10 = vpop.xlane.xlu1 %739  ;;  %v877_v5 = vld [vmem:[%s2517_s10 + $0x18] sm:$0xff]  ;;  %v876_v7 = vld [vmem:[%s2517_s10 + $0x10] sm:$0xff] }
 0x435   :  { %1799 = vmatmul.msk.f32.vlgmr.msra.gmra.mxu3 %vm193_vm1, %v671_v2  ;;  %1892 = vrcp.f32 %v740_v10  ;;  %v875_v10 = vld [vmem:[%s2517_s10 + $0x8] sm:$0xff] }
 0x436   :  { %1894 = vrcp.f32 %v2001_v26  ;;  %900 = vmatpush.msrb.mxu3 %v869_v46 }
 0x438   :  { %901 = vmatpush.msrb.mxu3 %v868_v47 }
 0x43a   :  { %902 = vmatpush.msrb.mxu3 %v867_v48 }
 0x43b   :  { %v1893_v11 = vpop.eup %1892 }
 0x43c   :  { %v742_v12 = vmul.f32 %v1893_v11, %v1885_v55  ;;  %v1895_v27 = vpop.eup %1894 }
 0x43d   :  { %v812_v28 = vmul.f32 32.0, %v1895_v27  ;;  %vm816_vm5 = vweird.f32 %v1895_v27 }
 0x43f   :  { %v602_v9 = vpop.permute.xlu0 %601 }
 0x440   :  { %622 = vmatpush.msra.mxu1 %v602_v9  ;;  %v100_v9 = vld [vmem:[%s2542_s3 + $0x8] sm:$0xff] }
 0x441   :  { %1796 = vmatmul.msk.f32.vlgmr.msra.gmra.mxu1 %vm193_vm1, %v599_v8  ;;  %1807 = vmatmul.msk.f32.gmra.mxu0 %vm117_vm0, %v100_v9 }
 0x44c   :  { %v744_v13 = vpop.permute.xlu1 %743 }
 0x44d   :  { %764 = vmatpush.msrb.mxu1 %v744_v13 }
 0x44e   :  { %1802 = vmatmul.msk.f32.vlgmr.msrb.gmra.mxu1 %vm193_vm1, %v742_v12  ;;  %v874_v12 = vld [vmem:[%s2517_s10] sm:$0xff] }
 0x44f   :  { %952 = vmatpush.msra.mxu1 %v877_v5 }
 0x451   :  { %953 = vmatpush.msra.mxu1 %v876_v7 }
 0x452   :  { %v494_v14 = vpop.f32.mrf.mxu1 }
 0x453   :  { %497 = vst.msk [vmem:[#allocation3] sm:$0xff] %vm117_vm0, %v494_v14  ;;  %954 = vmatpush.msra.mxu1 %v875_v10 }
 0x455   :  { %955 = vmatpush.msra.mxu1 %v874_v12 }
 0x456   :  { %1808 = vmatmul.msk.f32.vlgmr.msra.gmra.mxu1 %vm117_vm0, %v99_v42 }
 0x45a   :  { %v799_v20 = vld [vmem:[#allocation3] sm:$0xff] }
 0x45b   :  { %v803_v21 = vadd.f32 %v799_v20, %v2130_v4  ;;  %v813_v4 = vsub.f32 1.0, %v812_v28 }
 0x45d   :  { %v805_v22 = vsel %vm117_vm0, %v803_v21, 0.0  ;;  %v814_v29 = vmul.f32 %v1895_v27, %v813_v4 }
 0x45e   :  { %1809 = vmatmul.msk.f32.gmra.mxu1 %vm117_vm0, %v100_v9 }
 0x45f   :  { %v815_v30 = vadd.f32 %v1895_v27, %v814_v29 }
 0x461   :  { %v2274_v31 = vsel %vm816_vm5, %v1895_v27, %v815_v30 }
 0x4a9   :  { %v934_v0 = vpop.f32.mrf.mxu0 }
 0x4aa   :  { %1810 = vmatpush.xpose.msk.msra.mxu2 %vm193_vm1, %v934_v0 }
 0x4b0   :  { %v556_v15 = vpop.f32.mrf.mxu3 }
 0x4b1   :  { %559 = vst.msk [vmem:[#allocation2] sm:$0xff] %vm193_vm1, %v556_v15 }
 0x4b8   :  { %v695_v18 = vpop.f32.mrf.mxu3 }
 0x4be   :  { %v624_v17 = vpop.f32.mrf.mxu1  ;;  %v937_v47 = vpop.f32.mrf.mxu0 }
 0x4bf   :  { %628 = vrot.lane.b32.xlu0 %v624_v17, %s1994_s28 }
 0x4c7   :  { %699 = vrot.lane.b32.xlu0 %v695_v18, %s1999_s21 }
 0x4cb   :  { %v766_v19 = vpop.f32.mrf.mxu1 }
 0x4cc   :  { %770 = vrot.lane.b32.xlu2 %v766_v19, %s2000_s14 }
 0x4f1   :  { %806 = vadd.xlane.f32.xlu0 %v805_v22 }
 0x526   :  { %v771_v16 = vpop.permute.xlu2 %770 }
 0x531   :  { %v629_v23 = vpop.permute.xlu0 %628 }
 0x532   :  { %631 = vst.msk [vmem:[#allocation2] sm:$0xff] %vm327_vm2, %v629_v23 }
 0x539   :  { %v700_v24 = vpop.permute.xlu0 %699 }
 0x53a   :  { %702 = vst.msk [vmem:[#allocation2] sm:$0xff] %vm399_vm3, %v700_v24 }
 0x53b   :  { %773 = vst.msk [vmem:[#allocation2] sm:$0xff] %vm471_vm4, %v771_v16  ;;  %v957_v16 = vpop.f32.mrf.mxu1 }
 0x542   :  { %v774_v25 = vld [vmem:[#allocation2] sm:$0xff] }
 0x543   :  { %1803 = vmatmul.msk.f32.vlgmr.msrb.gmra.mxu2 %vm117_vm0, %v774_v25 }
 0x544   :  { %1019 = vmatpush.msrb.mxu2 %v957_v16 }
 0x564   :  { %v807_v32 = vpop.xlane.xlu0 %806 }
 0x565   :  { %v818_v33 = vmul.f32 %v2274_v31, %v807_v32 }
 0x567   :  { %v820_v34 = vsub.f32 %v803_v21, %v818_v33 }
 0x569   :  { %v822_v35 = vmul.f32 %v820_v34, %v820_v34 }
 0x56b   :  { %v824_v36 = vsel %vm117_vm0, %v822_v35, 0.0 }
 0x56c   :  { %825 = vadd.xlane.f32.xlu2 %v824_v36  ;;  %v2367_v36 = vpop.f32.mrf.mxu1 }
 0x584   :  { %1027 = vrot.lane.b32.xlu2 %v934_v0, %s1996_s4 }
 0x5c6   :  { %v795_v40 = vpop.f32.mrf.mxu2 }
 0x5c7   :  { %798 = vst.msk [vmem:[#allocation3 + $0x8] sm:$0xff] %vm117_vm0, %v795_v40 }
 0x5ce   :  { %v800_v43 = vld [vmem:[#allocation3 + $0x8] sm:$0xff] }
 0x5cf   :  { %v804_v44 = vadd.f32 %v800_v43, %v2138_v6  ;;  %v866_v6 = vld [vmem:[%s2515_s8] sm:$0xff] }
 0x5d0   :  { %903 = vmatpush.msrb.mxu3 %v866_v6 }
 0x5d1   :  { %v808_v45 = vsel %vm117_vm0, %v804_v44, 0.0 }
 0x5d2   :  { %809 = vadd.xlane.f32.xlu1 %v808_v45 }
 0x5df   :  { %v826_v49 = vpop.xlane.xlu2 %825 }
 0x5e0   :  { %v830_v50 = vmul.f32 %v826_v49, %v2274_v31 }
 0x5e2   :  { %v832_v51 = vadd.f32 1e-05, %v830_v50 }
 0x5e4   :  { %1896 = vrsqrt.f32 %v832_v51  ;;  %vm840_vm7 = vweird.f32 %v832_v51 }
 0x5e7   :  { %v1028_v8 = vpop.permute.xlu2 %1027 }
 0x5e8   :  { %1813 = vmatpush.xpose.msk.msra.mxu3 %vm193_vm1, %v1028_v8 }
 0x5ea   :  { %v1897_v52 = vpop.eup %1896 }
 0x5eb   :  { %v835_v53 = vmul.f32 %v1897_v52, %v832_v51  ;;  %vm841_vm6 = vweird.f32 %v1897_v52  ;;  %1099 = vrot.lane.b32.xlu1 %v934_v0, %s1997_s30 }
 0x5ec   :  { %vm842_vm8 = vmor %vm840_vm7, %vm841_vm6 }
 0x5ed   :  { %v836_v54 = vmul.f32 %v1897_v52, %v835_v53 }
 0x5ef   :  { %v837_v55 = vmul.f32 0.5, %v836_v54 }
 0x5f1   :  { %v838_v56 = vsub.f32 1.5, %v837_v55 }
 0x5f3   :  { %v839_v57 = vmul.f32 %v1897_v52, %v838_v56 }
 0x5f5   :  { %v843_v59 = vsel %vm842_vm8, %v1897_v52, %v839_v57 }
 0x5f6   :  { %v854_v60 = vmul.f32 %v843_v59, %v820_v34 }
 0x5f8   :  { %v859_v62 = vmul.f32 %v2313_v58, %v854_v60 }
 0x5fa   :  { %v2322_v63 = vadd.f32 %v2318_v61, %v859_v62 }
 0x5fc   :  { %1804 = vmatmul.msk.f32.vlgmr.msrb.gmra.mxu3 %vm117_vm0, %v2322_v63 }
 0x645   :  { %v810_v2 = vpop.xlane.xlu1 %809 }
 0x646   :  { %v819_v3 = vmul.f32 %v2274_v31, %v810_v2 }
 0x648   :  { %v821_v11 = vsub.f32 %v804_v44, %v819_v3 }
 0x64a   :  { %v823_v13 = vmul.f32 %v821_v11, %v821_v11 }
 0x64c   :  { %v827_v14 = vsel %vm117_vm0, %v823_v13, 0.0 }
 0x65d   :  { %v1100_v15 = vpop.permute.xlu1 %1099 }
 0x65e   :  { %1816 = vmatpush.xpose.msk.msrb.mxu1 %vm193_vm1, %v1100_v15 }
 0x67f   :  { %v905_v1 = vpop.f32.mrf.mxu3 }
 0x680   :  { %1168 = vrot.lane.b32.xlu1 %v905_v1, %s1998_s0  ;;  %1097 = vrot.lane.b32.xlu2 %v905_v1, %s1997_s30 }
 0x681   :  { %1025 = vrot.lane.b32.xlu0 %v905_v1, %s1996_s4  ;;  %1811 = vmatmul.msk.f32.vlgmr.msra.gmra.mxu2 %vm193_vm1, %v905_v1 }
 0x688   :  { %1066 = vrot.lane.b32.xlu1 %v957_v16, %s1996_s4 }
 0x6ab   :  { %828 = vadd.xlane.f32.xlu0 %v827_v14 }
 0x6bf   :  { %1170 = vrot.lane.b32.xlu0 %v934_v0, %s1998_s0 }
 0x6da   :  { %v1098_v17 = vpop.permute.xlu2 %1097 }
 0x6db   :  { %1817 = vmatmul.msk.f32.vlgmr.msrb.gmra.mxu1 %vm193_vm1, %v1098_v17 }
 0x6f2   :  { %v1169_v37 = vpop.permute.xlu1 %1168 }
 0x6f3   :  { %v1026_v21 = vpop.permute.xlu0 %1025 }
 0x6fa   :  { %v1067_v46 = vpop.permute.xlu1 %1066 }
 0x6fb   :  { %1087 = vmatpush.msra.mxu0 %v1067_v46 }
 0x704   :  { %v986_v18 = vpop.f32.mrf.mxu2 }
 0x705   :  { %v989_v19 = vmul.f32 0.35355338, %v986_v18 }
 0x707   :  { %v990_v20 = vsel %vm193_vm1, %v989_v19, -inf }
 0x708   :  { %991 = vmax.xlane.f32.xlu2 %v990_v20 }
 0x71e   :  { %v829_v22 = vpop.xlane.xlu0 %828 }
 0x71f   :  { %v831_v23 = vmul.f32 %v829_v22, %v2274_v31 }
 0x721   :  { %v833_v24 = vadd.f32 1e-05, %v831_v23 }
 0x723   :  { %1898 = vrsqrt.f32 %v833_v24  ;;  %vm850_vm10 = vweird.f32 %v833_v24 }
 0x729   :  { %v1899_v25 = vpop.eup %1898 }
 0x72a   :  { %v845_v26 = vmul.f32 %v1899_v25, %v833_v24  ;;  %vm851_vm9 = vweird.f32 %v1899_v25 }
 0x72b   :  { %vm852_vm11 = vmor %vm850_vm10, %vm851_vm9 }
 0x72c   :  { %v846_v27 = vmul.f32 %v1899_v25, %v845_v26 }
 0x72e   :  { %v847_v28 = vmul.f32 0.5, %v846_v27 }
 0x730   :  { %v848_v4 = vsub.f32 1.5, %v847_v28 }
 0x731   :  { %v1171_v29 = vpop.permute.xlu0 %1170 }
 0x732   :  { %v849_v30 = vmul.f32 %v1899_v25, %v848_v4  ;;  %1819 = vmatpush.xpose.msk.msrb.mxu3 %vm193_vm1, %v1171_v29 }
 0x734   :  { %v853_v32 = vsel %vm852_vm11, %v1899_v25, %v849_v30 }
 0x735   :  { %v855_v33 = vmul.f32 %v853_v32, %v821_v11 }
 0x737   :  { %v860_v34 = vmul.f32 %v2313_v58, %v855_v33 }
 0x739   :  { %v2363_v35 = vadd.f32 %v2318_v61, %v860_v34 }
 0x73b   :  { %1805 = vmatmul.msk.f32.gmra.mxu3 %vm117_vm0, %v2363_v35 }
 0x743   :  { %1814 = vmatmul.msk.f32.vlgmr.msra.gmra.mxu3 %vm193_vm1, %v1026_v21 }
 0x744   :  { %1320 = vmatpush.msra.mxu3 %v2367_v36 }
 0x74b   :  { %1820 = vmatmul.msk.f32.vlgmr.msrb.gmra.mxu3 %vm193_vm1, %v1169_v37 }
 0x758   :  { %v1122_v38 = vpop.f32.mrf.mxu1 }
 0x759   :  { %v1125_v39 = vmul.f32 0.35355338, %v1122_v38 }
 0x75b   :  { %v1126_v40 = vsel %vm193_vm1, %v1125_v39, -inf }
 0x75c   :  { %1127 = vmax.xlane.f32.xlu0 %v1126_v40 }
 0x770   :  { %1137 = vrot.lane.b32.xlu0 %v957_v16, %s1997_s30 }
 0x77b   :  { %v992_v41 = vpop.xlane.xlu2 %991 }
 0x77c   :  { %v993_v42 = vsub.f32 %v989_v19, %v992_v41 }
 0x77e   :  { %v994_v43 = vmul.f32 1.442695, %v993_v42 }
 0x780   :  { %1900 = vpow2.f32 %v994_v43 }
 0x786   :  { %v1901_v44 = vpop.eup %1900 }
 0x787   :  { %v996_v45 = vsel %vm193_vm1, %v1901_v44, 0.0 }
 0x79a   :  { %997 = vadd.xlane.f32.xlu0 %v996_v45 }
 0x7ae   :  { %1400 = vrot.lane.b32.xlu0 %v937_v47, %s1997_s30 }
 0x7be   :  { %v908_v48 = vpop.f32.mrf.mxu3 }
 0x7bf   :  { %1398 = vrot.lane.b32.xlu0 %v908_v48, %s1997_s30 }
 0x7c6   :  { %v1050_v6 = vpop.f32.mrf.mxu3 }
 0x7c7   :  { %v1053_v49 = vmul.f32 0.35355338, %v1050_v6  ;;  %1471 = vrot.lane.b32.xlu0 %v937_v47, %s1998_s0 }
 0x7c9   :  { %v1054_v50 = vsel %vm193_vm1, %v1053_v49, -inf }
 0x7ca   :  { %1055 = vmax.xlane.f32.xlu1 %v1054_v50 }
 0x7ce   :  { %v1193_v56 = vpop.f32.mrf.mxu3 }
 0x7cf   :  { %v1128_v51 = vpop.xlane.xlu0 %1127  ;;  %v1196_v57 = vmul.f32 0.35355338, %v1193_v56  ;;  %v880_v56 = vld [vmem:[#allocation4 + $0x10] sm:$0xff] }
 0x7d0   :  { %v1129_v52 = vsub.f32 %v1125_v39, %v1128_v51 }
 0x7d1   :  { %v1197_v59 = vsel %vm193_vm1, %v1196_v57, -inf }
 0x7d2   :  { %v1130_v53 = vmul.f32 1.442695, %v1129_v52 }
 0x7d4   :  { %1902 = vpow2.f32 %v1130_v53 }
 0x7da   :  { %v1903_v54 = vpop.eup %1902 }
 0x7db   :  { %v1132_v55 = vsel %vm193_vm1, %v1903_v54, 0.0 }
 0x7dc   :  { %1133 = vadd.xlane.f32.xlu2 %v1132_v55  ;;  %v881_v55 = vld [vmem:[#allocation4 + $0x18] sm:$0xff] }
 0x7dd   :  { %1255 = vmatpush.msra.mxu1 %v881_v55 }
 0x7df   :  { %1256 = vmatpush.msra.mxu1 %v880_v56 }
 0x7e2   :  { %v1138_v58 = vpop.permute.xlu0 %1137 }
 0x7e3   :  { %1158 = vmatpush.msra.mxu2 %v1138_v58  ;;  %1328 = vrot.lane.b32.xlu1 %v937_v47, %s1996_s4  ;;  %v878_v58 = vld [vmem:[#allocation4] sm:$0xff] }
 0x7e4   :  { %1198 = vmax.xlane.f32.xlu2 %v1197_v59 }
 0x7fc   :  { %1208 = vrot.lane.b32.xlu2 %v957_v16, %s1998_s0 }
 0x80d   :  { %v998_v60 = vpop.xlane.xlu0 %997 }
 0x80e   :  { %1904 = vrcp.f32 %v998_v60 }
 0x814   :  { %v1905_v61 = vpop.eup %1904 }
 0x815   :  { %v1000_v62 = vmul.f32 %v1905_v61, %v1901_v44 }
 0x817   :  { %1812 = vmatmul.msk.f32.vlgmr.msrb.gmra.mxu2 %vm193_vm1, %v1000_v62 }
 0x818   :  { %1823 = vmatpush.xpose.msk.msrb.mxu2 %vm193_vm1, %v937_v47 }
 0x820   :  { %v1401_v12 = vpop.permute.xlu0 %1400 }
 0x831   :  { %v1399_v18 = vpop.permute.xlu0 %1398 }
 0x839   :  { %v1472_v27 = vpop.permute.xlu0 %1471 }
 0x83d   :  { %v1056_v0 = vpop.xlane.xlu1 %1055 }
 0x83e   :  { %v1057_v1 = vsub.f32 %v1053_v49, %v1056_v0 }
 0x840   :  { %v1058_v2 = vmul.f32 1.442695, %v1057_v1 }
 0x842   :  { %1906 = vpow2.f32 %v1058_v2 }
 0x848   :  { %v1907_v3 = vpop.eup %1906 }
 0x849   :  { %v1060_v5 = vsel %vm193_vm1, %v1907_v3, 0.0 }
 0x84a   :  { %1061 = vadd.xlane.f32.xlu1 %v1060_v5 }
 0x84f   :  { %v1134_v7 = vpop.xlane.xlu2 %1133 }
 0x850   :  { %1908 = vrcp.f32 %v1134_v7 }
 0x855   :  { %v1329_v20 = vpop.permute.xlu1 %1328 }
 0x856   :  { %v1909_v8 = vpop.eup %1908 }
 0x857   :  { %v1136_v9 = vmul.f32 %v1909_v8, %v1903_v54  ;;  %v1199_v10 = vpop.xlane.xlu2 %1198 }
 0x858   :  { %v1200_v11 = vsub.f32 %v1196_v57, %v1199_v10  ;;  %v879_v57 = vld [vmem:[#allocation4 + $0x8] sm:$0xff] }
 0x859   :  { %1818 = vmatmul.msk.f32.vlgmr.msra.gmra.mxu2 %vm193_vm1, %v1136_v9  ;;  %1257 = vmatpush.msra.mxu1 %v879_v57 }
 0x85a   :  { %v1201_v13 = vmul.f32 1.442695, %v1200_v11  ;;  %1829 = vmatpush.xpose.msk.msra.mxu2 %vm193_vm1, %v1401_v12 }
 0x85b   :  { %1258 = vmatpush.msra.mxu1 %v878_v58 }
 0x85c   :  { %1910 = vpow2.f32 %v1201_v13 }
 0x85f   :  { %v1209_v14 = vpop.permute.xlu2 %1208 }
 0x860   :  { %1229 = vmatpush.msrb.mxu0 %v1209_v14 }
 0x861   :  { %1824 = vmatmul.msk.f32.vlgmr.msrb.gmra.mxu2 %vm193_vm1, %v908_v48 }
 0x862   :  { %v1911_v15 = vpop.eup %1910  ;;  %1556 = vmatpush.msrb.mxu2 %v881_v55 }
 0x863   :  { %1469 = vrot.lane.b32.xlu1 %v908_v48, %s1998_s0  ;;  %v1203_v17 = vsel %vm193_vm1, %v1911_v15, 0.0 }
 0x864   :  { %1204 = vadd.xlane.f32.xlu2 %v1203_v17  ;;  %1557 = vmatpush.msrb.mxu2 %v880_v56 }
 0x866   :  { %1558 = vmatpush.msrb.mxu2 %v879_v57 }
 0x868   :  { %1559 = vmatpush.msrb.mxu2 %v878_v58 }
 0x869   :  { %1830 = vmatmul.msk.f32.vlgmr.msra.gmra.mxu2 %vm193_vm1, %v1399_v18 }
 0x87c   :  { %1326 = vrot.lane.b32.xlu2 %v908_v48, %s1996_s4 }
 0x89a   :  { %v1021_v19 = vpop.f32.mrf.mxu2 }
 0x89b   :  { %1024 = vst.msk [vmem:[#allocation2] sm:$0xff] %vm193_vm1, %v1021_v19 }
 0x8bd   :  { %v1062_v21 = vpop.xlane.xlu1 %1061 }
 0x8be   :  { %1912 = vrcp.f32 %v1062_v21 }
 0x8c4   :  { %v1913_v22 = vpop.eup %1912 }
 0x8c5   :  { %v1064_v23 = vmul.f32 %v1913_v22, %v1907_v3 }
 0x8c7   :  { %1815 = vmatmul.msk.f32.vlgmr.msra.gmra.mxu0 %vm193_vm1, %v1064_v23 }
 0x8c8   :  { %1826 = vmatpush.xpose.msk.msra.mxu0 %vm193_vm1, %v1329_v20 }
 0x8d5   :  { %v1470_v37 = vpop.permute.xlu1 %1469 }
 0x8d7   :  { %v1205_v24 = vpop.xlane.xlu2 %1204 }
 0x8d8   :  { %1914 = vrcp.f32 %v1205_v24 }
 0x8dc   :  { %v1160_v16 = vpop.f32.mrf.mxu2 }
 0x8de   :  { %v1915_v25 = vpop.eup %1914 }
 0x8df   :  { %v1207_v26 = vmul.f32 %v1915_v25, %v1911_v15  ;;  %v1327_v30 = vpop.permute.xlu2 %1326 }
 0x8e1   :  { %1821 = vmatmul.msk.f32.vlgmr.msrb.gmra.mxu0 %vm193_vm1, %v1207_v26 }
 0x8e2   :  { %1832 = vmatpush.xpose.msk.msrb.mxu0 %vm193_vm1, %v1472_v27 }
 0x8e4   :  { %v1287_v28 = vpop.f32.mrf.mxu2 }
 0x8e5   :  { %v1290_v4 = vmul.f32 0.35355338, %v1287_v28 }
 0x8e7   :  { %v1291_v29 = vsel %vm193_vm1, %v1290_v4, -inf }
 0x8e8   :  { %1292 = vmax.xlane.f32.xlu2 %v1291_v29 }
 0x8e9   :  { %1827 = vmatmul.msk.f32.vlgmr.msra.gmra.mxu0 %vm193_vm1, %v1327_v30 }
 0x8ec   :  { %v1423_v32 = vpop.f32.mrf.mxu2 }
 0x8ed   :  { %v1426_v33 = vmul.f32 0.35355338, %v1423_v32 }
 0x8ef   :  { %v1427_v34 = vsel %vm193_vm1, %v1426_v33, -inf }
 0x8f0   :  { %1428 = vmax.xlane.f32.xlu1 %v1427_v34 }
 0x8f1   :  { %1833 = vmatmul.msk.f32.vlgmr.msrb.gmra.mxu0 %vm193_vm1, %v1470_v37 }
 0x909   :  { %1164 = vrot.lane.b32.xlu1 %v1160_v16, %s1999_s21 }
 0x944   :  { %v1089_v38 = vpop.f32.mrf.mxu0 }
 0x95b   :  { %v1293_v39 = vpop.xlane.xlu2 %1292 }
 0x95c   :  { %v1294_v40 = vsub.f32 %v1290_v4, %v1293_v39 }
 0x95e   :  { %v1295_v41 = vmul.f32 1.442695, %v1294_v40  ;;  %v1231_v42 = vpop.f32.mrf.mxu0 }
 0x960   :  { %1916 = vpow2.f32 %v1295_v41 }
 0x963   :  { %v1429_v43 = vpop.xlane.xlu1 %1428 }
 0x964   :  { %v1430_v44 = vsub.f32 %v1426_v33, %v1429_v43 }
 0x966   :  { %v1917_v45 = vpop.eup %1916  ;;  %v1431_v46 = vmul.f32 1.442695, %v1430_v44  ;;  %v1351_v47 = vpop.f32.mrf.mxu0 }
 0x967   :  { %v1354_v48 = vmul.f32 0.35355338, %v1351_v47  ;;  %v1297_v6 = vsel %vm193_vm1, %v1917_v45, 0.0 }
 0x968   :  { %1918 = vpow2.f32 %v1431_v46  ;;  %1298 = vadd.xlane.f32.xlu2 %v1297_v6  ;;  %v1627_v6 = vld [vmem:[#allocation6 + $0x10] sm:$0xff] }
 0x969   :  { %v1355_v49 = vsel %vm193_vm1, %v1354_v48, -inf }
 0x96a   :  { %1356 = vmax.xlane.f32.xlu0 %v1355_v49  ;;  %v1626_v49 = vld [vmem:[#allocation6 + $0x8] sm:$0xff] }
 0x96e   :  { %v1919_v50 = vpop.eup %1918  ;;  %v1494_v51 = vpop.f32.mrf.mxu0 }
 0x96f   :  { %v1497_v52 = vmul.f32 0.35355338, %v1494_v51  ;;  %v1433_v53 = vsel %vm193_vm1, %v1919_v50, 0.0 }
 0x970   :  { %1434 = vadd.xlane.f32.xlu1 %v1433_v53 }
 0x971   :  { %v1498_v54 = vsel %vm193_vm1, %v1497_v52, -inf }
 0x972   :  { %1499 = vmax.xlane.f32.xlu2 %v1498_v54 }
 0x97b   :  { %v1165_v5 = vpop.permute.xlu1 %1164 }
 0x97e   :  { %1093 = vrot.lane.b32.xlu0 %v1089_v38, %s1994_s28 }
 0x989   :  { %1438 = vrot.lane.b32.xlu1 %v2367_v36, %s1997_s30 }
 0x98a   :  { %1235 = vrot.lane.b32.xlu2 %v1231_v42, %s2000_s14 }
 0x9db   :  { %v1299_v59 = vpop.xlane.xlu2 %1298 }
 0x9dc   :  { %1920 = vrcp.f32 %v1299_v59  ;;  %v1856_v59 = vld [vmem:[%s2519_s12] ss:$0 sm:$0xff] }
 0x9dd   :  { %v1357_v60 = vpop.xlane.xlu0 %1356 }
 0x9de   :  { %v1358_v61 = vsub.f32 %v1354_v48, %v1357_v60  ;;  %v1628_v48 = vld [vmem:[#allocation6 + $0x18] sm:$0xff] }
 0x9e0   :  { %v1359_v62 = vmul.f32 1.442695, %v1358_v61 }
 0x9e2   :  { %v1921_v0 = vpop.eup %1920  ;;  %1922 = vpow2.f32 %v1359_v62  ;;  %v1857_v62 = vld [vmem:[%s2520_s13] ss:$0 sm:$0xff] }
 0x9e3   :  { %v1301_v1 = vmul.f32 %v1921_v0, %v1917_v45  ;;  %v1435_v10 = vpop.xlane.xlu1 %1434 }
 0x9e5   :  { %1825 = vmatmul.msk.f32.vlgmr.msra.gmra.mxu3 %vm193_vm1, %v1301_v1  ;;  %v1500_v2 = vpop.xlane.xlu2 %1499 }
 0x9e6   :  { %v1501_v3 = vsub.f32 %v1497_v52, %v1500_v2  ;;  %v1637_v2 = vld [vmem:[%s2523_s16 + $0x38] sm:$0xff] }
 0x9e7   :  { %1691 = vmatpush.msra.mxu0 %v1637_v2 }
 0x9e8   :  { %v1923_v7 = vpop.eup %1922  ;;  %v1502_v8 = vmul.f32 1.442695, %v1501_v3  ;;  %v1636_v3 = vld [vmem:[%s2523_s16 + $0x30] sm:$0xff] }
 0x9e9   :  { %v1361_v9 = vsel %vm193_vm1, %v1923_v7, 0.0  ;;  %1692 = vmatpush.msra.mxu0 %v1636_v3 }
 0x9ea   :  { %1924 = vpow2.f32 %v1502_v8  ;;  %1362 = vadd.xlane.f32.xlu0 %v1361_v9  ;;  %v1633_v8 = vld [vmem:[%s2523_s16 + $0x18] sm:$0xff] }
 0x9eb   :  { %1926 = vrcp.f32 %v1435_v10 }
 0x9ed   :  { %v1236_v14 = vpop.permute.xlu2 %1235 }
 0x9f0   :  { %v1925_v11 = vpop.eup %1924  ;;  %v1094_v12 = vpop.permute.xlu0 %1093 }
 0x9f1   :  { %1096 = vst.msk [vmem:[#allocation2] sm:$0xff] %vm327_vm2, %v1094_v12  ;;  %v1504_v13 = vsel %vm193_vm1, %v1925_v11, 0.0  ;;  %v1927_v15 = vpop.eup %1926 }
 0x9f2   :  { %1167 = vst.msk [vmem:[#allocation2] sm:$0xff] %vm399_vm3, %v1165_v5  ;;  %1505 = vadd.xlane.f32.xlu2 %v1504_v13  ;;  %v1437_v18 = vmul.f32 %v1927_v15, %v1919_v50  ;;  %v1625_v50 = vld [vmem:[#allocation6] sm:$0xff]  ;;  %v1635_v5 = vld [vmem:[%s2523_s16 + $0x28] sm:$0xff] }
 0x9f3   :  { %1238 = vst.msk [vmem:[#allocation2] sm:$0xff] %vm471_vm4, %v1236_v14  ;;  %1693 = vmatpush.msra.mxu0 %v1635_v5  ;;  %v1632_v14 = vld [vmem:[%s2523_s16 + $0x10] sm:$0xff]  ;;  %v1631_v15 = vld [vmem:[%s2523_s16 + $0x8] sm:$0xff] }
 0x9fa   :  { %v1239_v17 = vld [vmem:[#allocation2] sm:$0xff] }
 0x9fb   :  { %v1439_v19 = vpop.permute.xlu1 %1438  ;;  %1822 = vmatmul.msk.f32.vlgmr.msra.gmra.mxu1 %vm117_vm0, %v1239_v17  ;;  %v1630_v17 = vld [vmem:[%s2523_s16] sm:$0xff] }
 0x9fc   :  { %1459 = vmatpush.msrb.mxu3 %v1439_v19 }
 0x9fd   :  { %1831 = vmatmul.msk.f32.vlgmr.msrb.gmra.mxu3 %vm193_vm1, %v1437_v18  ;;  %v1858_v18 = vld [vmem:[%s2522_s15] ss:$0 sm:$0xff] }
 0x9fe   :  { %1367 = vrot.lane.b32.xlu0 %v2367_v36, %s1996_s4  ;;  %1660 = vmatpush.msra.mxu3 %v1628_v48 }
 0xa00   :  { %1661 = vmatpush.msra.mxu3 %v1627_v6 }
 0xa02   :  { %1662 = vmatpush.msra.mxu3 %v1626_v49 }
 0xa04   :  { %1663 = vmatpush.msra.mxu3 %v1625_v50 }
 0xa0a   :  { %1509 = vrot.lane.b32.xlu2 %v2367_v36, %s1998_s0 }
 0xa5d   :  { %v1363_v20 = vpop.xlane.xlu0 %1362 }
 0xa5e   :  { %1928 = vrcp.f32 %v1363_v20 }
 0xa64   :  { %v1929_v23 = vpop.eup %1928 }
 0xa65   :  { %v1506_v21 = vpop.xlane.xlu2 %1505  ;;  %v1365_v24 = vmul.f32 %v1929_v23, %v1923_v7  ;;  %v1634_v7 = vld [vmem:[%s2523_s16 + $0x20] sm:$0xff] }
 0xa66   :  { %1930 = vrcp.f32 %v1506_v21  ;;  %1694 = vmatpush.msra.mxu0 %v1634_v7 }
 0xa68   :  { %v1322_v22 = vpop.f32.mrf.mxu3  ;;  %1695 = vmatpush.msra.mxu0 %v1633_v8 }
 0xa69   :  { %1325 = vst.msk [vmem:[#allocation2] sm:$0xff] %vm193_vm1, %v1322_v22 }
 0xa6a   :  { %1696 = vmatpush.msra.mxu0 %v1632_v14 }
 0xa6c   :  { %v1931_v26 = vpop.eup %1930  ;;  %1697 = vmatpush.msra.mxu0 %v1631_v15 }
 0xa6d   :  { %v1510_v25 = vpop.permute.xlu2 %1509  ;;  %v1508_v27 = vmul.f32 %v1931_v26, %v1925_v11 }
 0xa6e   :  { %1698 = vmatpush.msra.mxu0 %v1630_v17 }
 0xa70   :  { %v1368_v16 = vpop.permute.xlu0 %1367 }
 0xa71   :  { %1388 = vmatpush.msrb.mxu1 %v1368_v16 }
 0xa72   :  { %1828 = vmatmul.msk.f32.vlgmr.msrb.gmra.mxu1 %vm193_vm1, %v1365_v24 }
 0xa73   :  { %1530 = vmatpush.msra.mxu1 %v1510_v25 }
 0xa78   :  { %v1260_v28 = vpop.f32.mrf.mxu1 }
 0xa79   :  { %1263 = vst.msk [vmem:[#allocation3] sm:$0xff] %vm117_vm0, %v1260_v28 }
 0xa7a   :  { %1834 = vmatmul.msk.f32.vlgmr.msra.gmra.mxu1 %vm193_vm1, %v1508_v27 }
 0xa80   :  { %v1461_v4 = vpop.f32.mrf.mxu3  ;;  %v1565_v30 = vld [vmem:[#allocation3] sm:$0xff] }
 0xa81   :  { %v1569_v32 = vadd.f32 %v1565_v30, %v2322_v63 }
 0xa83   :  { %v1571_v33 = vsel %vm117_vm0, %v1569_v32, 0.0 }
 0xaef   :  { %v1390_v36 = vpop.f32.mrf.mxu1 }
 0xaf0   :  { %1394 = vrot.lane.b32.xlu0 %v1390_v36, %s1994_s28 }
 0xaf7   :  { %v1532_v29 = vpop.f32.mrf.mxu1 }
 0xaf8   :  { %1465 = vrot.lane.b32.xlu0 %v1461_v4, %s1999_s21  ;;  %1536 = vrot.lane.b32.xlu1 %v1532_v29, %s2000_s14 }
 0xb22   :  { %1572 = vadd.xlane.f32.xlu0 %v1571_v33  ;;  %v1859_v33 = vld [vmem:[%s2524_s17] ss:$0 sm:$0xff] }
 0xb62   :  { %v1395_v34 = vpop.permute.xlu0 %1394 }
 0xb63   :  { %1397 = vst.msk [vmem:[#allocation2] sm:$0xff] %vm327_vm2, %v1395_v34 }
 0xb6a   :  { %v1466_v37 = vpop.permute.xlu0 %1465  ;;  %v1537_v38 = vpop.permute.xlu1 %1536 }
 0xb6b   :  { %1468 = vst.msk [vmem:[#allocation2] sm:$0xff] %vm399_vm3, %v1466_v37 }
 0xb6c   :  { %1539 = vst.msk [vmem:[#allocation2] sm:$0xff] %vm471_vm4, %v1537_v38 }
 0xb73   :  { %v1540_v39 = vld [vmem:[#allocation2] sm:$0xff] }
 0xb74   :  { %1835 = vmatmul.msk.f32.vlgmr.msrb.gmra.mxu2 %vm117_vm0, %v1540_v39 }
 0xb95   :  { %v1573_v40 = vpop.xlane.xlu0 %1572 }
 0xb96   :  { %v1577_v41 = vmul.f32 %v1573_v40, %v2274_v31 }
 0xb98   :  { %v1579_v42 = vsub.f32 %v1569_v32, %v1577_v41 }
 0xb9a   :  { %v1581_v63 = vmul.f32 %v1579_v42, %v1579_v42 }
 0xb9c   :  { %v1583_v43 = vsel %vm117_vm0, %v1581_v63, 0.0 }
 0xb9d   :  { %1584 = vadd.xlane.f32.xlu2 %v1583_v43 }
 0xbf7   :  { %v1561_v44 = vpop.f32.mrf.mxu2 }
 0xbf8   :  { %1564 = vst.msk [vmem:[#allocation3 + $0x8] sm:$0xff] %vm117_vm0, %v1561_v44 }
 0xbff   :  { %v1566_v45 = vld [vmem:[#allocation3 + $0x8] sm:$0xff] }
 0xc00   :  { %v1570_v46 = vadd.f32 %v1566_v45, %v2363_v35 }
 0xc02   :  { %v1574_v47 = vsel %vm117_vm0, %v1570_v46, 0.0 }
 0xc03   :  { %1575 = vadd.xlane.f32.xlu1 %v1574_v47 }
 0xc10   :  { %v1585_v51 = vpop.xlane.xlu2 %1584 }
 0xc11   :  { %v1589_v52 = vmul.f32 %v1585_v51, %v2274_v31 }
 0xc13   :  { %v1591_v53 = vadd.f32 1e-05, %v1589_v52 }
 0xc15   :  { %1932 = vrsqrt.f32 %v1591_v53  ;;  %vm1599_vm13 = vweird.f32 %v1591_v53 }
 0xc1b   :  { %v1933_v54 = vpop.eup %1932 }
 0xc1c   :  { %v1594_v55 = vmul.f32 %v1933_v54, %v1591_v53  ;;  %vm1600_vm12 = vweird.f32 %v1933_v54 }
 0xc1d   :  { %vm1601_vm14 = vmor %vm1599_vm13, %vm1600_vm12 }
 0xc1e   :  { %v1595_v56 = vmul.f32 %v1933_v54, %v1594_v55 }
 0xc20   :  { %v1596_v35 = vmul.f32 0.5, %v1595_v56 }
 0xc22   :  { %v1597_v57 = vsub.f32 1.5, %v1596_v35 }
 0xc24   :  { %v1598_v58 = vmul.f32 %v1933_v54, %v1597_v57 }
 0xc26   :  { %v1602_v60 = vsel %vm1601_vm14, %v1933_v54, %v1598_v58  ;;  %v1860_v58 = vld [vmem:[%s2525_s18] ss:$0 sm:$0xff] }
 0xc27   :  { %v1613_v61 = vmul.f32 %v1602_v60, %v1579_v42  ;;  %v1861_v60 = vld [vmem:[%s2526_s19] ss:$0 sm:$0xff] }
 0xc29   :  { %v1618_v0 = vmul.f32 %v1856_v59, %v1613_v61 }
 0xc2b   :  { %v1623_v1 = vadd.f32 %v1857_v62, %v1618_v0 }
 0xc2d   :  { %1836 = vmatmul.msk.f32.vlgmr.msra.gmra.mxu3 %vm117_vm0, %v1623_v1 }
 0xc76   :  { %v1576_v9 = vpop.xlane.xlu1 %1575 }
 0xc77   :  { %v1578_v10 = vmul.f32 %v1576_v9, %v2274_v31 }
 0xc79   :  { %v1580_v11 = vsub.f32 %v1570_v46, %v1578_v10 }
 0xc7b   :  { %v1582_v12 = vmul.f32 %v1580_v11, %v1580_v11 }
 0xc7d   :  { %v1586_v13 = vsel %vm117_vm0, %v1582_v12, 0.0 }
 0xc7e   :  { %1587 = vadd.xlane.f32.xlu0 %v1586_v13 }
 0xcb0   :  { %v1665_v19 = vpop.f32.mrf.mxu3 }
 0xcb1   :  { %v1666_v20 = vadd.f32 %v1858_v18, %v1665_v19 }
 0xcb3   :  { %v1671_v21 = vmax.f32 %v1666_v20, 0.0 }
 0xcb5   :  { %1838 = vmatmul.msk.f32.vlgmr.msra.gmra.mxu0 %vm1676_vm15, %v1671_v21 }
 0xcf1   :  { %v1588_v22 = vpop.xlane.xlu0 %1587 }
 0xcf2   :  { %v1590_v23 = vmul.f32 %v1588_v22, %v2274_v31 }
 0xcf4   :  { %v1592_v24 = vadd.f32 1e-05, %v1590_v23 }
 0xcf6   :  { %1934 = vrsqrt.f32 %v1592_v24  ;;  %vm1609_vm2 = vweird.f32 %v1592_v24 }
 0xcfc   :  { %v1935_v16 = vpop.eup %1934 }
 0xcfd   :  { %v1604_v25 = vmul.f32 %v1935_v16, %v1592_v24  ;;  %vm1610_vm1 = vweird.f32 %v1935_v16 }
 0xcfe   :  { %vm1611_vm3 = vmor %vm1609_vm2, %vm1610_vm1 }
 0xcff   :  { %v1605_v26 = vmul.f32 %v1935_v16, %v1604_v25 }
 0xd01   :  { %v1606_v27 = vmul.f32 0.5, %v1605_v26 }
 0xd03   :  { %v1607_v28 = vsub.f32 1.5, %v1606_v27 }
 0xd05   :  { %v1608_v36 = vmul.f32 %v1935_v16, %v1607_v28 }
 0xd07   :  { %v1612_v4 = vsel %vm1611_vm3, %v1935_v16, %v1608_v36 }
 0xd08   :  { %v1614_v29 = vmul.f32 %v1612_v4, %v1580_v11 }
 0xd0a   :  { %v1619_v30 = vmul.f32 %v1856_v59, %v1614_v29 }
 0xd0c   :  { %v1624_v32 = vadd.f32 %v1857_v62, %v1619_v30 }
 0xd0e   :  { %1837 = vmatmul.msk.f32.gmra.mxu3 %vm117_vm0, %v1624_v32 }
 0xd32   :  { %v1700_v34 = vpop.f32.mrf.mxu0 }
 0xd33   :  { %v1701_v37 = vadd.f32 %v1859_v33, %v1700_v34 }
 0xd35   :  { %v1708_v38 = vadd.f32 %v1701_v37, %v1623_v1 }
 0xd37   :  { %v1710_v39 = vsel %vm117_vm0, %v1708_v38, 0.0 }
 0xd38   :  { %1711 = vadd.xlane.f32.xlu1 %v1710_v39 }
 0xd91   :  { %v1668_v40 = vpop.f32.mrf.mxu3 }
 0xd92   :  { %v1669_v41 = vadd.f32 %v1858_v18, %v1668_v40 }
 0xd94   :  { %v1672_v42 = vmax.f32 %v1669_v41, 0.0 }
 0xd96   :  { %1839 = vmatmul.msk.f32.gmra.mxu0 %vm1676_vm15, %v1672_v42 }
 0xdab   :  { %v1712_v63 = vpop.xlane.xlu1 %1711 }
 0xdac   :  { %v1716_v43 = vmul.f32 %v1712_v63, %v2274_v31 }
 0xdae   :  { %v1718_v44 = vsub.f32 %v1708_v38, %v1716_v43 }
 0xdb0   :  { %v1720_v45 = vmul.f32 %v1718_v44, %v1718_v44 }
 0xdb2   :  { %v1722_v46 = vsel %vm117_vm0, %v1720_v45, 0.0 }
 0xdb3   :  { %1723 = vadd.xlane.f32.xlu0 %v1722_v46 }
 0xe13   :  { %v1703_v47 = vpop.f32.mrf.mxu0 }
 0xe14   :  { %v1704_v48 = vadd.f32 %v1859_v33, %v1703_v47 }
 0xe16   :  { %v1709_v6 = vadd.f32 %v1704_v48, %v1624_v32 }
 0xe18   :  { %v1713_v49 = vsel %vm117_vm0, %v1709_v6, 0.0 }
 0xe19   :  { %1714 = vadd.xlane.f32.xlu2 %v1713_v49 }
 0xe26   :  { %v1724_v50 = vpop.xlane.xlu0 %1723 }
 0xe27   :  { %v1728_v51 = vmul.f32 %v1724_v50, %v2274_v31 }
 0xe29   :  { %v1730_v52 = vadd.f32 1e-05, %v1728_v51 }
 0xe2b   :  { %1936 = vrsqrt.f32 %v1730_v52  ;;  %vm1738_vm5 = vweird.f32 %v1730_v52 }
 0xe31   :  { %v1937_v53 = vpop.eup %1936 }
 0xe32   :  { %v1733_v54 = vmul.f32 %v1937_v53, %v1730_v52  ;;  %vm1739_vm4 = vweird.f32 %v1937_v53 }
 0xe33   :  { %vm1740_vm6 = vmor %vm1738_vm5, %vm1739_vm4 }
 0xe34   :  { %v1734_v55 = vmul.f32 %v1937_v53, %v1733_v54 }
 0xe36   :  { %v1735_v56 = vmul.f32 0.5, %v1734_v55 }
 0xe38   :  { %v1736_v35 = vsub.f32 1.5, %v1735_v56 }
 0xe3a   :  { %v1737_v57 = vmul.f32 %v1937_v53, %v1736_v35 }
 0xe3c   :  { %v1741_v59 = vsel %vm1740_vm6, %v1937_v53, %v1737_v57 }
 0xe3d   :  { %v1752_v61 = vmul.f32 %v1741_v59, %v1718_v44 }
 0xe3f   :  { %v1757_v62 = vmul.f32 %v1860_v58, %v1752_v61 }
 0xe41   :  { %v1762_v0 = vadd.f32 %v1861_v60, %v1757_v62 }
 0xe43   :  { %1764 = vst.msk [vmem:[%s2527_s20] sm:$0xff] %vm117_vm0, %v1762_v0 }
 0xe8c   :  { %v1715_v1 = vpop.xlane.xlu2 %1714 }
 0xe8d   :  { %v1717_v2 = vmul.f32 %v1715_v1, %v2274_v31 }
 0xe8f   :  { %v1719_v3 = vsub.f32 %v1709_v6, %v1717_v2 }
 0xe91   :  { %v1721_v5 = vmul.f32 %v1719_v3, %v1719_v3 }
 0xe93   :  { %v1725_v7 = vsel %vm117_vm0, %v1721_v5, 0.0 }
 0xe94   :  { %1726 = vadd.xlane.f32.xlu1 %v1725_v7 }
 0xf07   :  { %v1727_v8 = vpop.xlane.xlu1 %1726 }
 0xf08   :  { %v1729_v9 = vmul.f32 %v1727_v8, %v2274_v31 }
 0xf0a   :  { %v1731_v10 = vadd.f32 1e-05, %v1729_v9 }
 0xf0c   :  { %1938 = vrsqrt.f32 %v1731_v10  ;;  %vm1748_vm8 = vweird.f32 %v1731_v10 }
 0xf12   :  { %v1939_v11 = vpop.eup %1938 }
 0xf13   :  { %v1743_v12 = vmul.f32 %v1939_v11, %v1731_v10  ;;  %vm1749_vm7 = vweird.f32 %v1939_v11 }
 0xf14   :  { %vm1750_vm9 = vmor %vm1748_vm8, %vm1749_vm7 }
 0xf15   :  { %v1744_v13 = vmul.f32 %v1939_v11, %v1743_v12 }
 0xf17   :  { %v1745_v14 = vmul.f32 0.5, %v1744_v13 }
 0xf19   :  { %v1746_v15 = vsub.f32 1.5, %v1745_v14 }
 0xf1b   :  { %v1747_v17 = vmul.f32 %v1939_v11, %v1746_v15 }
 0xf1d   :  { %v1751_v18 = vsel %vm1750_vm9, %v1939_v11, %v1747_v17 }
 0xf1e   :  { %v1753_v19 = vmul.f32 %v1751_v18, %v1719_v3 }
 0xf20   :  { %v1758_v20 = vmul.f32 %v1860_v58, %v1753_v19 }
 0xf22   :  { %v1763_v21 = vadd.f32 %v1861_v60, %v1758_v20 }
 0xf24   :  { %1765 = vst.msk [vmem:[%s2527_s20 + $0x8] sm:$0xff] %vm117_vm0, %v1763_v21 }
 0xf25   :  { %1770 = vsyncpa [#allocation5], 1 }
 0xf26   :  { %1771 = vsyncpa [#allocation7], 1 }

// kernel: transformer_forward.7
= control target key start
LH: loop header
LB: loop body
LE: loop exit
PB: predicated region body
PF: predicated region fallthrough
CT: control target
= control target key end

     0   :  { %s2474_s0 = inlined_call_operand.vmem [shape: f32[16,32], index: 0, kind: input, shape index: {}]   ;;  %s2475_s1 = inlined_call_operand.vmem [shape: f32[16,32], index: 1, kind: input, shape index: {}]   ;;  %s2476_s2 = inlined_call_operand.vmem [shape: f32[32,32], index: 2, kind: input, shape index: {}]   ;;  %s2477_s3 = inlined_call_operand.vmem [shape: f32[32,32], index: 3, kind: input, shape index: {}]   ;;  %s2478_s4 = inlined_call_operand.vmem [shape: f32[32,32], index: 4, kind: input, shape index: {}]   ;;  %s2479_s5 = inlined_call_operand.vmem [shape: f32[32,32], index: 5, kind: input, shape index: {}]   ;;  %s2480_s6 = inlined_call_operand.vmem [shape: f32[1,32], index: 6, kind: input, shape index: {}]   ;;  %s2481_s7 = inlined_call_operand.vmem [shape: f32[1,32], index: 7, kind: input, shape index: {}]   ;;  %s2482_s8 = inlined_call_operand.vmem [shape: f32[32,32], index: 8, kind: input, shape index: {}]   ;;  %s2483_s9 = inlined_call_operand.vmem [shape: f32[32,32], index: 9, kind: input, shape index: {}]   ;;  %s2484_s10 = inlined_call_operand.vmem [shape: f32[32,32], index: 10, kind: input, shape index: {}]   ;;  %s2485_s11 = inlined_call_operand.vmem [shape: f32[32,32], index: 11, kind: input, shape index: {}]   ;;  %s2486_s12 = inlined_call_operand.vmem [shape: f32[1,32], index: 12, kind: input, shape index: {}]   ;;  %s2487_s13 = inlined_call_operand.vmem [shape: f32[1,32], index: 13, kind: input, shape index: {}]   ;;  %s2488_s14 = inlined_call_operand.vmem [shape: f32[32,64], index: 14, kind: input, shape index: {}]   ;;  %s2489_s15 = inlined_call_operand.vmem [shape: f32[1,64], index: 15, kind: input, shape index: {}]   ;;  %s2490_s16 = inlined_call_operand.vmem [shape: f32[64,32], index: 16, kind: input, shape index: {}]   ;;  %s2491_s17 = inlined_call_operand.vmem [shape: f32[1,32], index: 17, kind: input, shape index: {}]   ;;  %s2492_s18 = inlined_call_operand.vmem [shape: f32[1,32], index: 18, kind: input, shape index: {}]   ;;  %s2493_s19 = inlined_call_operand.vmem [shape: f32[1,32], index: 19, kind: input, shape index: {}]   ;;  %s2494_s20 = inlined_call_operand.hbm [shape: f32[16,32], index: 20, kind: output, shape index: {}]  }
   0x1   :  { %2500 = sst [smem:[#allocation7_spill]] %s2474_s0 }
   0x2   :  { %2501 = sst [smem:[#allocation8_spill]] %s2475_s1 }
   0x3   :  { %2502 = sst [smem:[#allocation9_spill]] %s2476_s2 }
   0x4   :  { %2503 = sst [smem:[#allocation10_spill]] %s2477_s3 }
   0x5   :  { %2504 = sst [smem:[#allocation11_spill]] %s2478_s4 }
   0x6   :  { %s2505_s23 = sld [smem:[#allocation9_spill]]  ;;  %vm86_vm0 = vcmask 261120  }
   0x7   :  { %s2506_s29 = sld [smem:[#allocation7_spill]] }
   0x8   :  { %s2507_s21 = sld [smem:[#allocation10_spill]] }
   0x9   :  { %s2508_s2 = sld [smem:[#allocation11_spill]] }
   0xc   :  { %v73_v0 = vld [vmem:[%s2505_s23 + $0x18] sm:$0xff]  ;;  %v72_v1 = vld [vmem:[%s2505_s23 + $0x10] sm:$0xff]  ;;  %v71_v2 = vld [vmem:[%s2505_s23 + $0x8] sm:$0xff] }
   0xd   :  { %105 = vmatpush.msra.mxu1 %v73_v0  ;;  %1821 = vmatpush.msra.mxu2 %v73_v0  ;;  %v70_v3 = vld [vmem:[%s2505_s23] sm:$0xff]  ;;  %v2083_v6 = vld [vmem:[%s2506_s29 + $0x8] sm:$0xff] }
   0xe   :  { %v2075_v4 = vld [vmem:[%s2506_s29] sm:$0xff]  ;;  %v77_v5 = vld [vmem:[%s2507_s21 + $0x18] sm:$0xff] }
   0xf   :  { %106 = vmatpush.msra.mxu1 %v72_v1  ;;  %1822 = vmatpush.msra.mxu2 %v72_v1  ;;  %v81_v7 = vld [vmem:[%s2508_s2 + $0x18] sm:$0xff] }
  0x11   :  { %107 = vmatpush.msra.mxu1 %v71_v2  ;;  %1823 = vmatpush.msra.mxu2 %v71_v2 }
  0x13   :  { %108 = vmatpush.msra.mxu1 %v70_v3  ;;  %1824 = vmatpush.msra.mxu2 %v70_v3 }
  0x14   :  { %25 = vsyncpa [#allocation5], 0  ;;  %1753 = vmatmul.msk.f32.vlgmr.msra.gmra.mxu1 %vm86_vm0, %v2075_v4  ;;  %v76_v8 = vld [vmem:[%s2507_s21 + $0x10] sm:$0xff]  ;;  %1754 = vmatmul.msk.f32.vlgmr.msra.gmra.mxu2 %vm86_vm0, %v2083_v6  ;;  %v75_v10 = vld [vmem:[%s2507_s21 + $0x8] sm:$0xff]  ;;  %vm162_vm1 = vcmask 64512   ;;  %s1947_s23 = smov 112  }
  0x15   :  { %v80_v9 = vld [vmem:[%s2508_s2 + $0x10] sm:$0xff]  ;;  %128 = vmatpush.msrb.mxu1 %v77_v5  ;;  %151 = vmatpush.msrb.mxu2 %v81_v7  ;;  %v79_v11 = vld [vmem:[%s2508_s2 + $0x8] sm:$0xff]  ;;  %v74_v12 = vld [vmem:[%s2507_s21] sm:$0xff]  ;;  %s1946_s21 = smov 120   ;;  %s1949_s25 = smov 8   ;;  %vm296_vm2 = vcmask 130112  }
  0x16   :  { %v78_v13 = vld [vmem:[%s2508_s2] sm:$0xff]  ;;  %s1948_s2 = smov 104   ;;  %s1950_s3 = smov 16   ;;  %vm368_vm3 = vcmask 195712   ;;  %vm440_vm4 = vcmask 261312   ;;  %vm1645_vm15 = vcmask 523264  }
  0x17   :  { %129 = vmatpush.msrb.mxu1 %v76_v8  ;;  %152 = vmatpush.msrb.mxu2 %v80_v9  ;;  %s1951_s26 = smov 24   ;;  %s1741_s29 = sshll.u32 %s2494_s20, 4  ;;  %s1742_s29 = int_to_ptr.hbm [resolvable:$true] %s1741_s29 }
  0x18   :  { %s1954_s0 = smov 128  }
  0x19   :  { %130 = vmatpush.msrb.mxu1 %v75_v10  ;;  %153 = vmatpush.msrb.mxu2 %v79_v11 }
  0x1b   :  { %131 = vmatpush.msrb.mxu1 %v74_v12  ;;  %154 = vmatpush.msrb.mxu2 %v78_v13 }
  0x1c   :  { %1755 = vmatmul.msk.f32.vlgmr.msrb.gmra.mxu1 %vm86_vm0, %v2075_v4  ;;  %1757 = vmatmul.msk.f32.vlgmr.msrb.gmra.mxu2 %vm86_vm0, %v2075_v4 }
  0x24   :  { %1756 = vmatmul.msk.f32.gmra.mxu1 %vm86_vm0, %v2083_v6  ;;  %1758 = vmatmul.msk.f32.gmra.mxu2 %vm86_vm0, %v2083_v6 }
  0x91   :  { %v110_v14 = vpop.f32.mrf.mxu1 }
  0x92   :  { %225 = vrot.lane.b32.xlu1 %v110_v14, %s1946_s21 }
  0x97   :  { %v2126_v16 = vpop.f32.mrf.mxu2 }
  0x99   :  { %v133_v15 = vpop.f32.mrf.mxu1 }
  0x9a   :  { %298 = vrot.lane.b32.xlu1 %v110_v14, %s1947_s23  ;;  %372 = vrot.lane.b32.xlu2 %v133_v15, %s1948_s2 }
  0x9b   :  { %227 = vrot.lane.b32.xlu0 %v133_v15, %s1946_s21  ;;  %1759 = vmatpush.xpose.msk.msra.mxu3 %vm162_vm1, %v133_v15 }
  0x9e   :  { %1760 = vmatmul.msk.f32.vlgmr.msra.gmra.mxu3 %vm162_vm1, %v110_v14 }
  0x9f   :  { %v156_v17 = vpop.f32.mrf.mxu2 }
  0xa0   :  { %219 = vmatpush.msra.mxu0 %v156_v17 }
  0xa1   :  { %v136_v27 = vpop.f32.mrf.mxu1 }
  0xa2   :  { %370 = vrot.lane.b32.xlu2 %v110_v14, %s1948_s2 }
  0xa3   :  { %300 = vrot.lane.b32.xlu0 %v133_v15, %s1947_s23 }
  0xa7   :  { %v2158_v11 = vpop.f32.mrf.mxu2 }
  0xaa   :  { %266 = vrot.lane.b32.xlu2 %v156_v17, %s1946_s21 }
  0xab   :  { %338 = vrot.lane.b32.xlu0 %v156_v17, %s1947_s23 }
  0xf4   :  { %v373_v19 = vpop.permute.xlu2 %372 }
  0xfc   :  { %v371_v22 = vpop.permute.xlu2 %370 }
 0x104   :  { %v226_v20 = vpop.permute.xlu1 %225  ;;  %v267_v37 = vpop.permute.xlu2 %266 }
 0x105   :  { %287 = vmatpush.msrb.mxu0 %v267_v37 }
 0x10c   :  { %v299_v23 = vpop.permute.xlu1 %298 }
 0x10d   :  { %v228_v18 = vpop.permute.xlu0 %227 }
 0x10e   :  { %1762 = vmatpush.xpose.msk.msrb.mxu3 %vm162_vm1, %v228_v18 }
 0x111   :  { %1763 = vmatmul.msk.f32.vlgmr.msrb.gmra.mxu3 %vm162_vm1, %v226_v20 }
 0x112   :  { %1768 = vmatpush.xpose.msk.msra.mxu3 %vm162_vm1, %v373_v19 }
 0x115   :  { %v301_v21 = vpop.permute.xlu0 %300 }
 0x116   :  { %1765 = vmatpush.xpose.msk.msra.mxu1 %vm162_vm1, %v301_v21  ;;  %523 = vmatpush.msrb.mxu3 %v2158_v11 }
 0x119   :  { %1766 = vmatmul.msk.f32.vlgmr.msra.gmra.mxu1 %vm162_vm1, %v299_v23  ;;  %1769 = vmatmul.msk.f32.vlgmr.msra.gmra.mxu3 %vm162_vm1, %v371_v22 }
 0x11d   :  { %v339_v28 = vpop.permute.xlu0 %338 }
 0x11e   :  { %359 = vmatpush.msra.mxu2 %v339_v28 }
 0x120   :  { %1772 = vmatpush.xpose.msk.msrb.mxu2 %vm162_vm1, %v136_v27 }
 0x121   :  { %v186_v24 = vpop.f32.mrf.mxu3 }
 0x122   :  { %v189_v25 = vmul.f32 0.35355338, %v186_v24 }
 0x124   :  { %v190_v26 = vsel %vm162_vm1, %v189_v25, -inf }
 0x125   :  { %191 = vmax.xlane.f32.xlu0 %v190_v26 }
 0x139   :  { %603 = vrot.lane.b32.xlu0 %v136_v27, %s1947_s23 }
 0x141   :  { %601 = vrot.lane.b32.xlu0 %v2126_v16, %s1947_s23 }
 0x194   :  { %v250_v29 = vpop.f32.mrf.mxu3 }
 0x195   :  { %v253_v30 = vmul.f32 0.35355338, %v250_v29 }
 0x196   :  { %v323_v31 = vpop.f32.mrf.mxu1 }
 0x197   :  { %v326_v32 = vmul.f32 0.35355338, %v323_v31  ;;  %v254_v33 = vsel %vm162_vm1, %v253_v30, -inf }
 0x198   :  { %255 = vmax.xlane.f32.xlu2 %v254_v33  ;;  %v192_v34 = vpop.xlane.xlu0 %191 }
 0x199   :  { %v193_v35 = vsub.f32 %v189_v25, %v192_v34  ;;  %v327_v36 = vsel %vm162_vm1, %v326_v32, -inf }
 0x19a   :  { %328 = vmax.xlane.f32.xlu1 %v327_v36 }
 0x19b   :  { %v194_v38 = vmul.f32 1.442695, %v193_v35 }
 0x19c   :  { %v395_v39 = vpop.f32.mrf.mxu3 }
 0x19d   :  { %1842 = vpow2.f32 %v194_v38  ;;  %v398_v40 = vmul.f32 0.35355338, %v395_v39 }
 0x19f   :  { %v399_v41 = vsel %vm162_vm1, %v398_v40, -inf }
 0x1a0   :  { %400 = vmax.xlane.f32.xlu2 %v399_v41  ;;  %v84_v41 = vld [vmem:[%s2479_s5 + $0x10] sm:$0xff] }
 0x1a3   :  { %v1843_v42 = vpop.eup %1842 }
 0x1a4   :  { %v196_v43 = vsel %vm162_vm1, %v1843_v42, 0.0 }
 0x1a5   :  { %197 = vadd.xlane.f32.xlu0 %v196_v43 }
 0x1ab   :  { %v604_v44 = vpop.permute.xlu0 %603 }
 0x1b3   :  { %410 = vrot.lane.b32.xlu1 %v156_v17, %s1948_s2  ;;  %v602_v50 = vpop.permute.xlu0 %601 }
 0x1b8   :  { %531 = vrot.lane.b32.xlu2 %v136_v27, %s1946_s21 }
 0x1b9   :  { %674 = vrot.lane.b32.xlu0 %v136_v27, %s1948_s2 }
 0x20b   :  { %v256_v45 = vpop.xlane.xlu2 %255 }
 0x20c   :  { %v257_v46 = vsub.f32 %v253_v30, %v256_v45 }
 0x20d   :  { %v329_v47 = vpop.xlane.xlu1 %328 }
 0x20e   :  { %v258_v48 = vmul.f32 1.442695, %v257_v46  ;;  %v330_v49 = vsub.f32 %v326_v32, %v329_v47  ;;  %v83_v46 = vld [vmem:[%s2479_s5 + $0x8] sm:$0xff]  ;;  %v82_v47 = vld [vmem:[%s2479_s5] sm:$0xff] }
 0x210   :  { %1844 = vpow2.f32 %v258_v48  ;;  %v331_v51 = vmul.f32 1.442695, %v330_v49 }
 0x212   :  { %1846 = vpow2.f32 %v331_v51 }
 0x213   :  { %v401_v52 = vpop.xlane.xlu2 %400 }
 0x214   :  { %v402_v53 = vsub.f32 %v398_v40, %v401_v52  ;;  %v85_v40 = vld [vmem:[%s2479_s5 + $0x18] sm:$0xff]  ;;  %s2509_s5 = sld [smem:[#allocation8_spill]] }
 0x215   :  { %458 = vmatpush.msrb.mxu1 %v85_v40 }
 0x216   :  { %v1845_v54 = vpop.eup %1844  ;;  %v403_v55 = vmul.f32 1.442695, %v402_v53 }
 0x217   :  { %v260_v56 = vsel %vm162_vm1, %v1845_v54, 0.0  ;;  %459 = vmatpush.msrb.mxu1 %v84_v41 }
 0x218   :  { %v1847_v57 = vpop.eup %1846  ;;  %1848 = vpow2.f32 %v403_v55  ;;  %261 = vadd.xlane.f32.xlu2 %v260_v56  ;;  %v198_v58 = vpop.xlane.xlu0 %197 }
 0x219   :  { %1850 = vrcp.f32 %v198_v58  ;;  %v333_v59 = vsel %vm162_vm1, %v1847_v57, 0.0  ;;  %460 = vmatpush.msrb.mxu1 %v83_v46 }
 0x21a   :  { %334 = vadd.xlane.f32.xlu1 %v333_v59 }
 0x21b   :  { %v532_v1 = vpop.permute.xlu2 %531  ;;  %461 = vmatpush.msrb.mxu1 %v82_v47 }
 0x21e   :  { %v1849_v60 = vpop.eup %1848 }
 0x21f   :  { %v1851_v61 = vpop.eup %1850  ;;  %v405_v63 = vsel %vm162_vm1, %v1849_v60, 0.0 }
 0x220   :  { %v200_v62 = vmul.f32 %v1851_v61, %v1843_v42 }
 0x222   :  { %1761 = vmatmul.msk.f32.vlgmr.msra.gmra.mxu0 %vm162_vm1, %v200_v62  ;;  %406 = vadd.xlane.f32.xlu1 %v405_v63 }
 0x225   :  { %v411_v0 = vpop.permute.xlu1 %410 }
 0x226   :  { %431 = vmatpush.msra.mxu0 %v411_v0 }
 0x22b   :  { %v675_v14 = vpop.permute.xlu0 %674 }
 0x230   :  { %672 = vrot.lane.b32.xlu2 %v2126_v16, %s1948_s2 }
 0x23b   :  { %529 = vrot.lane.b32.xlu1 %v2126_v16, %s1946_s21 }
 0x28b   :  { %v262_v2 = vpop.xlane.xlu2 %261 }
 0x28c   :  { %1852 = vrcp.f32 %v262_v2 }
 0x28d   :  { %v335_v3 = vpop.xlane.xlu1 %334 }
 0x28e   :  { %1854 = vrcp.f32 %v335_v3 }
 0x292   :  { %v1853_v5 = vpop.eup %1852 }
 0x293   :  { %v264_v7 = vmul.f32 %v1853_v5, %v1845_v54  ;;  %v673_v18 = vpop.permute.xlu2 %672 }
 0x294   :  { %v1855_v8 = vpop.eup %1854 }
 0x295   :  { %v337_v9 = vmul.f32 %v1855_v8, %v1847_v57  ;;  %1764 = vmatmul.msk.f32.vlgmr.msrb.gmra.mxu0 %vm162_vm1, %v264_v7  ;;  %v407_v10 = vpop.xlane.xlu1 %406 }
 0x296   :  { %1775 = vmatpush.xpose.msk.msrb.mxu0 %vm162_vm1, %v532_v1  ;;  %1856 = vrcp.f32 %v407_v10 }
 0x297   :  { %1767 = vmatmul.msk.f32.vlgmr.msra.gmra.mxu2 %vm162_vm1, %v337_v9 }
 0x298   :  { %1778 = vmatpush.xpose.msk.msra.mxu2 %vm162_vm1, %v604_v44 }
 0x29c   :  { %v1857_v12 = vpop.eup %1856 }
 0x29d   :  { %v409_v13 = vmul.f32 %v1857_v12, %v1849_v60 }
 0x29f   :  { %v221_v15 = vpop.f32.mrf.mxu0  ;;  %1770 = vmatmul.msk.f32.vlgmr.msra.gmra.mxu0 %vm162_vm1, %v409_v13  ;;  %1773 = vmatmul.msk.f32.vlgmr.msrb.gmra.mxu2 %vm162_vm1, %v2126_v16 }
 0x2a0   :  { %224 = vst.msk [vmem:[#allocation2] sm:$0xff] %vm162_vm1, %v221_v15  ;;  %1781 = vmatpush.xpose.msk.msra.mxu0 %vm162_vm1, %v675_v14  ;;  %759 = vmatpush.msrb.mxu2 %v85_v40 }
 0x2a2   :  { %760 = vmatpush.msrb.mxu2 %v84_v41  ;;  %v839_v41 = vld [vmem:[%s2483_s9] sm:$0xff] }
 0x2a4   :  { %761 = vmatpush.msrb.mxu2 %v83_v46  ;;  %v838_v46 = vld [vmem:[%s2482_s8 + $0x18] sm:$0xff] }
 0x2a6   :  { %762 = vmatpush.msrb.mxu2 %v82_v47  ;;  %v837_v47 = vld [vmem:[%s2482_s8 + $0x10] sm:$0xff] }
 0x2a7   :  { %1779 = vmatmul.msk.f32.vlgmr.msra.gmra.mxu2 %vm162_vm1, %v602_v50 }
 0x2ad   :  { %v530_v17 = vpop.permute.xlu1 %529 }
 0x2ae   :  { %1776 = vmatmul.msk.f32.vlgmr.msrb.gmra.mxu0 %vm162_vm1, %v530_v17 }
 0x2b6   :  { %1782 = vmatmul.msk.f32.vlgmr.msra.gmra.mxu0 %vm162_vm1, %v673_v18 }
 0x312   :  { %v289_v20 = vpop.f32.mrf.mxu0 }
 0x31a   :  { %v361_v19 = vpop.f32.mrf.mxu2 }
 0x31c   :  { %v433_v22 = vpop.f32.mrf.mxu0 }
 0x322   :  { %v490_v21 = vpop.f32.mrf.mxu2 }
 0x323   :  { %v493_v23 = vmul.f32 0.35355338, %v490_v21 }
 0x325   :  { %v494_v24 = vsel %vm162_vm1, %v493_v23, -inf }
 0x326   :  { %495 = vmax.xlane.f32.xlu1 %v494_v24 }
 0x32a   :  { %v626_v16 = vpop.f32.mrf.mxu2 }
 0x32b   :  { %v629_v25 = vmul.f32 0.35355338, %v626_v16  ;;  %v554_v26 = vpop.f32.mrf.mxu0 }
 0x32c   :  { %v557_v27 = vmul.f32 0.35355338, %v554_v26  ;;  %v1952_v26 = vmov 32.0  }
 0x32d   :  { %v630_v28 = vsel %vm162_vm1, %v629_v25, -inf }
 0x32e   :  { %631 = vmax.xlane.f32.xlu2 %v630_v28  ;;  %v558_v29 = vsel %vm162_vm1, %v557_v27, -inf }
 0x32f   :  { %559 = vmax.xlane.f32.xlu0 %v558_v29 }
 0x333   :  { %v697_v30 = vpop.f32.mrf.mxu0 }
 0x334   :  { %v700_v31 = vmul.f32 0.35355338, %v697_v30 }
 0x336   :  { %v701_v32 = vsel %vm162_vm1, %v700_v31, -inf }
 0x337   :  { %702 = vmax.xlane.f32.xlu1 %v701_v32 }
 0x343   :  { %293 = vrot.lane.b32.xlu0 %v289_v20, %s1949_s25 }
 0x346   :  { %365 = vrot.lane.b32.xlu2 %v361_v19, %s1950_s3 }
 0x350   :  { %437 = vrot.lane.b32.xlu1 %v433_v22, %s1951_s26 }
 0x399   :  { %v496_v33 = vpop.xlane.xlu1 %495 }
 0x39a   :  { %v497_v34 = vsub.f32 %v493_v23, %v496_v33 }
 0x39c   :  { %v498_v35 = vmul.f32 1.442695, %v497_v34 }
 0x39e   :  { %1858 = vpow2.f32 %v498_v35 }
 0x3a1   :  { %v632_v36 = vpop.xlane.xlu2 %631 }
 0x3a2   :  { %v633_v37 = vsub.f32 %v629_v25, %v632_v36  ;;  %v560_v38 = vpop.xlane.xlu0 %559 }
 0x3a3   :  { %v561_v39 = vsub.f32 %v557_v27, %v560_v38  ;;  %v841_v38 = vld [vmem:[%s2483_s9 + $0x10] sm:$0xff] }
 0x3a4   :  { %v1859_v42 = vpop.eup %1858  ;;  %v634_v43 = vmul.f32 1.442695, %v633_v37  ;;  %v842_v37 = vld [vmem:[%s2483_s9 + $0x18] sm:$0xff] }
 0x3a5   :  { %v562_v44 = vmul.f32 1.442695, %v561_v39  ;;  %v500_v45 = vsel %vm162_vm1, %v1859_v42, 0.0  ;;  %898 = vmatpush.msrb.mxu0 %v842_v37  ;;  %v840_v39 = vld [vmem:[%s2483_s9 + $0x8] sm:$0xff] }
 0x3a6   :  { %1860 = vpow2.f32 %v634_v43  ;;  %501 = vadd.xlane.f32.xlu1 %v500_v45 }
 0x3a7   :  { %1862 = vpow2.f32 %v562_v44  ;;  %899 = vmatpush.msrb.mxu0 %v841_v38 }
 0x3a9   :  { %v366_v57 = vpop.permute.xlu2 %365  ;;  %900 = vmatpush.msrb.mxu0 %v840_v39 }
 0x3aa   :  { %v703_v48 = vpop.xlane.xlu1 %702 }
 0x3ab   :  { %v704_v49 = vsub.f32 %v700_v31, %v703_v48  ;;  %901 = vmatpush.msrb.mxu0 %v839_v41  ;;  %v836_v48 = vld [vmem:[%s2482_s8 + $0x8] sm:$0xff] }
 0x3ac   :  { %v1861_v50 = vpop.eup %1860 }
 0x3ad   :  { %v1863_v51 = vpop.eup %1862  ;;  %v705_v52 = vmul.f32 1.442695, %v704_v49  ;;  %v636_v53 = vsel %vm162_vm1, %v1861_v50, 0.0 }
 0x3ae   :  { %637 = vadd.xlane.f32.xlu2 %v636_v53  ;;  %v564_v54 = vsel %vm162_vm1, %v1863_v51, 0.0 }
 0x3af   :  { %1864 = vpow2.f32 %v705_v52  ;;  %565 = vadd.xlane.f32.xlu0 %v564_v54 }
 0x3b5   :  { %v1865_v55 = vpop.eup %1864  ;;  %v294_v56 = vpop.permute.xlu0 %293 }
 0x3b6   :  { %297 = vst.msk [vmem:[#allocation2] sm:$0xff] %vm296_vm2, %v294_v56  ;;  %v707_v58 = vsel %vm162_vm1, %v1865_v55, 0.0 }
 0x3b7   :  { %708 = vadd.xlane.f32.xlu1 %v707_v58  ;;  %369 = vst.msk [vmem:[#allocation2] sm:$0xff] %vm368_vm3, %v366_v57  ;;  %v2258_v58 = vld [vmem:[%s2480_s6] ss:$0 sm:$0xff] }
 0x3c2   :  { %v438_v59 = vpop.permute.xlu1 %437 }
 0x3c3   :  { %441 = vst.msk [vmem:[#allocation2] sm:$0xff] %vm440_vm4, %v438_v59  ;;  %570 = vrot.lane.b32.xlu0 %v2158_v11, %s1946_s21 }
 0x3c6   :  { %641 = vrot.lane.b32.xlu2 %v2158_v11, %s1947_s23 }
 0x3ca   :  { %v442_v60 = vld [vmem:[#allocation2] sm:$0xff] }
 0x3cb   :  { %1771 = vmatmul.msk.f32.vlgmr.msrb.gmra.mxu1 %vm86_vm0, %v442_v60 }
 0x3d0   :  { %712 = vrot.lane.b32.xlu1 %v2158_v11, %s1948_s2 }
 0x419   :  { %v502_v61 = vpop.xlane.xlu1 %501 }
 0x41a   :  { %1866 = vrcp.f32 %v502_v61  ;;  %v2263_v61 = vld [vmem:[%s2481_s7] ss:$0 sm:$0xff] }
 0x420   :  { %v1867_v62 = vpop.eup %1866 }
 0x421   :  { %v504_v63 = vmul.f32 %v1867_v62, %v1859_v42  ;;  %v638_v0 = vpop.xlane.xlu2 %637  ;;  %v68_v42 = vld [vmem:[%s2509_s5] sm:$0xff] }
 0x422   :  { %1868 = vrcp.f32 %v638_v0  ;;  %v566_v3 = vpop.xlane.xlu0 %565  ;;  %1787 = vmatmul.msk.f32.vlgmr.msrb.gmra.mxu0 %vm86_vm0, %v68_v42 }
 0x423   :  { %1774 = vmatmul.msk.f32.vlgmr.msrb.gmra.mxu3 %vm162_vm1, %v504_v63  ;;  %1870 = vrcp.f32 %v566_v3 }
 0x428   :  { %v1869_v1 = vpop.eup %1868 }
 0x429   :  { %v640_v2 = vmul.f32 %v1869_v1, %v1861_v50  ;;  %v642_v5 = vpop.permute.xlu2 %641  ;;  %v1871_v7 = vpop.eup %1870 }
 0x42a   :  { %662 = vmatpush.msra.mxu3 %v642_v5  ;;  %v568_v8 = vmul.f32 %v1871_v7, %v1863_v51  ;;  %v709_v10 = vpop.xlane.xlu1 %708  ;;  %v846_v5 = vld [vmem:[%s2484_s10 + $0x18] sm:$0xff]  ;;  %v845_v7 = vld [vmem:[%s2484_s10 + $0x10] sm:$0xff] }
 0x42b   :  { %1780 = vmatmul.msk.f32.vlgmr.msra.gmra.mxu3 %vm162_vm1, %v640_v2  ;;  %1872 = vrcp.f32 %v709_v10  ;;  %v844_v10 = vld [vmem:[%s2484_s10 + $0x8] sm:$0xff] }
 0x42c   :  { %1874 = vrcp.f32 %v1952_v26  ;;  %869 = vmatpush.msrb.mxu3 %v838_v46 }
 0x42e   :  { %870 = vmatpush.msrb.mxu3 %v837_v47 }
 0x430   :  { %871 = vmatpush.msrb.mxu3 %v836_v48 }
 0x431   :  { %v1873_v11 = vpop.eup %1872 }
 0x432   :  { %v711_v12 = vmul.f32 %v1873_v11, %v1865_v55  ;;  %v1875_v27 = vpop.eup %1874 }
 0x433   :  { %v781_v28 = vmul.f32 32.0, %v1875_v27  ;;  %vm785_vm5 = vweird.f32 %v1875_v27 }
 0x435   :  { %v571_v9 = vpop.permute.xlu0 %570 }
 0x436   :  { %591 = vmatpush.msra.mxu1 %v571_v9  ;;  %v69_v9 = vld [vmem:[%s2509_s5 + $0x8] sm:$0xff] }
 0x437   :  { %1777 = vmatmul.msk.f32.vlgmr.msra.gmra.mxu1 %vm162_vm1, %v568_v8  ;;  %1788 = vmatmul.msk.f32.gmra.mxu0 %vm86_vm0, %v69_v9 }
 0x442   :  { %v713_v13 = vpop.permute.xlu1 %712 }
 0x443   :  { %733 = vmatpush.msrb.mxu1 %v713_v13 }
 0x444   :  { %1783 = vmatmul.msk.f32.vlgmr.msrb.gmra.mxu1 %vm162_vm1, %v711_v12  ;;  %v843_v12 = vld [vmem:[%s2484_s10] sm:$0xff] }
 0x445   :  { %921 = vmatpush.msra.mxu1 %v846_v5 }
 0x447   :  { %922 = vmatpush.msra.mxu1 %v845_v7 }
 0x448   :  { %v463_v14 = vpop.f32.mrf.mxu1 }
 0x449   :  { %466 = vst.msk [vmem:[#allocation3] sm:$0xff] %vm86_vm0, %v463_v14  ;;  %923 = vmatpush.msra.mxu1 %v844_v10 }
 0x44b   :  { %924 = vmatpush.msra.mxu1 %v843_v12 }
 0x44c   :  { %1789 = vmatmul.msk.f32.vlgmr.msra.gmra.mxu1 %vm86_vm0, %v68_v42 }
 0x450   :  { %v768_v20 = vld [vmem:[#allocation3] sm:$0xff] }
 0x451   :  { %v772_v21 = vadd.f32 %v768_v20, %v2075_v4  ;;  %v782_v4 = vsub.f32 1.0, %v781_v28 }
 0x453   :  { %v774_v22 = vsel %vm86_vm0, %v772_v21, 0.0  ;;  %v783_v29 = vmul.f32 %v1875_v27, %v782_v4 }
 0x454   :  { %1790 = vmatmul.msk.f32.gmra.mxu1 %vm86_vm0, %v69_v9 }
 0x455   :  { %v784_v30 = vadd.f32 %v1875_v27, %v783_v29 }
 0x457   :  { %v2219_v31 = vsel %vm785_vm5, %v1875_v27, %v784_v30 }
 0x49f   :  { %v903_v0 = vpop.f32.mrf.mxu0 }
 0x4a0   :  { %1791 = vmatpush.xpose.msk.msra.mxu2 %vm162_vm1, %v903_v0 }
 0x4a6   :  { %v525_v15 = vpop.f32.mrf.mxu3 }
 0x4a7   :  { %528 = vst.msk [vmem:[#allocation2] sm:$0xff] %vm162_vm1, %v525_v15 }
 0x4ae   :  { %v664_v18 = vpop.f32.mrf.mxu3 }
 0x4b4   :  { %v593_v17 = vpop.f32.mrf.mxu1  ;;  %v906_v47 = vpop.f32.mrf.mxu0 }
 0x4b5   :  { %597 = vrot.lane.b32.xlu0 %v593_v17, %s1949_s25 }
 0x4bd   :  { %668 = vrot.lane.b32.xlu0 %v664_v18, %s1950_s3 }
 0x4c1   :  { %v735_v19 = vpop.f32.mrf.mxu1 }
 0x4c2   :  { %739 = vrot.lane.b32.xlu2 %v735_v19, %s1951_s26 }
 0x4e7   :  { %775 = vadd.xlane.f32.xlu0 %v774_v22 }
 0x51c   :  { %v740_v16 = vpop.permute.xlu2 %739 }
 0x527   :  { %v598_v23 = vpop.permute.xlu0 %597 }
 0x528   :  { %600 = vst.msk [vmem:[#allocation2] sm:$0xff] %vm296_vm2, %v598_v23 }
 0x52f   :  { %v669_v24 = vpop.permute.xlu0 %668 }
 0x530   :  { %671 = vst.msk [vmem:[#allocation2] sm:$0xff] %vm368_vm3, %v669_v24 }
 0x531   :  { %742 = vst.msk [vmem:[#allocation2] sm:$0xff] %vm440_vm4, %v740_v16  ;;  %v926_v16 = vpop.f32.mrf.mxu1 }
 0x538   :  { %v743_v25 = vld [vmem:[#allocation2] sm:$0xff] }
 0x539   :  { %1784 = vmatmul.msk.f32.vlgmr.msrb.gmra.mxu2 %vm86_vm0, %v743_v25 }
 0x53a   :  { %988 = vmatpush.msrb.mxu2 %v926_v16 }
 0x55a   :  { %v776_v32 = vpop.xlane.xlu0 %775 }
 0x55b   :  { %v787_v33 = vmul.f32 %v2219_v31, %v776_v32 }
 0x55d   :  { %v789_v34 = vsub.f32 %v772_v21, %v787_v33 }
 0x55f   :  { %v791_v35 = vmul.f32 %v789_v34, %v789_v34 }
 0x561   :  { %v793_v36 = vsel %vm86_vm0, %v791_v35, 0.0 }
 0x562   :  { %794 = vadd.xlane.f32.xlu2 %v793_v36  ;;  %v2312_v36 = vpop.f32.mrf.mxu1 }
 0x57a   :  { %996 = vrot.lane.b32.xlu2 %v903_v0, %s1946_s21 }
 0x5bc   :  { %v764_v40 = vpop.f32.mrf.mxu2 }
 0x5bd   :  { %767 = vst.msk [vmem:[#allocation3 + $0x8] sm:$0xff] %vm86_vm0, %v764_v40 }
 0x5c4   :  { %v769_v43 = vld [vmem:[#allocation3 + $0x8] sm:$0xff] }
 0x5c5   :  { %v773_v44 = vadd.f32 %v769_v43, %v2083_v6  ;;  %v835_v6 = vld [vmem:[%s2482_s8] sm:$0xff] }
 0x5c6   :  { %872 = vmatpush.msrb.mxu3 %v835_v6 }
 0x5c7   :  { %v777_v45 = vsel %vm86_vm0, %v773_v44, 0.0 }
 0x5c8   :  { %778 = vadd.xlane.f32.xlu1 %v777_v45 }
 0x5d5   :  { %v795_v49 = vpop.xlane.xlu2 %794 }
 0x5d6   :  { %v799_v50 = vmul.f32 %v795_v49, %v2219_v31 }
 0x5d8   :  { %v801_v51 = vadd.f32 1e-05, %v799_v50 }
 0x5da   :  { %1876 = vrsqrt.f32 %v801_v51  ;;  %vm809_vm7 = vweird.f32 %v801_v51 }
 0x5dd   :  { %v997_v8 = vpop.permute.xlu2 %996 }
 0x5de   :  { %1794 = vmatpush.xpose.msk.msra.mxu3 %vm162_vm1, %v997_v8 }
 0x5e0   :  { %v1877_v52 = vpop.eup %1876 }
 0x5e1   :  { %v804_v53 = vmul.f32 %v1877_v52, %v801_v51  ;;  %vm810_vm6 = vweird.f32 %v1877_v52  ;;  %1068 = vrot.lane.b32.xlu1 %v903_v0, %s1947_s23 }
 0x5e2   :  { %vm811_vm8 = vmor %vm809_vm7, %vm810_vm6 }
 0x5e3   :  { %v805_v54 = vmul.f32 %v1877_v52, %v804_v53 }
 0x5e5   :  { %v806_v55 = vmul.f32 0.5, %v805_v54 }
 0x5e7   :  { %v807_v56 = vsub.f32 1.5, %v806_v55 }
 0x5e9   :  { %v808_v57 = vmul.f32 %v1877_v52, %v807_v56 }
 0x5eb   :  { %v812_v59 = vsel %vm811_vm8, %v1877_v52, %v808_v57 }
 0x5ec   :  { %v823_v60 = vmul.f32 %v812_v59, %v789_v34 }
 0x5ee   :  { %v828_v62 = vmul.f32 %v2258_v58, %v823_v60 }
 0x5f0   :  { %v2267_v63 = vadd.f32 %v2263_v61, %v828_v62 }
 0x5f2   :  { %1785 = vmatmul.msk.f32.vlgmr.msrb.gmra.mxu3 %vm86_vm0, %v2267_v63 }
 0x63b   :  { %v779_v2 = vpop.xlane.xlu1 %778 }
 0x63c   :  { %v788_v3 = vmul.f32 %v2219_v31, %v779_v2 }
 0x63e   :  { %v790_v11 = vsub.f32 %v773_v44, %v788_v3 }
 0x640   :  { %v792_v13 = vmul.f32 %v790_v11, %v790_v11 }
 0x642   :  { %v796_v14 = vsel %vm86_vm0, %v792_v13, 0.0 }
 0x653   :  { %v1069_v15 = vpop.permute.xlu1 %1068 }
 0x654   :  { %1797 = vmatpush.xpose.msk.msrb.mxu1 %vm162_vm1, %v1069_v15 }
 0x675   :  { %v874_v1 = vpop.f32.mrf.mxu3 }
 0x676   :  { %1137 = vrot.lane.b32.xlu1 %v874_v1, %s1948_s2  ;;  %1066 = vrot.lane.b32.xlu2 %v874_v1, %s1947_s23 }
 0x677   :  { %994 = vrot.lane.b32.xlu0 %v874_v1, %s1946_s21  ;;  %1792 = vmatmul.msk.f32.vlgmr.msra.gmra.mxu2 %vm162_vm1, %v874_v1 }
 0x67e   :  { %1035 = vrot.lane.b32.xlu1 %v926_v16, %s1946_s21 }
 0x6a1   :  { %797 = vadd.xlane.f32.xlu0 %v796_v14 }
 0x6b5   :  { %1139 = vrot.lane.b32.xlu0 %v903_v0, %s1948_s2 }
 0x6d0   :  { %v1067_v17 = vpop.permute.xlu2 %1066 }
 0x6d1   :  { %1798 = vmatmul.msk.f32.vlgmr.msrb.gmra.mxu1 %vm162_vm1, %v1067_v17 }
 0x6e8   :  { %v1138_v37 = vpop.permute.xlu1 %1137 }
 0x6e9   :  { %v995_v21 = vpop.permute.xlu0 %994 }
 0x6f0   :  { %v1036_v46 = vpop.permute.xlu1 %1035 }
 0x6f1   :  { %1056 = vmatpush.msra.mxu0 %v1036_v46 }
 0x6fa   :  { %v955_v18 = vpop.f32.mrf.mxu2 }
 0x6fb   :  { %v958_v19 = vmul.f32 0.35355338, %v955_v18 }
 0x6fd   :  { %v959_v20 = vsel %vm162_vm1, %v958_v19, -inf }
 0x6fe   :  { %960 = vmax.xlane.f32.xlu2 %v959_v20 }
 0x714   :  { %v798_v22 = vpop.xlane.xlu0 %797 }
 0x715   :  { %v800_v23 = vmul.f32 %v798_v22, %v2219_v31 }
 0x717   :  { %v802_v24 = vadd.f32 1e-05, %v800_v23 }
 0x719   :  { %1878 = vrsqrt.f32 %v802_v24  ;;  %vm819_vm10 = vweird.f32 %v802_v24 }
 0x71f   :  { %v1879_v25 = vpop.eup %1878 }
 0x720   :  { %v814_v26 = vmul.f32 %v1879_v25, %v802_v24  ;;  %vm820_vm9 = vweird.f32 %v1879_v25 }
 0x721   :  { %vm821_vm11 = vmor %vm819_vm10, %vm820_vm9 }
 0x722   :  { %v815_v27 = vmul.f32 %v1879_v25, %v814_v26 }
 0x724   :  { %v816_v28 = vmul.f32 0.5, %v815_v27 }
 0x726   :  { %v817_v4 = vsub.f32 1.5, %v816_v28 }
 0x727   :  { %v1140_v29 = vpop.permute.xlu0 %1139 }
 0x728   :  { %v818_v30 = vmul.f32 %v1879_v25, %v817_v4  ;;  %1800 = vmatpush.xpose.msk.msrb.mxu3 %vm162_vm1, %v1140_v29 }
 0x72a   :  { %v822_v32 = vsel %vm821_vm11, %v1879_v25, %v818_v30 }
 0x72b   :  { %v824_v33 = vmul.f32 %v822_v32, %v790_v11 }
 0x72d   :  { %v829_v34 = vmul.f32 %v2258_v58, %v824_v33 }
 0x72f   :  { %v2308_v35 = vadd.f32 %v2263_v61, %v829_v34 }
 0x731   :  { %1786 = vmatmul.msk.f32.gmra.mxu3 %vm86_vm0, %v2308_v35 }
 0x739   :  { %1795 = vmatmul.msk.f32.vlgmr.msra.gmra.mxu3 %vm162_vm1, %v995_v21 }
 0x73a   :  { %1289 = vmatpush.msra.mxu3 %v2312_v36 }
 0x741   :  { %1801 = vmatmul.msk.f32.vlgmr.msrb.gmra.mxu3 %vm162_vm1, %v1138_v37 }
 0x74e   :  { %v1091_v38 = vpop.f32.mrf.mxu1 }
 0x74f   :  { %v1094_v39 = vmul.f32 0.35355338, %v1091_v38 }
 0x751   :  { %v1095_v40 = vsel %vm162_vm1, %v1094_v39, -inf }
 0x752   :  { %1096 = vmax.xlane.f32.xlu0 %v1095_v40 }
 0x766   :  { %1106 = vrot.lane.b32.xlu0 %v926_v16, %s1947_s23 }
 0x771   :  { %v961_v41 = vpop.xlane.xlu2 %960 }
 0x772   :  { %v962_v42 = vsub.f32 %v958_v19, %v961_v41 }
 0x774   :  { %v963_v43 = vmul.f32 1.442695, %v962_v42 }
 0x776   :  { %1880 = vpow2.f32 %v963_v43 }
 0x77c   :  { %v1881_v44 = vpop.eup %1880 }
 0x77d   :  { %v965_v45 = vsel %vm162_vm1, %v1881_v44, 0.0 }
 0x790   :  { %966 = vadd.xlane.f32.xlu0 %v965_v45 }
 0x7a4   :  { %1369 = vrot.lane.b32.xlu0 %v906_v47, %s1947_s23 }
 0x7b4   :  { %v877_v48 = vpop.f32.mrf.mxu3 }
 0x7b5   :  { %1367 = vrot.lane.b32.xlu0 %v877_v48, %s1947_s23 }
 0x7bc   :  { %v1019_v6 = vpop.f32.mrf.mxu3 }
 0x7bd   :  { %v1022_v49 = vmul.f32 0.35355338, %v1019_v6  ;;  %1440 = vrot.lane.b32.xlu0 %v906_v47, %s1948_s2 }
 0x7bf   :  { %v1023_v50 = vsel %vm162_vm1, %v1022_v49, -inf }
 0x7c0   :  { %1024 = vmax.xlane.f32.xlu1 %v1023_v50 }
 0x7c4   :  { %v1162_v56 = vpop.f32.mrf.mxu3 }
 0x7c5   :  { %v1097_v51 = vpop.xlane.xlu0 %1096  ;;  %v1165_v57 = vmul.f32 0.35355338, %v1162_v56  ;;  %v849_v56 = vld [vmem:[%s2485_s11 + $0x10] sm:$0xff] }
 0x7c6   :  { %v1098_v52 = vsub.f32 %v1094_v39, %v1097_v51 }
 0x7c7   :  { %v1166_v59 = vsel %vm162_vm1, %v1165_v57, -inf }
 0x7c8   :  { %v1099_v53 = vmul.f32 1.442695, %v1098_v52 }
 0x7ca   :  { %1882 = vpow2.f32 %v1099_v53 }
 0x7d0   :  { %v1883_v54 = vpop.eup %1882 }
 0x7d1   :  { %v1101_v55 = vsel %vm162_vm1, %v1883_v54, 0.0 }
 0x7d2   :  { %1102 = vadd.xlane.f32.xlu2 %v1101_v55  ;;  %v850_v55 = vld [vmem:[%s2485_s11 + $0x18] sm:$0xff] }
 0x7d3   :  { %1224 = vmatpush.msra.mxu1 %v850_v55 }
 0x7d5   :  { %1225 = vmatpush.msra.mxu1 %v849_v56 }
 0x7d8   :  { %v1107_v58 = vpop.permute.xlu0 %1106 }
 0x7d9   :  { %1127 = vmatpush.msra.mxu2 %v1107_v58  ;;  %1297 = vrot.lane.b32.xlu1 %v906_v47, %s1946_s21  ;;  %v847_v58 = vld [vmem:[%s2485_s11] sm:$0xff] }
 0x7da   :  { %1167 = vmax.xlane.f32.xlu2 %v1166_v59 }
 0x7f2   :  { %1177 = vrot.lane.b32.xlu2 %v926_v16, %s1948_s2 }
 0x803   :  { %v967_v60 = vpop.xlane.xlu0 %966 }
 0x804   :  { %1884 = vrcp.f32 %v967_v60 }
 0x80a   :  { %v1885_v61 = vpop.eup %1884 }
 0x80b   :  { %v969_v62 = vmul.f32 %v1885_v61, %v1881_v44 }
 0x80d   :  { %1793 = vmatmul.msk.f32.vlgmr.msrb.gmra.mxu2 %vm162_vm1, %v969_v62 }
 0x80e   :  { %1804 = vmatpush.xpose.msk.msrb.mxu2 %vm162_vm1, %v906_v47 }
 0x816   :  { %v1370_v12 = vpop.permute.xlu0 %1369 }
 0x827   :  { %v1368_v18 = vpop.permute.xlu0 %1367 }
 0x82f   :  { %v1441_v27 = vpop.permute.xlu0 %1440 }
 0x833   :  { %v1025_v0 = vpop.xlane.xlu1 %1024 }
 0x834   :  { %v1026_v1 = vsub.f32 %v1022_v49, %v1025_v0 }
 0x836   :  { %v1027_v2 = vmul.f32 1.442695, %v1026_v1 }
 0x838   :  { %1886 = vpow2.f32 %v1027_v2 }
 0x83e   :  { %v1887_v3 = vpop.eup %1886 }
 0x83f   :  { %v1029_v5 = vsel %vm162_vm1, %v1887_v3, 0.0 }
 0x840   :  { %1030 = vadd.xlane.f32.xlu1 %v1029_v5 }
 0x845   :  { %v1103_v7 = vpop.xlane.xlu2 %1102 }
 0x846   :  { %1888 = vrcp.f32 %v1103_v7 }
 0x84b   :  { %v1298_v20 = vpop.permute.xlu1 %1297 }
 0x84c   :  { %v1889_v8 = vpop.eup %1888 }
 0x84d   :  { %v1105_v9 = vmul.f32 %v1889_v8, %v1883_v54  ;;  %v1168_v10 = vpop.xlane.xlu2 %1167 }
 0x84e   :  { %v1169_v11 = vsub.f32 %v1165_v57, %v1168_v10  ;;  %v848_v57 = vld [vmem:[%s2485_s11 + $0x8] sm:$0xff] }
 0x84f   :  { %1799 = vmatmul.msk.f32.vlgmr.msra.gmra.mxu2 %vm162_vm1, %v1105_v9  ;;  %1226 = vmatpush.msra.mxu1 %v848_v57 }
 0x850   :  { %v1170_v13 = vmul.f32 1.442695, %v1169_v11  ;;  %1810 = vmatpush.xpose.msk.msra.mxu2 %vm162_vm1, %v1370_v12 }
 0x851   :  { %1227 = vmatpush.msra.mxu1 %v847_v58 }
 0x852   :  { %1890 = vpow2.f32 %v1170_v13 }
 0x855   :  { %v1178_v14 = vpop.permute.xlu2 %1177 }
 0x856   :  { %1198 = vmatpush.msrb.mxu0 %v1178_v14 }
 0x857   :  { %1805 = vmatmul.msk.f32.vlgmr.msrb.gmra.mxu2 %vm162_vm1, %v877_v48 }
 0x858   :  { %v1891_v15 = vpop.eup %1890  ;;  %1525 = vmatpush.msrb.mxu2 %v850_v55 }
 0x859   :  { %1438 = vrot.lane.b32.xlu1 %v877_v48, %s1948_s2  ;;  %v1172_v17 = vsel %vm162_vm1, %v1891_v15, 0.0 }
 0x85a   :  { %1173 = vadd.xlane.f32.xlu2 %v1172_v17  ;;  %1526 = vmatpush.msrb.mxu2 %v849_v56 }
 0x85c   :  { %1527 = vmatpush.msrb.mxu2 %v848_v57 }
 0x85e   :  { %1528 = vmatpush.msrb.mxu2 %v847_v58 }
 0x85f   :  { %1811 = vmatmul.msk.f32.vlgmr.msra.gmra.mxu2 %vm162_vm1, %v1368_v18 }
 0x872   :  { %1295 = vrot.lane.b32.xlu2 %v877_v48, %s1946_s21 }
 0x890   :  { %v990_v19 = vpop.f32.mrf.mxu2 }
 0x891   :  { %993 = vst.msk [vmem:[#allocation2] sm:$0xff] %vm162_vm1, %v990_v19 }
 0x8b3   :  { %v1031_v21 = vpop.xlane.xlu1 %1030 }
 0x8b4   :  { %1892 = vrcp.f32 %v1031_v21 }
 0x8ba   :  { %v1893_v22 = vpop.eup %1892 }
 0x8bb   :  { %v1033_v23 = vmul.f32 %v1893_v22, %v1887_v3 }
 0x8bd   :  { %1796 = vmatmul.msk.f32.vlgmr.msra.gmra.mxu0 %vm162_vm1, %v1033_v23 }
 0x8be   :  { %1807 = vmatpush.xpose.msk.msra.mxu0 %vm162_vm1, %v1298_v20 }
 0x8cb   :  { %v1439_v37 = vpop.permute.xlu1 %1438 }
 0x8cd   :  { %v1174_v24 = vpop.xlane.xlu2 %1173 }
 0x8ce   :  { %1894 = vrcp.f32 %v1174_v24 }
 0x8d2   :  { %v1129_v16 = vpop.f32.mrf.mxu2 }
 0x8d4   :  { %v1895_v25 = vpop.eup %1894 }
 0x8d5   :  { %v1176_v26 = vmul.f32 %v1895_v25, %v1891_v15  ;;  %v1296_v30 = vpop.permute.xlu2 %1295 }
 0x8d7   :  { %1802 = vmatmul.msk.f32.vlgmr.msrb.gmra.mxu0 %vm162_vm1, %v1176_v26 }
 0x8d8   :  { %1813 = vmatpush.xpose.msk.msrb.mxu0 %vm162_vm1, %v1441_v27 }
 0x8da   :  { %v1256_v28 = vpop.f32.mrf.mxu2 }
 0x8db   :  { %v1259_v4 = vmul.f32 0.35355338, %v1256_v28 }
 0x8dd   :  { %v1260_v29 = vsel %vm162_vm1, %v1259_v4, -inf }
 0x8de   :  { %1261 = vmax.xlane.f32.xlu2 %v1260_v29 }
 0x8df   :  { %1808 = vmatmul.msk.f32.vlgmr.msra.gmra.mxu0 %vm162_vm1, %v1296_v30 }
 0x8e2   :  { %v1392_v32 = vpop.f32.mrf.mxu2 }
 0x8e3   :  { %v1395_v33 = vmul.f32 0.35355338, %v1392_v32 }
 0x8e5   :  { %v1396_v34 = vsel %vm162_vm1, %v1395_v33, -inf }
 0x8e6   :  { %1397 = vmax.xlane.f32.xlu1 %v1396_v34 }
 0x8e7   :  { %1814 = vmatmul.msk.f32.vlgmr.msrb.gmra.mxu0 %vm162_vm1, %v1439_v37 }
 0x8ff   :  { %1133 = vrot.lane.b32.xlu1 %v1129_v16, %s1950_s3 }
 0x93a   :  { %v1058_v38 = vpop.f32.mrf.mxu0 }
 0x951   :  { %v1262_v39 = vpop.xlane.xlu2 %1261 }
 0x952   :  { %v1263_v40 = vsub.f32 %v1259_v4, %v1262_v39 }
 0x954   :  { %v1264_v41 = vmul.f32 1.442695, %v1263_v40  ;;  %v1200_v42 = vpop.f32.mrf.mxu0 }
 0x956   :  { %1896 = vpow2.f32 %v1264_v41 }
 0x959   :  { %v1398_v43 = vpop.xlane.xlu1 %1397 }
 0x95a   :  { %v1399_v44 = vsub.f32 %v1395_v33, %v1398_v43 }
 0x95c   :  { %v1897_v45 = vpop.eup %1896  ;;  %v1400_v46 = vmul.f32 1.442695, %v1399_v44  ;;  %v1320_v47 = vpop.f32.mrf.mxu0 }
 0x95d   :  { %v1323_v48 = vmul.f32 0.35355338, %v1320_v47  ;;  %v1266_v6 = vsel %vm162_vm1, %v1897_v45, 0.0 }
 0x95e   :  { %1898 = vpow2.f32 %v1400_v46  ;;  %1267 = vadd.xlane.f32.xlu2 %v1266_v6  ;;  %v1596_v6 = vld [vmem:[%s2488_s14 + $0x10] sm:$0xff] }
 0x95f   :  { %v1324_v49 = vsel %vm162_vm1, %v1323_v48, -inf }
 0x960   :  { %1325 = vmax.xlane.f32.xlu0 %v1324_v49  ;;  %v1595_v49 = vld [vmem:[%s2488_s14 + $0x8] sm:$0xff] }
 0x964   :  { %v1899_v50 = vpop.eup %1898  ;;  %v1463_v51 = vpop.f32.mrf.mxu0 }
 0x965   :  { %v1466_v52 = vmul.f32 0.35355338, %v1463_v51  ;;  %v1402_v53 = vsel %vm162_vm1, %v1899_v50, 0.0 }
 0x966   :  { %1403 = vadd.xlane.f32.xlu1 %v1402_v53 }
 0x967   :  { %v1467_v54 = vsel %vm162_vm1, %v1466_v52, -inf }
 0x968   :  { %1468 = vmax.xlane.f32.xlu2 %v1467_v54 }
 0x971   :  { %v1134_v5 = vpop.permute.xlu1 %1133 }
 0x974   :  { %1062 = vrot.lane.b32.xlu0 %v1058_v38, %s1949_s25 }
 0x97f   :  { %1407 = vrot.lane.b32.xlu1 %v2312_v36, %s1947_s23 }
 0x980   :  { %1204 = vrot.lane.b32.xlu2 %v1200_v42, %s1951_s26 }
 0x9d1   :  { %v1268_v59 = vpop.xlane.xlu2 %1267 }
 0x9d2   :  { %1900 = vrcp.f32 %v1268_v59  ;;  %v1836_v59 = vld [vmem:[%s2486_s12] ss:$0 sm:$0xff] }
 0x9d3   :  { %v1326_v60 = vpop.xlane.xlu0 %1325 }
 0x9d4   :  { %v1327_v61 = vsub.f32 %v1323_v48, %v1326_v60  ;;  %v1597_v48 = vld [vmem:[%s2488_s14 + $0x18] sm:$0xff] }
 0x9d6   :  { %v1328_v62 = vmul.f32 1.442695, %v1327_v61 }
 0x9d8   :  { %v1901_v0 = vpop.eup %1900  ;;  %1902 = vpow2.f32 %v1328_v62  ;;  %v1837_v62 = vld [vmem:[%s2487_s13] ss:$0 sm:$0xff] }
 0x9d9   :  { %v1270_v1 = vmul.f32 %v1901_v0, %v1897_v45  ;;  %v1404_v10 = vpop.xlane.xlu1 %1403 }
 0x9db   :  { %1806 = vmatmul.msk.f32.vlgmr.msra.gmra.mxu3 %vm162_vm1, %v1270_v1  ;;  %v1469_v2 = vpop.xlane.xlu2 %1468 }
 0x9dc   :  { %v1470_v3 = vsub.f32 %v1466_v52, %v1469_v2  ;;  %v1606_v2 = vld [vmem:[%s2490_s16 + $0x38] sm:$0xff] }
 0x9dd   :  { %1660 = vmatpush.msra.mxu0 %v1606_v2 }
 0x9de   :  { %v1903_v7 = vpop.eup %1902  ;;  %v1471_v8 = vmul.f32 1.442695, %v1470_v3  ;;  %v1605_v3 = vld [vmem:[%s2490_s16 + $0x30] sm:$0xff] }
 0x9df   :  { %v1330_v9 = vsel %vm162_vm1, %v1903_v7, 0.0  ;;  %1661 = vmatpush.msra.mxu0 %v1605_v3 }
 0x9e0   :  { %1904 = vpow2.f32 %v1471_v8  ;;  %1331 = vadd.xlane.f32.xlu0 %v1330_v9  ;;  %v1602_v8 = vld [vmem:[%s2490_s16 + $0x18] sm:$0xff] }
 0x9e1   :  { %1906 = vrcp.f32 %v1404_v10 }
 0x9e3   :  { %v1205_v14 = vpop.permute.xlu2 %1204 }
 0x9e6   :  { %v1905_v11 = vpop.eup %1904  ;;  %v1063_v12 = vpop.permute.xlu0 %1062 }
 0x9e7   :  { %1065 = vst.msk [vmem:[#allocation2] sm:$0xff] %vm296_vm2, %v1063_v12  ;;  %v1473_v13 = vsel %vm162_vm1, %v1905_v11, 0.0  ;;  %v1907_v15 = vpop.eup %1906 }
 0x9e8   :  { %1136 = vst.msk [vmem:[#allocation2] sm:$0xff] %vm368_vm3, %v1134_v5  ;;  %1474 = vadd.xlane.f32.xlu2 %v1473_v13  ;;  %v1406_v18 = vmul.f32 %v1907_v15, %v1899_v50  ;;  %v1604_v5 = vld [vmem:[%s2490_s16 + $0x28] sm:$0xff] }
 0x9e9   :  { %1207 = vst.msk [vmem:[#allocation2] sm:$0xff] %vm440_vm4, %v1205_v14  ;;  %1662 = vmatpush.msra.mxu0 %v1604_v5  ;;  %v1601_v14 = vld [vmem:[%s2490_s16 + $0x10] sm:$0xff]  ;;  %v1600_v15 = vld [vmem:[%s2490_s16 + $0x8] sm:$0xff] }
 0x9f0   :  { %v1208_v17 = vld [vmem:[#allocation2] sm:$0xff] }
 0x9f1   :  { %v1408_v19 = vpop.permute.xlu1 %1407  ;;  %1803 = vmatmul.msk.f32.vlgmr.msra.gmra.mxu1 %vm86_vm0, %v1208_v17  ;;  %v1599_v17 = vld [vmem:[%s2490_s16] sm:$0xff] }
 0x9f2   :  { %1428 = vmatpush.msrb.mxu3 %v1408_v19 }
 0x9f3   :  { %1812 = vmatmul.msk.f32.vlgmr.msrb.gmra.mxu3 %vm162_vm1, %v1406_v18  ;;  %v1838_v18 = vld [vmem:[%s2489_s15] ss:$0 sm:$0xff] }
 0x9f4   :  { %1336 = vrot.lane.b32.xlu0 %v2312_v36, %s1946_s21  ;;  %1629 = vmatpush.msra.mxu3 %v1597_v48 }
 0x9f6   :  { %1630 = vmatpush.msra.mxu3 %v1596_v6 }
 0x9f8   :  { %1631 = vmatpush.msra.mxu3 %v1595_v49 }
 0xa00   :  { %1478 = vrot.lane.b32.xlu2 %v2312_v36, %s1948_s2 }
 0xa53   :  { %v1332_v20 = vpop.xlane.xlu0 %1331 }
 0xa54   :  { %1908 = vrcp.f32 %v1332_v20 }
 0xa5a   :  { %v1909_v23 = vpop.eup %1908 }
 0xa5b   :  { %v1475_v21 = vpop.xlane.xlu2 %1474  ;;  %v1334_v24 = vmul.f32 %v1909_v23, %v1903_v7  ;;  %v1603_v7 = vld [vmem:[%s2490_s16 + $0x20] sm:$0xff] }
 0xa5c   :  { %1910 = vrcp.f32 %v1475_v21  ;;  %1663 = vmatpush.msra.mxu0 %v1603_v7 }
 0xa5e   :  { %v1291_v22 = vpop.f32.mrf.mxu3  ;;  %1664 = vmatpush.msra.mxu0 %v1602_v8 }
 0xa5f   :  { %1294 = vst.msk [vmem:[#allocation2] sm:$0xff] %vm162_vm1, %v1291_v22 }
 0xa60   :  { %1665 = vmatpush.msra.mxu0 %v1601_v14 }
 0xa62   :  { %v1911_v26 = vpop.eup %1910  ;;  %1666 = vmatpush.msra.mxu0 %v1600_v15 }
 0xa63   :  { %v1479_v25 = vpop.permute.xlu2 %1478  ;;  %v1477_v27 = vmul.f32 %v1911_v26, %v1905_v11 }
 0xa64   :  { %1667 = vmatpush.msra.mxu0 %v1599_v17 }
 0xa66   :  { %v1337_v16 = vpop.permute.xlu0 %1336 }
 0xa67   :  { %1357 = vmatpush.msrb.mxu1 %v1337_v16 }
 0xa68   :  { %1809 = vmatmul.msk.f32.vlgmr.msrb.gmra.mxu1 %vm162_vm1, %v1334_v24 }
 0xa69   :  { %1499 = vmatpush.msra.mxu1 %v1479_v25 }
 0xa6e   :  { %v1229_v28 = vpop.f32.mrf.mxu1 }
 0xa6f   :  { %1232 = vst.msk [vmem:[#allocation3] sm:$0xff] %vm86_vm0, %v1229_v28 }
 0xa70   :  { %1815 = vmatmul.msk.f32.vlgmr.msra.gmra.mxu1 %vm162_vm1, %v1477_v27 }
 0xa76   :  { %v1430_v4 = vpop.f32.mrf.mxu3  ;;  %v1534_v30 = vld [vmem:[#allocation3] sm:$0xff] }
 0xa77   :  { %v1538_v32 = vadd.f32 %v1534_v30, %v2267_v63 }
 0xa79   :  { %v1540_v33 = vsel %vm86_vm0, %v1538_v32, 0.0 }
 0xae5   :  { %v1359_v36 = vpop.f32.mrf.mxu1 }
 0xae6   :  { %1363 = vrot.lane.b32.xlu0 %v1359_v36, %s1949_s25 }
 0xaed   :  { %v1501_v29 = vpop.f32.mrf.mxu1 }
 0xaee   :  { %1434 = vrot.lane.b32.xlu0 %v1430_v4, %s1950_s3  ;;  %1505 = vrot.lane.b32.xlu1 %v1501_v29, %s1951_s26 }
 0xb18   :  { %1541 = vadd.xlane.f32.xlu0 %v1540_v33  ;;  %v1839_v33 = vld [vmem:[%s2491_s17] ss:$0 sm:$0xff] }
 0xb58   :  { %v1364_v34 = vpop.permute.xlu0 %1363 }
 0xb59   :  { %1366 = vst.msk [vmem:[#allocation2] sm:$0xff] %vm296_vm2, %v1364_v34 }
 0xb60   :  { %v1435_v37 = vpop.permute.xlu0 %1434  ;;  %v1506_v38 = vpop.permute.xlu1 %1505 }
 0xb61   :  { %1437 = vst.msk [vmem:[#allocation2] sm:$0xff] %vm368_vm3, %v1435_v37 }
 0xb62   :  { %1508 = vst.msk [vmem:[#allocation2] sm:$0xff] %vm440_vm4, %v1506_v38 }
 0xb69   :  { %v1509_v39 = vld [vmem:[#allocation2] sm:$0xff] }
 0xb6a   :  { %1816 = vmatmul.msk.f32.vlgmr.msrb.gmra.mxu2 %vm86_vm0, %v1509_v39 }
 0xb8b   :  { %v1542_v40 = vpop.xlane.xlu0 %1541 }
 0xb8c   :  { %v1546_v41 = vmul.f32 %v1542_v40, %v2219_v31 }
 0xb8e   :  { %v1548_v42 = vsub.f32 %v1538_v32, %v1546_v41 }
 0xb90   :  { %v1550_v63 = vmul.f32 %v1548_v42, %v1548_v42 }
 0xb92   :  { %v1552_v43 = vsel %vm86_vm0, %v1550_v63, 0.0 }
 0xb93   :  { %1553 = vadd.xlane.f32.xlu2 %v1552_v43 }
 0xbed   :  { %v1530_v44 = vpop.f32.mrf.mxu2 }
 0xbee   :  { %1533 = vst.msk [vmem:[#allocation3 + $0x8] sm:$0xff] %vm86_vm0, %v1530_v44 }
 0xbf5   :  { %v1535_v45 = vld [vmem:[#allocation3 + $0x8] sm:$0xff] }
 0xbf6   :  { %v1539_v46 = vadd.f32 %v1535_v45, %v2308_v35  ;;  %v1594_v35 = vld [vmem:[%s2488_s14] sm:$0xff]  ;;  %s1953_s14 = smov [#allocation4]  }
 0xbf7   :  { %1632 = vmatpush.msra.mxu3 %v1594_v35  ;;  %s1739_s30 = sshll.u32 %s1953_s14, 4  ;;  %s1740_s30 = int_to_ptr.vmem [resolvable:$true] %s1739_s30 }
 0xbf8   :  { %v1543_v47 = vsel %vm86_vm0, %v1539_v46, 0.0 }
 0xbf9   :  { %1544 = vadd.xlane.f32.xlu1 %v1543_v47 }
 0xc06   :  { %v1554_v50 = vpop.xlane.xlu2 %1553 }
 0xc07   :  { %v1558_v51 = vmul.f32 %v1554_v50, %v2219_v31 }
 0xc09   :  { %v1560_v52 = vadd.f32 1e-05, %v1558_v51 }
 0xc0b   :  { %1912 = vrsqrt.f32 %v1560_v52  ;;  %vm1568_vm13 = vweird.f32 %v1560_v52 }
 0xc11   :  { %v1913_v53 = vpop.eup %1912 }
 0xc12   :  { %v1563_v54 = vmul.f32 %v1913_v53, %v1560_v52  ;;  %vm1569_vm12 = vweird.f32 %v1913_v53 }
 0xc13   :  { %vm1570_vm14 = vmor %vm1568_vm13, %vm1569_vm12 }
 0xc14   :  { %v1564_v55 = vmul.f32 %v1913_v53, %v1563_v54 }
 0xc16   :  { %v1565_v56 = vmul.f32 0.5, %v1564_v55 }
 0xc18   :  { %v1566_v57 = vsub.f32 1.5, %v1565_v56 }
 0xc1a   :  { %v1567_v58 = vmul.f32 %v1913_v53, %v1566_v57 }
 0xc1c   :  { %v1571_v60 = vsel %vm1570_vm14, %v1913_v53, %v1567_v58  ;;  %v1840_v58 = vld [vmem:[%s2492_s18] ss:$0 sm:$0xff] }
 0xc1d   :  { %v1582_v61 = vmul.f32 %v1571_v60, %v1548_v42 }
 0xc1f   :  { %v1587_v0 = vmul.f32 %v1836_v59, %v1582_v61  ;;  %v1841_v61 = vld [vmem:[%s2493_s19] ss:$0 sm:$0xff] }
 0xc21   :  { %v1592_v1 = vadd.f32 %v1837_v62, %v1587_v0 }
 0xc23   :  { %1817 = vmatmul.msk.f32.vlgmr.msra.gmra.mxu3 %vm86_vm0, %v1592_v1 }
 0xc6c   :  { %v1545_v9 = vpop.xlane.xlu1 %1544 }
 0xc6d   :  { %v1547_v10 = vmul.f32 %v1545_v9, %v2219_v31 }
 0xc6f   :  { %v1549_v11 = vsub.f32 %v1539_v46, %v1547_v10 }
 0xc71   :  { %v1551_v12 = vmul.f32 %v1549_v11, %v1549_v11 }
 0xc73   :  { %v1555_v13 = vsel %vm86_vm0, %v1551_v12, 0.0 }
 0xc74   :  { %1556 = vadd.xlane.f32.xlu0 %v1555_v13 }
 0xca6   :  { %v1634_v19 = vpop.f32.mrf.mxu3 }
 0xca7   :  { %v1635_v20 = vadd.f32 %v1838_v18, %v1634_v19 }
 0xca9   :  { %v1640_v21 = vmax.f32 %v1635_v20, 0.0 }
 0xcab   :  { %1819 = vmatmul.msk.f32.vlgmr.msra.gmra.mxu0 %vm1645_vm15, %v1640_v21 }
 0xce7   :  { %v1557_v22 = vpop.xlane.xlu0 %1556 }
 0xce8   :  { %v1559_v23 = vmul.f32 %v1557_v22, %v2219_v31 }
 0xcea   :  { %v1561_v24 = vadd.f32 1e-05, %v1559_v23 }
 0xcec   :  { %1914 = vrsqrt.f32 %v1561_v24  ;;  %vm1578_vm2 = vweird.f32 %v1561_v24 }
 0xcf2   :  { %v1915_v16 = vpop.eup %1914 }
 0xcf3   :  { %v1573_v25 = vmul.f32 %v1915_v16, %v1561_v24  ;;  %vm1579_vm1 = vweird.f32 %v1915_v16 }
 0xcf4   :  { %vm1580_vm3 = vmor %vm1578_vm2, %vm1579_vm1 }
 0xcf5   :  { %v1574_v26 = vmul.f32 %v1915_v16, %v1573_v25 }
 0xcf7   :  { %v1575_v27 = vmul.f32 0.5, %v1574_v26 }
 0xcf9   :  { %v1576_v28 = vsub.f32 1.5, %v1575_v27 }
 0xcfb   :  { %v1577_v36 = vmul.f32 %v1915_v16, %v1576_v28 }
 0xcfd   :  { %v1581_v4 = vsel %vm1580_vm3, %v1915_v16, %v1577_v36 }
 0xcfe   :  { %v1583_v29 = vmul.f32 %v1581_v4, %v1549_v11 }
 0xd00   :  { %v1588_v30 = vmul.f32 %v1836_v59, %v1583_v29 }
 0xd02   :  { %v1593_v32 = vadd.f32 %v1837_v62, %v1588_v30 }
 0xd04   :  { %1818 = vmatmul.msk.f32.gmra.mxu3 %vm86_vm0, %v1593_v32 }
 0xd28   :  { %v1669_v34 = vpop.f32.mrf.mxu0 }
 0xd29   :  { %v1670_v37 = vadd.f32 %v1839_v33, %v1669_v34 }
 0xd2b   :  { %v1677_v38 = vadd.f32 %v1670_v37, %v1592_v1 }
 0xd2d   :  { %v1679_v39 = vsel %vm86_vm0, %v1677_v38, 0.0 }
 0xd2e   :  { %1680 = vadd.xlane.f32.xlu1 %v1679_v39 }
 0xd87   :  { %v1637_v40 = vpop.f32.mrf.mxu3 }
 0xd88   :  { %v1638_v41 = vadd.f32 %v1838_v18, %v1637_v40 }
 0xd8a   :  { %v1641_v42 = vmax.f32 %v1638_v41, 0.0 }
 0xd8c   :  { %1820 = vmatmul.msk.f32.gmra.mxu0 %vm1645_vm15, %v1641_v42 }
 0xda1   :  { %v1681_v63 = vpop.xlane.xlu1 %1680 }
 0xda2   :  { %v1685_v43 = vmul.f32 %v1681_v63, %v2219_v31 }
 0xda4   :  { %v1687_v44 = vsub.f32 %v1677_v38, %v1685_v43 }
 0xda6   :  { %v1689_v45 = vmul.f32 %v1687_v44, %v1687_v44 }
 0xda8   :  { %v1691_v46 = vsel %vm86_vm0, %v1689_v45, 0.0 }
 0xda9   :  { %1692 = vadd.xlane.f32.xlu0 %v1691_v46 }
 0xe09   :  { %v1672_v47 = vpop.f32.mrf.mxu0 }
 0xe0a   :  { %v1673_v48 = vadd.f32 %v1839_v33, %v1672_v47 }
 0xe0c   :  { %v1678_v6 = vadd.f32 %v1673_v48, %v1593_v32 }
 0xe0e   :  { %v1682_v49 = vsel %vm86_vm0, %v1678_v6, 0.0 }
 0xe0f   :  { %1683 = vadd.xlane.f32.xlu2 %v1682_v49 }
 0xe1c   :  { %v1693_v35 = vpop.xlane.xlu0 %1692 }
 0xe1d   :  { %v1697_v50 = vmul.f32 %v1693_v35, %v2219_v31 }
 0xe1f   :  { %v1699_v51 = vadd.f32 1e-05, %v1697_v50 }
 0xe21   :  { %1916 = vrsqrt.f32 %v1699_v51  ;;  %vm1707_vm5 = vweird.f32 %v1699_v51 }
 0xe27   :  { %v1917_v52 = vpop.eup %1916 }
 0xe28   :  { %v1702_v53 = vmul.f32 %v1917_v52, %v1699_v51  ;;  %vm1708_vm4 = vweird.f32 %v1917_v52 }
 0xe29   :  { %vm1709_vm6 = vmor %vm1707_vm5, %vm1708_vm4 }
 0xe2a   :  { %v1703_v54 = vmul.f32 %v1917_v52, %v1702_v53 }
 0xe2c   :  { %v1704_v55 = vmul.f32 0.5, %v1703_v54 }
 0xe2e   :  { %v1705_v56 = vsub.f32 1.5, %v1704_v55 }
 0xe30   :  { %v1706_v57 = vmul.f32 %v1917_v52, %v1705_v56 }
 0xe32   :  { %v1710_v59 = vsel %vm1709_vm6, %v1917_v52, %v1706_v57 }
 0xe33   :  { %v1721_v60 = vmul.f32 %v1710_v59, %v1687_v44 }
 0xe35   :  { %v1726_v62 = vmul.f32 %v1840_v58, %v1721_v60 }
 0xe37   :  { %v1731_v0 = vadd.f32 %v1841_v61, %v1726_v62 }
 0xe39   :  { %1733 = vst.msk [vmem:[#allocation4] sm:$0xff] %vm86_vm0, %v1731_v0 }
 0xe82   :  { %v1684_v1 = vpop.xlane.xlu2 %1683 }
 0xe83   :  { %v1686_v2 = vmul.f32 %v1684_v1, %v2219_v31 }
 0xe85   :  { %v1688_v3 = vsub.f32 %v1678_v6, %v1686_v2 }
 0xe87   :  { %v1690_v5 = vmul.f32 %v1688_v3, %v1688_v3 }
 0xe89   :  { %v1694_v7 = vsel %vm86_vm0, %v1690_v5, 0.0 }
 0xe8a   :  { %1695 = vadd.xlane.f32.xlu1 %v1694_v7 }
 0xefd   :  { %v1696_v8 = vpop.xlane.xlu1 %1695 }
 0xefe   :  { %v1698_v9 = vmul.f32 %v1696_v8, %v2219_v31 }
 0xf00   :  { %v1700_v10 = vadd.f32 1e-05, %v1698_v9 }
 0xf02   :  { %1918 = vrsqrt.f32 %v1700_v10  ;;  %vm1717_vm8 = vweird.f32 %v1700_v10 }
 0xf08   :  { %v1919_v11 = vpop.eup %1918 }
 0xf09   :  { %v1712_v12 = vmul.f32 %v1919_v11, %v1700_v10  ;;  %vm1718_vm7 = vweird.f32 %v1919_v11 }
 0xf0a   :  { %vm1719_vm9 = vmor %vm1717_vm8, %vm1718_vm7 }
 0xf0b   :  { %v1713_v13 = vmul.f32 %v1919_v11, %v1712_v12 }
 0xf0d   :  { %v1714_v14 = vmul.f32 0.5, %v1713_v13 }
 0xf0f   :  { %v1715_v15 = vsub.f32 1.5, %v1714_v14 }
 0xf11   :  { %v1716_v17 = vmul.f32 %v1919_v11, %v1715_v15 }
 0xf13   :  { %v1720_v18 = vsel %vm1719_vm9, %v1919_v11, %v1716_v17 }
 0xf14   :  { %v1722_v19 = vmul.f32 %v1720_v18, %v1688_v3 }
 0xf16   :  { %v1727_v31 = vmul.f32 %v1840_v58, %v1722_v19 }
 0xf18   :  { %v1732_v20 = vadd.f32 %v1841_v61, %v1727_v31 }
 0xf1a   :  { %1734 = vst.msk [vmem:[#allocation4 + $0x8] sm:$0xff] %vm86_vm0, %v1732_v20 }
 0xf1b   :  { %1747 = dma.vmem_to_hbm [thread:$0]  %s1740_s30, 256, %s1742_s29, [#allocation5], %s1954_s0, %s1954_s0, %s1949_s25  }
 0xf1c   :  { %1944 = dma.done.wait [#allocation5], 256  }
 0xf1d   :  { %1945 = vsyncadd [#allocation5], 4294967040 }
 0xf1e   :  { %1752 = vsyncpa [#allocation5], 1 }

</bundles_post_ra>
